<compile_context>
chip_gen: v7x
topology: tpu7x:2x2x1
jax: 0.10.0
libtpu: 0.0.40
codegen_flags: <defaults>
</compile_context>

<pallas_src>
import functools
import math

import numpy as np
import jax
import jax.numpy as jnp
from jax import lax
from jax.experimental import pallas as pl
from jax.experimental.pallas import tpu as pltpu


_BN_EPS = 1e-3
_DILATIONS = (1, 2, 4, 8)


# ----------------------------------------------------------------------------
# Fused Pallas kernel
# ----------------------------------------------------------------------------
def _fused_kernel(x_ref, ws_ref, bs_ref, w1_ref, w234_ref, sc_ref, bi_ref,
                  mask_ref, o_ref, *, H, W, mid, num_blocks, dilations,
                  mm_dtype):
    HW = H * W
    kmid = 9 * mid

    # ---- stem: 1x1 conv + bias + ReLU  (internal channel order) ------------
    x0 = x_ref[0].astype(mm_dtype)                                # (Cin0, HW)
    h = jnp.dot(ws_ref[...].astype(mm_dtype), x0,
                preferred_element_type=jnp.float32)               # (C, HW)
    h = jnp.maximum(h + bs_ref[...], 0.0)

    # ---- C3D blocks ---------------------------------------------------------
    for i in range(num_blocks):
        res = h
        cur = h
        feats = []
        for j, d in enumerate(dilations):
            w = w1_ref[i] if j == 0 else w234_ref[i, j - 1]       # (9*mid, Cin)
            # One MXU matmul: all 9 taps at once.
            z = jnp.dot(w.astype(mm_dtype), cur.astype(mm_dtype),
                        preferred_element_type=jnp.float32)       # (9*mid, HW)
            # Zero halo along the flattened-pixel (lane) axis; covers every
            # tap shift s = (kh*W + kw)*d, |s| <= d*(W+1).
            pad = d * (W + 1)
            zeros = jnp.zeros((kmid, pad), jnp.float32)
            zp = jnp.concatenate([zeros, z, zeros], axis=1)       # (9*mid, HW+2p)

            acc = jnp.zeros((mid, HW), jnp.float32)
            t = 0
            for kh in (-1, 0, 1):
                for kw in (-1, 0, 1):
                    s = (kh * W + kw) * d
                    zt = zp[t * mid:(t + 1) * mid, pad + s:pad + s + HW]
                    if kw == -1:                 # kill horizontal wrap-around
                        zt = zt * mask_ref[j, 0]
                    elif kw == 1:
                        zt = zt * mask_ref[j, 1]
                    acc = acc + zt
                    t += 1

            y = acc * sc_ref[i, j] + bi_ref[i, j]    # folded BatchNorm (f32)
            cur = y * jax.nn.sigmoid(y)              # SiLU (f32 VPU/EUP)
            feats.append(cur)

        # De-interleave is pre-folded into the weights, so the block epilogue
        # is a plain (tile-aligned) stack + residual add.
        h = res + jnp.concatenate(feats, axis=0)                  # (C, HW)

    o_ref[0] = h.astype(o_ref.dtype)


# ----------------------------------------------------------------------------
# Parameter construction (deterministic, synthetic; BN folded in eval mode)
# ----------------------------------------------------------------------------
def init_params(key, in_channels, out_channels, num_blocks):
    mid = out_channels // 4
    keys = jax.random.split(key, 2 + num_blocks)
    params = {
        "stem_w": jax.random.normal(keys[0], (in_channels, out_channels),
                                    jnp.float32) * (1.0 / math.sqrt(in_channels)),
        "stem_b": jax.random.normal(keys[1], (out_channels,), jnp.float32) * 0.1,
        "blocks": [],
    }
    for i in range(num_blocks):
        bkeys = jax.random.split(keys[2 + i], 4)
        convs = []
        cin = out_channels
        for j in range(4):
            kk = jax.random.split(bkeys[j], 5)
            w = jax.random.normal(kk[0], (3, 3, cin, mid), jnp.float32) * (
                1.0 / math.sqrt(cin * 9))
            gamma = jax.random.uniform(kk[1], (mid,), minval=0.5, maxval=1.5)
            beta = jax.random.normal(kk[2], (mid,)) * 0.1
            mean = jax.random.normal(kk[3], (mid,)) * 0.1
            var = jax.random.uniform(kk[4], (mid,), minval=0.5, maxval=1.5)
            scale = gamma / jnp.sqrt(var + _BN_EPS)
            bias = beta - mean * scale
            convs.append(dict(w=w, scale=scale, bias=bias))
            cin = mid
        params["blocks"].append(convs)
    return params


# ----------------------------------------------------------------------------
# Weight packing: fold the even/odd de-interleave into the channel order
# ----------------------------------------------------------------------------
def _channel_orders(C):
    half = C // 2
    # internal channel k holds true channel inv[k]
    inv = np.empty((C,), np.int32)
    inv[0::2] = np.arange(half, dtype=np.int32)
    inv[1::2] = half + np.arange(half, dtype=np.int32)
    # true channel c lives at internal position deint[c]  (inv[deint] == id)
    deint = np.concatenate([np.arange(0, C, 2, dtype=np.int32),
                            np.arange(1, C, 2, dtype=np.int32)])
    return inv, deint


def _pack_params(params):
    C = params["stem_w"].shape[1]
    mid = C // 4
    inv, deint = _channel_orders(C)

    ws = jnp.transpose(params["stem_w"])[inv, :]            # (C, Cin0)
    bs = params["stem_b"][inv][:, None]                     # (C, 1)

    w1, w234, sc, bi = [], [], [], []
    for convs in params["blocks"]:
        w234_row, sc_row, bi_row = [], [], []
        for j, cv in enumerate(convs):
            w = cv["w"]                                      # (3,3,cin,mid) HWIO
            cin = w.shape[2]
            wp = jnp.transpose(w.reshape(9, cin, mid),
                               (0, 2, 1)).reshape(9 * mid, cin)
            if j == 0:
                w1.append(wp[:, inv])                        # internal-order input
            else:
                w234_row.append(wp)
            sc_row.append(cv["scale"][:, None])
            bi_row.append(cv["bias"][:, None])
        w234.append(jnp.stack(w234_row))
        sc.append(jnp.stack(sc_row))
        bi.append(jnp.stack(bi_row))

    return dict(ws=ws, bs=bs, w1=jnp.stack(w1), w234=jnp.stack(w234),
                sc=jnp.stack(sc), bi=jnp.stack(bi), deint=deint)


def _make_shift_masks(H, W, dilations):
    """Precomputed {0,1} masks killing horizontal wrap for dx = -d / +d."""
    ww = np.arange(H * W) % W
    m = np.zeros((len(dilations), 2, 1, H * W), np.float32)
    for j, d in enumerate(dilations):
        m[j, 0, 0] = (ww - d >= 0).astype(np.float32)
        m[j, 1, 0] = (ww + d < W).astype(np.float32)
    return jnp.asarray(m)


# ----------------------------------------------------------------------------
# Forward wrapper
# ----------------------------------------------------------------------------
def c3d_bottleneck_forward(params, x_nchw, *, matmul_dtype=jnp.float32):
    N, Cin0, H, W = x_nchw.shape
    C = params["stem_w"].shape[1]
    mid = C // 4
    NB = len(params["blocks"])
    HW = H * W

    p = _pack_params(params)
    ws = p["ws"].astype(matmul_dtype)            # MXU operands (bf16 on v6e/v7x)
    w1 = p["w1"].astype(matmul_dtype)
    w234 = p["w234"].astype(matmul_dtype)
    bs, sc, bi = p["bs"], p["sc"], p["bi"]       # element-wise stays f32
    masks = _make_shift_masks(H, W, _DILATIONS)

    x = x_nchw.reshape(N, Cin0, HW)              # free view of NCHW

    kernel = functools.partial(
        _fused_kernel, H=H, W=W, mid=mid, num_blocks=NB,
        dilations=_DILATIONS, mm_dtype=matmul_dtype)

    out_int = pl.pallas_call(
        kernel,
        out_shape=jax.ShapeDtypeStruct((N, C, HW), x_nchw.dtype),
        grid=(N,),
        in_specs=[
            pl.BlockSpec((1, Cin0, HW), lambda n: (n, 0, 0)),      # activation
            pl.BlockSpec(ws.shape, lambda n: (0, 0)),              # stem W
            pl.BlockSpec(bs.shape, lambda n: (0, 0)),              # stem b
            pl.BlockSpec(w1.shape, lambda n: (0, 0, 0)),           # conv1 per block
            pl.BlockSpec(w234.shape, lambda n: (0, 0, 0, 0)),      # conv2..4
            pl.BlockSpec(sc.shape, lambda n: (0, 0, 0, 0)),        # BN scale
            pl.BlockSpec(bi.shape, lambda n: (0, 0, 0, 0)),        # BN bias
            pl.BlockSpec(masks.shape, lambda n: (0, 0, 0, 0)),     # wrap masks
        ],
        out_specs=pl.BlockSpec((1, C, HW), lambda n: (n, 0, 0)),
        compiler_params=pltpu.CompilerParams(
            dimension_semantics=("parallel",)),
    )(x, ws, bs, w1, w234, sc, bi, masks)

    # Undo the internal (de-interleave-folded) channel order ONCE at the end.
    out = jnp.take(out_int, jnp.asarray(p["deint"]), axis=1)
    return out.reshape(N, C, H, W)


# ----------------------------------------------------------------------------
# Pure-JAX reference (true channel order, lax.conv) for correctness check
# ----------------------------------------------------------------------------
def reference_forward(params, x_nchw):
    x = jnp.transpose(x_nchw, (0, 2, 3, 1))
    x = jnp.maximum(
        jnp.einsum("nhwc,co->nhwo", x, params["stem_w"]) + params["stem_b"], 0.0)
    for convs in params["blocks"]:
        res = x
        feats = []
        h = x
        for j, d in enumerate(_DILATIONS):
            y = lax.conv_general_dilated(
                h, convs[j]["w"], window_strides=(1, 1),
                padding=[(d, d), (d, d)], rhs_dilation=(d, d),
                dimension_numbers=("NHWC", "HWIO", "NHWC"))
            y = y * convs[j]["scale"] + convs[j]["bias"]
            h = y * jax.nn.sigmoid(y)
            feats.append(h)
        cat = jnp.concatenate(feats, axis=-1)
        o = jnp.concatenate([cat[..., 0::2], cat[..., 1::2]], axis=-1)
        x = res + o
    return jnp.transpose(x, (0, 3, 1, 2))


if __name__ == "__main__":
    key = jax.random.PRNGKey(0)
    kx, kp = jax.random.split(key)

    N, IN_C, H, W = 2, 4, 16, 16
    OUT_C, NUM_BLOCKS = 32, 2

    x = jax.random.normal(kx, (N, IN_C, H, W), jnp.float32)
    params = init_params(kp, IN_C, OUT_C, NUM_BLOCKS)

    # f32 path (exactness check)
    fwd = jax.jit(functools.partial(c3d_bottleneck_forward,
                                    matmul_dtype=jnp.float32))
    out = jax.block_until_ready(fwd(params, x))
    assert out.shape == (N, OUT_C, H, W), out.shape

    ref = jax.block_until_ready(reference_forward(params, x))
    max_err = float(jnp.max(jnp.abs(out - ref)))
    assert jnp.allclose(out, ref, atol=1e-3, rtol=1e-3), max_err

    # bf16 MXU-operand path (v6e/v7x fast path); element-wise stays f32.
    out_bf16 = jax.block_until_ready(
        c3d_bottleneck_forward(params, x, matmul_dtype=jnp.bfloat16))
    err_bf16 = float(jnp.max(jnp.abs(out_bf16 - ref)))
    assert err_bf16 < 0.1 * (1.0 + float(jnp.max(jnp.abs(ref)))), err_bf16

    print("KERNEL_OK")
</pallas_src>

<mosaic_0001>
module attributes {stable_mosaic.version = 11 : i64} {
  func.func @_fused_kernel(%arg0: i32, %arg1: memref<1x4x256xf32, #tpu.memory_space<vmem>>, %arg2: memref<32x4xf32, #tpu.memory_space<vmem>>, %arg3: memref<32x1xf32, #tpu.memory_space<vmem>>, %arg4: memref<2x72x32xf32, #tpu.memory_space<vmem>>, %arg5: memref<2x3x72x8xf32, #tpu.memory_space<vmem>>, %arg6: memref<2x4x8x1xf32, #tpu.memory_space<vmem>>, %arg7: memref<2x4x8x1xf32, #tpu.memory_space<vmem>>, %arg8: memref<4x2x1x256xf32, #tpu.memory_space<vmem>>, %arg9: memref<1x32x256xf32, #tpu.memory_space<vmem>>) attributes {dimension_semantics = [#tpu.dimension_semantics<parallel>], iteration_bounds = array<i64: 2>, scalar_prefetch = 0 : i64, scratch_operands = 0 : i64, tpu.core_type = #tpu.core_type<tc>, window_params = [{transform_indices = @transform_0, window_bounds = array<i64: 1, 4, 256>}, {pipeline_mode = #tpu.pipeline_mode<synchronous>, transform_indices = @transform_1, window_bounds = array<i64: 32, 4>}, {pipeline_mode = #tpu.pipeline_mode<synchronous>, transform_indices = @transform_2, window_bounds = array<i64: 32, 1>}, {pipeline_mode = #tpu.pipeline_mode<synchronous>, transform_indices = @transform_3, window_bounds = array<i64: 2, 72, 32>}, {pipeline_mode = #tpu.pipeline_mode<synchronous>, transform_indices = @transform_4, window_bounds = array<i64: 2, 3, 72, 8>}, {pipeline_mode = #tpu.pipeline_mode<synchronous>, transform_indices = @transform_5, window_bounds = array<i64: 2, 4, 8, 1>}, {pipeline_mode = #tpu.pipeline_mode<synchronous>, transform_indices = @transform_6, window_bounds = array<i64: 2, 4, 8, 1>}, {pipeline_mode = #tpu.pipeline_mode<synchronous>, transform_indices = @transform_7, window_bounds = array<i64: 4, 2, 1, 256>}, {transform_indices = @transform_8, window_bounds = array<i64: 1, 32, 256>}]} {
    %c0 = arith.constant 0 : index
    %c0_0 = arith.constant 0 : index
    %c0_1 = arith.constant 0 : index
    %0 = vector.load %arg1[%c0, %c0_0, %c0_1] : memref<1x4x256xf32, #tpu.memory_space<vmem>>, vector<1x4x256xf32>
    %1 = vector.shape_cast %0 : vector<1x4x256xf32> to vector<4x256xf32>
    %c0_2 = arith.constant 0 : index
    %c0_3 = arith.constant 0 : index
    %2 = vector.load %arg2[%c0_2, %c0_3] : memref<32x4xf32, #tpu.memory_space<vmem>>, vector<32x4xf32>
    %cst = arith.constant dense<0.000000e+00> : vector<32x256xf32>
    %3 = tpu.matmul %2, %1, %cst {dimension_numbers = #tpu.dot_dimension_numbers<[1], [0], [0], [1], [0, 0, 1, 1], [], []>} : vector<32x4xf32>, vector<4x256xf32>, vector<32x256xf32> -> vector<32x256xf32>
    %c0_4 = arith.constant 0 : index
    %c0_5 = arith.constant 0 : index
    %4 = vector.load %arg3[%c0_4, %c0_5] : memref<32x1xf32, #tpu.memory_space<vmem>>, vector<32x1xf32>
    %5 = vector.broadcast %4 : vector<32x1xf32> to vector<32x256xf32>
    %6 = arith.addf %3, %5 : vector<32x256xf32>
    %cst_6 = arith.constant 0.000000e+00 : f32
    %7 = vector.broadcast %cst_6 : f32 to vector<32x256xf32>
    %8 = arith.maximumf %6, %7 : vector<32x256xf32>
    %c0_7 = arith.constant 0 : index
    %c0_8 = arith.constant 0 : index
    %c0_9 = arith.constant 0 : index
    %9 = vector.load %arg4[%c0_7, %c0_8, %c0_9] : memref<2x72x32xf32, #tpu.memory_space<vmem>>, vector<1x72x32xf32>
    %10 = vector.shape_cast %9 : vector<1x72x32xf32> to vector<72x32xf32>
    %cst_10 = arith.constant dense<0.000000e+00> : vector<72x256xf32>
    %11 = tpu.matmul %10, %8, %cst_10 {dimension_numbers = #tpu.dot_dimension_numbers<[1], [0], [0], [1], [0, 0, 1, 1], [], []>} : vector<72x32xf32>, vector<32x256xf32>, vector<72x256xf32> -> vector<72x256xf32>
    %cst_11 = arith.constant 0.000000e+00 : f32
    %12 = vector.broadcast %cst_11 : f32 to vector<72x17xf32>
    %13 = tpu.concatenate %12, %11, %12 in 1 : vector<72x17xf32>, vector<72x256xf32>, vector<72x17xf32> -> vector<72x290xf32>
    %cst_12 = arith.constant 0.000000e+00 : f32
    %14 = vector.broadcast %cst_12 : f32 to vector<8x256xf32>
    %15 = vector.extract_strided_slice %13 {offsets = [0, 0], sizes = [8, 256], strides = [1, 1]} : vector<72x290xf32> to vector<8x256xf32>
    %c0_13 = arith.constant 0 : index
    %c0_14 = arith.constant 0 : index
    %c0_15 = arith.constant 0 : index
    %c0_16 = arith.constant 0 : index
    %16 = vector.load %arg8[%c0_13, %c0_14, %c0_15, %c0_16] : memref<4x2x1x256xf32, #tpu.memory_space<vmem>>, vector<1x1x1x256xf32>
    %17 = vector.shape_cast %16 : vector<1x1x1x256xf32> to vector<1x256xf32>
    %18 = vector.broadcast %17 : vector<1x256xf32> to vector<8x256xf32>
    %19 = arith.mulf %15, %18 : vector<8x256xf32>
    %20 = arith.addf %14, %19 : vector<8x256xf32>
    %21 = vector.extract_strided_slice %13 {offsets = [8, 1], sizes = [8, 256], strides = [1, 1]} : vector<72x290xf32> to vector<8x256xf32>
    %22 = arith.addf %20, %21 : vector<8x256xf32>
    %23 = vector.extract_strided_slice %13 {offsets = [16, 2], sizes = [8, 256], strides = [1, 1]} : vector<72x290xf32> to vector<8x256xf32>
    %c0_17 = arith.constant 0 : index
    %c1 = arith.constant 1 : index
    %c0_18 = arith.constant 0 : index
    %c0_19 = arith.constant 0 : index
    %24 = vector.load %arg8[%c0_17, %c1, %c0_18, %c0_19] : memref<4x2x1x256xf32, #tpu.memory_space<vmem>>, vector<1x1x1x256xf32>
    %25 = vector.shape_cast %24 : vector<1x1x1x256xf32> to vector<1x256xf32>
    %26 = vector.broadcast %25 : vector<1x256xf32> to vector<8x256xf32>
    %27 = arith.mulf %23, %26 : vector<8x256xf32>
    %28 = arith.addf %22, %27 : vector<8x256xf32>
    %29 = vector.extract_strided_slice %13 {offsets = [24, 16], sizes = [8, 256], strides = [1, 1]} : vector<72x290xf32> to vector<8x256xf32>
    %c0_20 = arith.constant 0 : index
    %c0_21 = arith.constant 0 : index
    %c0_22 = arith.constant 0 : index
    %c0_23 = arith.constant 0 : index
    %30 = vector.load %arg8[%c0_20, %c0_21, %c0_22, %c0_23] : memref<4x2x1x256xf32, #tpu.memory_space<vmem>>, vector<1x1x1x256xf32>
    %31 = vector.shape_cast %30 : vector<1x1x1x256xf32> to vector<1x256xf32>
    %32 = vector.broadcast %31 : vector<1x256xf32> to vector<8x256xf32>
    %33 = arith.mulf %29, %32 : vector<8x256xf32>
    %34 = arith.addf %28, %33 : vector<8x256xf32>
    %35 = vector.extract_strided_slice %13 {offsets = [32, 17], sizes = [8, 256], strides = [1, 1]} : vector<72x290xf32> to vector<8x256xf32>
    %36 = arith.addf %34, %35 : vector<8x256xf32>
    %37 = vector.extract_strided_slice %13 {offsets = [40, 18], sizes = [8, 256], strides = [1, 1]} : vector<72x290xf32> to vector<8x256xf32>
    %c0_24 = arith.constant 0 : index
    %c1_25 = arith.constant 1 : index
    %c0_26 = arith.constant 0 : index
    %c0_27 = arith.constant 0 : index
    %38 = vector.load %arg8[%c0_24, %c1_25, %c0_26, %c0_27] : memref<4x2x1x256xf32, #tpu.memory_space<vmem>>, vector<1x1x1x256xf32>
    %39 = vector.shape_cast %38 : vector<1x1x1x256xf32> to vector<1x256xf32>
    %40 = vector.broadcast %39 : vector<1x256xf32> to vector<8x256xf32>
    %41 = arith.mulf %37, %40 : vector<8x256xf32>
    %42 = arith.addf %36, %41 : vector<8x256xf32>
    %43 = vector.extract_strided_slice %13 {offsets = [48, 32], sizes = [8, 256], strides = [1, 1]} : vector<72x290xf32> to vector<8x256xf32>
    %c0_28 = arith.constant 0 : index
    %c0_29 = arith.constant 0 : index
    %c0_30 = arith.constant 0 : index
    %c0_31 = arith.constant 0 : index
    %44 = vector.load %arg8[%c0_28, %c0_29, %c0_30, %c0_31] : memref<4x2x1x256xf32, #tpu.memory_space<vmem>>, vector<1x1x1x256xf32>
    %45 = vector.shape_cast %44 : vector<1x1x1x256xf32> to vector<1x256xf32>
    %46 = vector.broadcast %45 : vector<1x256xf32> to vector<8x256xf32>
    %47 = arith.mulf %43, %46 : vector<8x256xf32>
    %48 = arith.addf %42, %47 : vector<8x256xf32>
    %49 = vector.extract_strided_slice %13 {offsets = [56, 33], sizes = [8, 256], strides = [1, 1]} : vector<72x290xf32> to vector<8x256xf32>
    %50 = arith.addf %48, %49 : vector<8x256xf32>
    %51 = vector.extract_strided_slice %13 {offsets = [64, 34], sizes = [8, 256], strides = [1, 1]} : vector<72x290xf32> to vector<8x256xf32>
    %c0_32 = arith.constant 0 : index
    %c1_33 = arith.constant 1 : index
    %c0_34 = arith.constant 0 : index
    %c0_35 = arith.constant 0 : index
    %52 = vector.load %arg8[%c0_32, %c1_33, %c0_34, %c0_35] : memref<4x2x1x256xf32, #tpu.memory_space<vmem>>, vector<1x1x1x256xf32>
    %53 = vector.shape_cast %52 : vector<1x1x1x256xf32> to vector<1x256xf32>
    %54 = vector.broadcast %53 : vector<1x256xf32> to vector<8x256xf32>
    %55 = arith.mulf %51, %54 : vector<8x256xf32>
    %56 = arith.addf %50, %55 : vector<8x256xf32>
    %c0_36 = arith.constant 0 : index
    %c0_37 = arith.constant 0 : index
    %c0_38 = arith.constant 0 : index
    %c0_39 = arith.constant 0 : index
    %57 = vector.load %arg6[%c0_36, %c0_37, %c0_38, %c0_39] : memref<2x4x8x1xf32, #tpu.memory_space<vmem>>, vector<1x1x8x1xf32>
    %58 = vector.shape_cast %57 : vector<1x1x8x1xf32> to vector<8x1xf32>
    %59 = vector.broadcast %58 : vector<8x1xf32> to vector<8x256xf32>
    %60 = arith.mulf %56, %59 : vector<8x256xf32>
    %c0_40 = arith.constant 0 : index
    %c0_41 = arith.constant 0 : index
    %c0_42 = arith.constant 0 : index
    %c0_43 = arith.constant 0 : index
    %61 = vector.load %arg7[%c0_40, %c0_41, %c0_42, %c0_43] : memref<2x4x8x1xf32, #tpu.memory_space<vmem>>, vector<1x1x8x1xf32>
    %62 = vector.shape_cast %61 : vector<1x1x8x1xf32> to vector<8x1xf32>
    %63 = vector.broadcast %62 : vector<8x1xf32> to vector<8x256xf32>
    %64 = arith.addf %60, %63 : vector<8x256xf32>
    %65 = arith.negf %64 : vector<8x256xf32>
    %66 = math.exp %65 : vector<8x256xf32>
    %cst_44 = arith.constant 1.000000e+00 : f32
    %67 = vector.broadcast %cst_44 : f32 to vector<8x256xf32>
    %68 = arith.addf %67, %66 : vector<8x256xf32>
    %69 = arith.divf %67, %68 : vector<8x256xf32>
    %70 = arith.mulf %64, %69 : vector<8x256xf32>
    %c0_45 = arith.constant 0 : index
    %c0_46 = arith.constant 0 : index
    %c0_47 = arith.constant 0 : index
    %c0_48 = arith.constant 0 : index
    %71 = vector.load %arg5[%c0_45, %c0_46, %c0_47, %c0_48] : memref<2x3x72x8xf32, #tpu.memory_space<vmem>>, vector<1x1x72x8xf32>
    %72 = vector.shape_cast %71 : vector<1x1x72x8xf32> to vector<72x8xf32>
    %cst_49 = arith.constant dense<0.000000e+00> : vector<72x256xf32>
    %73 = tpu.matmul %72, %70, %cst_49 {dimension_numbers = #tpu.dot_dimension_numbers<[1], [0], [0], [1], [0, 0, 1, 1], [], []>} : vector<72x8xf32>, vector<8x256xf32>, vector<72x256xf32> -> vector<72x256xf32>
    %cst_50 = arith.constant 0.000000e+00 : f32
    %74 = vector.broadcast %cst_50 : f32 to vector<72x34xf32>
    %75 = tpu.concatenate %74, %73, %74 in 1 : vector<72x34xf32>, vector<72x256xf32>, vector<72x34xf32> -> vector<72x324xf32>
    %cst_51 = arith.constant 0.000000e+00 : f32
    %76 = vector.broadcast %cst_51 : f32 to vector<8x256xf32>
    %77 = vector.extract_strided_slice %75 {offsets = [0, 0], sizes = [8, 256], strides = [1, 1]} : vector<72x324xf32> to vector<8x256xf32>
    %c1_52 = arith.constant 1 : index
    %c0_53 = arith.constant 0 : index
    %c0_54 = arith.constant 0 : index
    %c0_55 = arith.constant 0 : index
    %78 = vector.load %arg8[%c1_52, %c0_53, %c0_54, %c0_55] : memref<4x2x1x256xf32, #tpu.memory_space<vmem>>, vector<1x1x1x256xf32>
    %79 = vector.shape_cast %78 : vector<1x1x1x256xf32> to vector<1x256xf32>
    %80 = vector.broadcast %79 : vector<1x256xf32> to vector<8x256xf32>
    %81 = arith.mulf %77, %80 : vector<8x256xf32>
    %82 = arith.addf %76, %81 : vector<8x256xf32>
    %83 = vector.extract_strided_slice %75 {offsets = [8, 2], sizes = [8, 256], strides = [1, 1]} : vector<72x324xf32> to vector<8x256xf32>
    %84 = arith.addf %82, %83 : vector<8x256xf32>
    %85 = vector.extract_strided_slice %75 {offsets = [16, 4], sizes = [8, 256], strides = [1, 1]} : vector<72x324xf32> to vector<8x256xf32>
    %c1_56 = arith.constant 1 : index
    %c1_57 = arith.constant 1 : index
    %c0_58 = arith.constant 0 : index
    %c0_59 = arith.constant 0 : index
    %86 = vector.load %arg8[%c1_56, %c1_57, %c0_58, %c0_59] : memref<4x2x1x256xf32, #tpu.memory_space<vmem>>, vector<1x1x1x256xf32>
    %87 = vector.shape_cast %86 : vector<1x1x1x256xf32> to vector<1x256xf32>
    %88 = vector.broadcast %87 : vector<1x256xf32> to vector<8x256xf32>
    %89 = arith.mulf %85, %88 : vector<8x256xf32>
    %90 = arith.addf %84, %89 : vector<8x256xf32>
    %91 = vector.extract_strided_slice %75 {offsets = [24, 32], sizes = [8, 256], strides = [1, 1]} : vector<72x324xf32> to vector<8x256xf32>
    %c1_60 = arith.constant 1 : index
    %c0_61 = arith.constant 0 : index
    %c0_62 = arith.constant 0 : index
    %c0_63 = arith.constant 0 : index
    %92 = vector.load %arg8[%c1_60, %c0_61, %c0_62, %c0_63] : memref<4x2x1x256xf32, #tpu.memory_space<vmem>>, vector<1x1x1x256xf32>
    %93 = vector.shape_cast %92 : vector<1x1x1x256xf32> to vector<1x256xf32>
    %94 = vector.broadcast %93 : vector<1x256xf32> to vector<8x256xf32>
    %95 = arith.mulf %91, %94 : vector<8x256xf32>
    %96 = arith.addf %90, %95 : vector<8x256xf32>
    %97 = vector.extract_strided_slice %75 {offsets = [32, 34], sizes = [8, 256], strides = [1, 1]} : vector<72x324xf32> to vector<8x256xf32>
    %98 = arith.addf %96, %97 : vector<8x256xf32>
    %99 = vector.extract_strided_slice %75 {offsets = [40, 36], sizes = [8, 256], strides = [1, 1]} : vector<72x324xf32> to vector<8x256xf32>
    %c1_64 = arith.constant 1 : index
    %c1_65 = arith.constant 1 : index
    %c0_66 = arith.constant 0 : index
    %c0_67 = arith.constant 0 : index
    %100 = vector.load %arg8[%c1_64, %c1_65, %c0_66, %c0_67] : memref<4x2x1x256xf32, #tpu.memory_space<vmem>>, vector<1x1x1x256xf32>
    %101 = vector.shape_cast %100 : vector<1x1x1x256xf32> to vector<1x256xf32>
    %102 = vector.broadcast %101 : vector<1x256xf32> to vector<8x256xf32>
    %103 = arith.mulf %99, %102 : vector<8x256xf32>
    %104 = arith.addf %98, %103 : vector<8x256xf32>
    %105 = vector.extract_strided_slice %75 {offsets = [48, 64], sizes = [8, 256], strides = [1, 1]} : vector<72x324xf32> to vector<8x256xf32>
    %c1_68 = arith.constant 1 : index
    %c0_69 = arith.constant 0 : index
    %c0_70 = arith.constant 0 : index
    %c0_71 = arith.constant 0 : index
    %106 = vector.load %arg8[%c1_68, %c0_69, %c0_70, %c0_71] : memref<4x2x1x256xf32, #tpu.memory_space<vmem>>, vector<1x1x1x256xf32>
    %107 = vector.shape_cast %106 : vector<1x1x1x256xf32> to vector<1x256xf32>
    %108 = vector.broadcast %107 : vector<1x256xf32> to vector<8x256xf32>
    %109 = arith.mulf %105, %108 : vector<8x256xf32>
    %110 = arith.addf %104, %109 : vector<8x256xf32>
    %111 = vector.extract_strided_slice %75 {offsets = [56, 66], sizes = [8, 256], strides = [1, 1]} : vector<72x324xf32> to vector<8x256xf32>
    %112 = arith.addf %110, %111 : vector<8x256xf32>
    %113 = vector.extract_strided_slice %75 {offsets = [64, 68], sizes = [8, 256], strides = [1, 1]} : vector<72x324xf32> to vector<8x256xf32>
    %c1_72 = arith.constant 1 : index
    %c1_73 = arith.constant 1 : index
    %c0_74 = arith.constant 0 : index
    %c0_75 = arith.constant 0 : index
    %114 = vector.load %arg8[%c1_72, %c1_73, %c0_74, %c0_75] : memref<4x2x1x256xf32, #tpu.memory_space<vmem>>, vector<1x1x1x256xf32>
    %115 = vector.shape_cast %114 : vector<1x1x1x256xf32> to vector<1x256xf32>
    %116 = vector.broadcast %115 : vector<1x256xf32> to vector<8x256xf32>
    %117 = arith.mulf %113, %116 : vector<8x256xf32>
    %118 = arith.addf %112, %117 : vector<8x256xf32>
    %c0_76 = arith.constant 0 : index
    %c1_77 = arith.constant 1 : index
    %c0_78 = arith.constant 0 : index
    %c0_79 = arith.constant 0 : index
    %119 = vector.load %arg6[%c0_76, %c1_77, %c0_78, %c0_79] : memref<2x4x8x1xf32, #tpu.memory_space<vmem>>, vector<1x1x8x1xf32>
    %120 = vector.shape_cast %119 : vector<1x1x8x1xf32> to vector<8x1xf32>
    %121 = vector.broadcast %120 : vector<8x1xf32> to vector<8x256xf32>
    %122 = arith.mulf %118, %121 : vector<8x256xf32>
    %c0_80 = arith.constant 0 : index
    %c1_81 = arith.constant 1 : index
    %c0_82 = arith.constant 0 : index
    %c0_83 = arith.constant 0 : index
    %123 = vector.load %arg7[%c0_80, %c1_81, %c0_82, %c0_83] : memref<2x4x8x1xf32, #tpu.memory_space<vmem>>, vector<1x1x8x1xf32>
    %124 = vector.shape_cast %123 : vector<1x1x8x1xf32> to vector<8x1xf32>
    %125 = vector.broadcast %124 : vector<8x1xf32> to vector<8x256xf32>
    %126 = arith.addf %122, %125 : vector<8x256xf32>
    %127 = arith.negf %126 : vector<8x256xf32>
    %128 = math.exp %127 : vector<8x256xf32>
    %cst_84 = arith.constant 1.000000e+00 : f32
    %129 = vector.broadcast %cst_84 : f32 to vector<8x256xf32>
    %130 = arith.addf %129, %128 : vector<8x256xf32>
    %131 = arith.divf %129, %130 : vector<8x256xf32>
    %132 = arith.mulf %126, %131 : vector<8x256xf32>
    %c0_85 = arith.constant 0 : index
    %c1_86 = arith.constant 1 : index
    %c0_87 = arith.constant 0 : index
    %c0_88 = arith.constant 0 : index
    %133 = vector.load %arg5[%c0_85, %c1_86, %c0_87, %c0_88] : memref<2x3x72x8xf32, #tpu.memory_space<vmem>>, vector<1x1x72x8xf32>
    %134 = vector.shape_cast %133 : vector<1x1x72x8xf32> to vector<72x8xf32>
    %cst_89 = arith.constant dense<0.000000e+00> : vector<72x256xf32>
    %135 = tpu.matmul %134, %132, %cst_89 {dimension_numbers = #tpu.dot_dimension_numbers<[1], [0], [0], [1], [0, 0, 1, 1], [], []>} : vector<72x8xf32>, vector<8x256xf32>, vector<72x256xf32> -> vector<72x256xf32>
    %cst_90 = arith.constant 0.000000e+00 : f32
    %136 = vector.broadcast %cst_90 : f32 to vector<72x68xf32>
    %137 = tpu.concatenate %136, %135, %136 in 1 : vector<72x68xf32>, vector<72x256xf32>, vector<72x68xf32> -> vector<72x392xf32>
    %cst_91 = arith.constant 0.000000e+00 : f32
    %138 = vector.broadcast %cst_91 : f32 to vector<8x256xf32>
    %139 = vector.extract_strided_slice %137 {offsets = [0, 0], sizes = [8, 256], strides = [1, 1]} : vector<72x392xf32> to vector<8x256xf32>
    %c2 = arith.constant 2 : index
    %c0_92 = arith.constant 0 : index
    %c0_93 = arith.constant 0 : index
    %c0_94 = arith.constant 0 : index
    %140 = vector.load %arg8[%c2, %c0_92, %c0_93, %c0_94] : memref<4x2x1x256xf32, #tpu.memory_space<vmem>>, vector<1x1x1x256xf32>
    %141 = vector.shape_cast %140 : vector<1x1x1x256xf32> to vector<1x256xf32>
    %142 = vector.broadcast %141 : vector<1x256xf32> to vector<8x256xf32>
    %143 = arith.mulf %139, %142 : vector<8x256xf32>
    %144 = arith.addf %138, %143 : vector<8x256xf32>
    %145 = vector.extract_strided_slice %137 {offsets = [8, 4], sizes = [8, 256], strides = [1, 1]} : vector<72x392xf32> to vector<8x256xf32>
    %146 = arith.addf %144, %145 : vector<8x256xf32>
    %147 = vector.extract_strided_slice %137 {offsets = [16, 8], sizes = [8, 256], strides = [1, 1]} : vector<72x392xf32> to vector<8x256xf32>
    %c2_95 = arith.constant 2 : index
    %c1_96 = arith.constant 1 : index
    %c0_97 = arith.constant 0 : index
    %c0_98 = arith.constant 0 : index
    %148 = vector.load %arg8[%c2_95, %c1_96, %c0_97, %c0_98] : memref<4x2x1x256xf32, #tpu.memory_space<vmem>>, vector<1x1x1x256xf32>
    %149 = vector.shape_cast %148 : vector<1x1x1x256xf32> to vector<1x256xf32>
    %150 = vector.broadcast %149 : vector<1x256xf32> to vector<8x256xf32>
    %151 = arith.mulf %147, %150 : vector<8x256xf32>
    %152 = arith.addf %146, %151 : vector<8x256xf32>
    %153 = vector.extract_strided_slice %137 {offsets = [24, 64], sizes = [8, 256], strides = [1, 1]} : vector<72x392xf32> to vector<8x256xf32>
    %c2_99 = arith.constant 2 : index
    %c0_100 = arith.constant 0 : index
    %c0_101 = arith.constant 0 : index
    %c0_102 = arith.constant 0 : index
    %154 = vector.load %arg8[%c2_99, %c0_100, %c0_101, %c0_102] : memref<4x2x1x256xf32, #tpu.memory_space<vmem>>, vector<1x1x1x256xf32>
    %155 = vector.shape_cast %154 : vector<1x1x1x256xf32> to vector<1x256xf32>
    %156 = vector.broadcast %155 : vector<1x256xf32> to vector<8x256xf32>
    %157 = arith.mulf %153, %156 : vector<8x256xf32>
    %158 = arith.addf %152, %157 : vector<8x256xf32>
    %159 = vector.extract_strided_slice %137 {offsets = [32, 68], sizes = [8, 256], strides = [1, 1]} : vector<72x392xf32> to vector<8x256xf32>
    %160 = arith.addf %158, %159 : vector<8x256xf32>
    %161 = vector.extract_strided_slice %137 {offsets = [40, 72], sizes = [8, 256], strides = [1, 1]} : vector<72x392xf32> to vector<8x256xf32>
    %c2_103 = arith.constant 2 : index
    %c1_104 = arith.constant 1 : index
    %c0_105 = arith.constant 0 : index
    %c0_106 = arith.constant 0 : index
    %162 = vector.load %arg8[%c2_103, %c1_104, %c0_105, %c0_106] : memref<4x2x1x256xf32, #tpu.memory_space<vmem>>, vector<1x1x1x256xf32>
    %163 = vector.shape_cast %162 : vector<1x1x1x256xf32> to vector<1x256xf32>
    %164 = vector.broadcast %163 : vector<1x256xf32> to vector<8x256xf32>
    %165 = arith.mulf %161, %164 : vector<8x256xf32>
    %166 = arith.addf %160, %165 : vector<8x256xf32>
    %167 = vector.extract_strided_slice %137 {offsets = [48, 128], sizes = [8, 256], strides = [1, 1]} : vector<72x392xf32> to vector<8x256xf32>
    %c2_107 = arith.constant 2 : index
    %c0_108 = arith.constant 0 : index
    %c0_109 = arith.constant 0 : index
    %c0_110 = arith.constant 0 : index
    %168 = vector.load %arg8[%c2_107, %c0_108, %c0_109, %c0_110] : memref<4x2x1x256xf32, #tpu.memory_space<vmem>>, vector<1x1x1x256xf32>
    %169 = vector.shape_cast %168 : vector<1x1x1x256xf32> to vector<1x256xf32>
    %170 = vector.broadcast %169 : vector<1x256xf32> to vector<8x256xf32>
    %171 = arith.mulf %167, %170 : vector<8x256xf32>
    %172 = arith.addf %166, %171 : vector<8x256xf32>
    %173 = vector.extract_strided_slice %137 {offsets = [56, 132], sizes = [8, 256], strides = [1, 1]} : vector<72x392xf32> to vector<8x256xf32>
    %174 = arith.addf %172, %173 : vector<8x256xf32>
    %175 = vector.extract_strided_slice %137 {offsets = [64, 136], sizes = [8, 256], strides = [1, 1]} : vector<72x392xf32> to vector<8x256xf32>
    %c2_111 = arith.constant 2 : index
    %c1_112 = arith.constant 1 : index
    %c0_113 = arith.constant 0 : index
    %c0_114 = arith.constant 0 : index
    %176 = vector.load %arg8[%c2_111, %c1_112, %c0_113, %c0_114] : memref<4x2x1x256xf32, #tpu.memory_space<vmem>>, vector<1x1x1x256xf32>
    %177 = vector.shape_cast %176 : vector<1x1x1x256xf32> to vector<1x256xf32>
    %178 = vector.broadcast %177 : vector<1x256xf32> to vector<8x256xf32>
    %179 = arith.mulf %175, %178 : vector<8x256xf32>
    %180 = arith.addf %174, %179 : vector<8x256xf32>
    %c0_115 = arith.constant 0 : index
    %c2_116 = arith.constant 2 : index
    %c0_117 = arith.constant 0 : index
    %c0_118 = arith.constant 0 : index
    %181 = vector.load %arg6[%c0_115, %c2_116, %c0_117, %c0_118] : memref<2x4x8x1xf32, #tpu.memory_space<vmem>>, vector<1x1x8x1xf32>
    %182 = vector.shape_cast %181 : vector<1x1x8x1xf32> to vector<8x1xf32>
    %183 = vector.broadcast %182 : vector<8x1xf32> to vector<8x256xf32>
    %184 = arith.mulf %180, %183 : vector<8x256xf32>
    %c0_119 = arith.constant 0 : index
    %c2_120 = arith.constant 2 : index
    %c0_121 = arith.constant 0 : index
    %c0_122 = arith.constant 0 : index
    %185 = vector.load %arg7[%c0_119, %c2_120, %c0_121, %c0_122] : memref<2x4x8x1xf32, #tpu.memory_space<vmem>>, vector<1x1x8x1xf32>
    %186 = vector.shape_cast %185 : vector<1x1x8x1xf32> to vector<8x1xf32>
    %187 = vector.broadcast %186 : vector<8x1xf32> to vector<8x256xf32>
    %188 = arith.addf %184, %187 : vector<8x256xf32>
    %189 = arith.negf %188 : vector<8x256xf32>
    %190 = math.exp %189 : vector<8x256xf32>
    %cst_123 = arith.constant 1.000000e+00 : f32
    %191 = vector.broadcast %cst_123 : f32 to vector<8x256xf32>
    %192 = arith.addf %191, %190 : vector<8x256xf32>
    %193 = arith.divf %191, %192 : vector<8x256xf32>
    %194 = arith.mulf %188, %193 : vector<8x256xf32>
    %c0_124 = arith.constant 0 : index
    %c2_125 = arith.constant 2 : index
    %c0_126 = arith.constant 0 : index
    %c0_127 = arith.constant 0 : index
    %195 = vector.load %arg5[%c0_124, %c2_125, %c0_126, %c0_127] : memref<2x3x72x8xf32, #tpu.memory_space<vmem>>, vector<1x1x72x8xf32>
    %196 = vector.shape_cast %195 : vector<1x1x72x8xf32> to vector<72x8xf32>
    %cst_128 = arith.constant dense<0.000000e+00> : vector<72x256xf32>
    %197 = tpu.matmul %196, %194, %cst_128 {dimension_numbers = #tpu.dot_dimension_numbers<[1], [0], [0], [1], [0, 0, 1, 1], [], []>} : vector<72x8xf32>, vector<8x256xf32>, vector<72x256xf32> -> vector<72x256xf32>
    %cst_129 = arith.constant 0.000000e+00 : f32
    %198 = vector.broadcast %cst_129 : f32 to vector<72x136xf32>
    %199 = tpu.concatenate %198, %197, %198 in 1 : vector<72x136xf32>, vector<72x256xf32>, vector<72x136xf32> -> vector<72x528xf32>
    %cst_130 = arith.constant 0.000000e+00 : f32
    %200 = vector.broadcast %cst_130 : f32 to vector<8x256xf32>
    %201 = vector.extract_strided_slice %199 {offsets = [0, 0], sizes = [8, 256], strides = [1, 1]} : vector<72x528xf32> to vector<8x256xf32>
    %c3 = arith.constant 3 : index
    %c0_131 = arith.constant 0 : index
    %c0_132 = arith.constant 0 : index
    %c0_133 = arith.constant 0 : index
    %202 = vector.load %arg8[%c3, %c0_131, %c0_132, %c0_133] : memref<4x2x1x256xf32, #tpu.memory_space<vmem>>, vector<1x1x1x256xf32>
    %203 = vector.shape_cast %202 : vector<1x1x1x256xf32> to vector<1x256xf32>
    %204 = vector.broadcast %203 : vector<1x256xf32> to vector<8x256xf32>
    %205 = arith.mulf %201, %204 : vector<8x256xf32>
    %206 = arith.addf %200, %205 : vector<8x256xf32>
    %207 = vector.extract_strided_slice %199 {offsets = [8, 8], sizes = [8, 256], strides = [1, 1]} : vector<72x528xf32> to vector<8x256xf32>
    %208 = arith.addf %206, %207 : vector<8x256xf32>
    %209 = vector.extract_strided_slice %199 {offsets = [16, 16], sizes = [8, 256], strides = [1, 1]} : vector<72x528xf32> to vector<8x256xf32>
    %c3_134 = arith.constant 3 : index
    %c1_135 = arith.constant 1 : index
    %c0_136 = arith.constant 0 : index
    %c0_137 = arith.constant 0 : index
    %210 = vector.load %arg8[%c3_134, %c1_135, %c0_136, %c0_137] : memref<4x2x1x256xf32, #tpu.memory_space<vmem>>, vector<1x1x1x256xf32>
    %211 = vector.shape_cast %210 : vector<1x1x1x256xf32> to vector<1x256xf32>
    %212 = vector.broadcast %211 : vector<1x256xf32> to vector<8x256xf32>
    %213 = arith.mulf %209, %212 : vector<8x256xf32>
    %214 = arith.addf %208, %213 : vector<8x256xf32>
    %215 = vector.extract_strided_slice %199 {offsets = [24, 128], sizes = [8, 256], strides = [1, 1]} : vector<72x528xf32> to vector<8x256xf32>
    %c3_138 = arith.constant 3 : index
    %c0_139 = arith.constant 0 : index
    %c0_140 = arith.constant 0 : index
    %c0_141 = arith.constant 0 : index
    %216 = vector.load %arg8[%c3_138, %c0_139, %c0_140, %c0_141] : memref<4x2x1x256xf32, #tpu.memory_space<vmem>>, vector<1x1x1x256xf32>
    %217 = vector.shape_cast %216 : vector<1x1x1x256xf32> to vector<1x256xf32>
    %218 = vector.broadcast %217 : vector<1x256xf32> to vector<8x256xf32>
    %219 = arith.mulf %215, %218 : vector<8x256xf32>
    %220 = arith.addf %214, %219 : vector<8x256xf32>
    %221 = vector.extract_strided_slice %199 {offsets = [32, 136], sizes = [8, 256], strides = [1, 1]} : vector<72x528xf32> to vector<8x256xf32>
    %222 = arith.addf %220, %221 : vector<8x256xf32>
    %223 = vector.extract_strided_slice %199 {offsets = [40, 144], sizes = [8, 256], strides = [1, 1]} : vector<72x528xf32> to vector<8x256xf32>
    %c3_142 = arith.constant 3 : index
    %c1_143 = arith.constant 1 : index
    %c0_144 = arith.constant 0 : index
    %c0_145 = arith.constant 0 : index
    %224 = vector.load %arg8[%c3_142, %c1_143, %c0_144, %c0_145] : memref<4x2x1x256xf32, #tpu.memory_space<vmem>>, vector<1x1x1x256xf32>
    %225 = vector.shape_cast %224 : vector<1x1x1x256xf32> to vector<1x256xf32>
    %226 = vector.broadcast %225 : vector<1x256xf32> to vector<8x256xf32>
    %227 = arith.mulf %223, %226 : vector<8x256xf32>
    %228 = arith.addf %222, %227 : vector<8x256xf32>
    %229 = vector.extract_strided_slice %199 {offsets = [48, 256], sizes = [8, 256], strides = [1, 1]} : vector<72x528xf32> to vector<8x256xf32>
    %c3_146 = arith.constant 3 : index
    %c0_147 = arith.constant 0 : index
    %c0_148 = arith.constant 0 : index
    %c0_149 = arith.constant 0 : index
    %230 = vector.load %arg8[%c3_146, %c0_147, %c0_148, %c0_149] : memref<4x2x1x256xf32, #tpu.memory_space<vmem>>, vector<1x1x1x256xf32>
    %231 = vector.shape_cast %230 : vector<1x1x1x256xf32> to vector<1x256xf32>
    %232 = vector.broadcast %231 : vector<1x256xf32> to vector<8x256xf32>
    %233 = arith.mulf %229, %232 : vector<8x256xf32>
    %234 = arith.addf %228, %233 : vector<8x256xf32>
    %235 = vector.extract_strided_slice %199 {offsets = [56, 264], sizes = [8, 256], strides = [1, 1]} : vector<72x528xf32> to vector<8x256xf32>
    %236 = arith.addf %234, %235 : vector<8x256xf32>
    %237 = vector.extract_strided_slice %199 {offsets = [64, 272], sizes = [8, 256], strides = [1, 1]} : vector<72x528xf32> to vector<8x256xf32>
    %c3_150 = arith.constant 3 : index
    %c1_151 = arith.constant 1 : index
    %c0_152 = arith.constant 0 : index
    %c0_153 = arith.constant 0 : index
    %238 = vector.load %arg8[%c3_150, %c1_151, %c0_152, %c0_153] : memref<4x2x1x256xf32, #tpu.memory_space<vmem>>, vector<1x1x1x256xf32>
    %239 = vector.shape_cast %238 : vector<1x1x1x256xf32> to vector<1x256xf32>
    %240 = vector.broadcast %239 : vector<1x256xf32> to vector<8x256xf32>
    %241 = arith.mulf %237, %240 : vector<8x256xf32>
    %242 = arith.addf %236, %241 : vector<8x256xf32>
    %c0_154 = arith.constant 0 : index
    %c3_155 = arith.constant 3 : index
    %c0_156 = arith.constant 0 : index
    %c0_157 = arith.constant 0 : index
    %243 = vector.load %arg6[%c0_154, %c3_155, %c0_156, %c0_157] : memref<2x4x8x1xf32, #tpu.memory_space<vmem>>, vector<1x1x8x1xf32>
    %244 = vector.shape_cast %243 : vector<1x1x8x1xf32> to vector<8x1xf32>
    %245 = vector.broadcast %244 : vector<8x1xf32> to vector<8x256xf32>
    %246 = arith.mulf %242, %245 : vector<8x256xf32>
    %c0_158 = arith.constant 0 : index
    %c3_159 = arith.constant 3 : index
    %c0_160 = arith.constant 0 : index
    %c0_161 = arith.constant 0 : index
    %247 = vector.load %arg7[%c0_158, %c3_159, %c0_160, %c0_161] : memref<2x4x8x1xf32, #tpu.memory_space<vmem>>, vector<1x1x8x1xf32>
    %248 = vector.shape_cast %247 : vector<1x1x8x1xf32> to vector<8x1xf32>
    %249 = vector.broadcast %248 : vector<8x1xf32> to vector<8x256xf32>
    %250 = arith.addf %246, %249 : vector<8x256xf32>
    %251 = arith.negf %250 : vector<8x256xf32>
    %252 = math.exp %251 : vector<8x256xf32>
    %cst_162 = arith.constant 1.000000e+00 : f32
    %253 = vector.broadcast %cst_162 : f32 to vector<8x256xf32>
    %254 = arith.addf %253, %252 : vector<8x256xf32>
    %255 = arith.divf %253, %254 : vector<8x256xf32>
    %256 = arith.mulf %250, %255 : vector<8x256xf32>
    %257 = tpu.concatenate %70, %132, %194, %256 in 0 : vector<8x256xf32>, vector<8x256xf32>, vector<8x256xf32>, vector<8x256xf32> -> vector<32x256xf32>
    %258 = arith.addf %8, %257 : vector<32x256xf32>
    %c1_163 = arith.constant 1 : index
    %c0_164 = arith.constant 0 : index
    %c0_165 = arith.constant 0 : index
    %259 = vector.load %arg4[%c1_163, %c0_164, %c0_165] : memref<2x72x32xf32, #tpu.memory_space<vmem>>, vector<1x72x32xf32>
    %260 = vector.shape_cast %259 : vector<1x72x32xf32> to vector<72x32xf32>
    %cst_166 = arith.constant dense<0.000000e+00> : vector<72x256xf32>
    %261 = tpu.matmul %260, %258, %cst_166 {dimension_numbers = #tpu.dot_dimension_numbers<[1], [0], [0], [1], [0, 0, 1, 1], [], []>} : vector<72x32xf32>, vector<32x256xf32>, vector<72x256xf32> -> vector<72x256xf32>
    %cst_167 = arith.constant 0.000000e+00 : f32
    %262 = vector.broadcast %cst_167 : f32 to vector<72x17xf32>
    %263 = tpu.concatenate %262, %261, %262 in 1 : vector<72x17xf32>, vector<72x256xf32>, vector<72x17xf32> -> vector<72x290xf32>
    %cst_168 = arith.constant 0.000000e+00 : f32
    %264 = vector.broadcast %cst_168 : f32 to vector<8x256xf32>
    %265 = vector.extract_strided_slice %263 {offsets = [0, 0], sizes = [8, 256], strides = [1, 1]} : vector<72x290xf32> to vector<8x256xf32>
    %c0_169 = arith.constant 0 : index
    %c0_170 = arith.constant 0 : index
    %c0_171 = arith.constant 0 : index
    %c0_172 = arith.constant 0 : index
    %266 = vector.load %arg8[%c0_169, %c0_170, %c0_171, %c0_172] : memref<4x2x1x256xf32, #tpu.memory_space<vmem>>, vector<1x1x1x256xf32>
    %267 = vector.shape_cast %266 : vector<1x1x1x256xf32> to vector<1x256xf32>
    %268 = vector.broadcast %267 : vector<1x256xf32> to vector<8x256xf32>
    %269 = arith.mulf %265, %268 : vector<8x256xf32>
    %270 = arith.addf %264, %269 : vector<8x256xf32>
    %271 = vector.extract_strided_slice %263 {offsets = [8, 1], sizes = [8, 256], strides = [1, 1]} : vector<72x290xf32> to vector<8x256xf32>
    %272 = arith.addf %270, %271 : vector<8x256xf32>
    %273 = vector.extract_strided_slice %263 {offsets = [16, 2], sizes = [8, 256], strides = [1, 1]} : vector<72x290xf32> to vector<8x256xf32>
    %c0_173 = arith.constant 0 : index
    %c1_174 = arith.constant 1 : index
    %c0_175 = arith.constant 0 : index
    %c0_176 = arith.constant 0 : index
    %274 = vector.load %arg8[%c0_173, %c1_174, %c0_175, %c0_176] : memref<4x2x1x256xf32, #tpu.memory_space<vmem>>, vector<1x1x1x256xf32>
    %275 = vector.shape_cast %274 : vector<1x1x1x256xf32> to vector<1x256xf32>
    %276 = vector.broadcast %275 : vector<1x256xf32> to vector<8x256xf32>
    %277 = arith.mulf %273, %276 : vector<8x256xf32>
    %278 = arith.addf %272, %277 : vector<8x256xf32>
    %279 = vector.extract_strided_slice %263 {offsets = [24, 16], sizes = [8, 256], strides = [1, 1]} : vector<72x290xf32> to vector<8x256xf32>
    %c0_177 = arith.constant 0 : index
    %c0_178 = arith.constant 0 : index
    %c0_179 = arith.constant 0 : index
    %c0_180 = arith.constant 0 : index
    %280 = vector.load %arg8[%c0_177, %c0_178, %c0_179, %c0_180] : memref<4x2x1x256xf32, #tpu.memory_space<vmem>>, vector<1x1x1x256xf32>
    %281 = vector.shape_cast %280 : vector<1x1x1x256xf32> to vector<1x256xf32>
    %282 = vector.broadcast %281 : vector<1x256xf32> to vector<8x256xf32>
    %283 = arith.mulf %279, %282 : vector<8x256xf32>
    %284 = arith.addf %278, %283 : vector<8x256xf32>
    %285 = vector.extract_strided_slice %263 {offsets = [32, 17], sizes = [8, 256], strides = [1, 1]} : vector<72x290xf32> to vector<8x256xf32>
    %286 = arith.addf %284, %285 : vector<8x256xf32>
    %287 = vector.extract_strided_slice %263 {offsets = [40, 18], sizes = [8, 256], strides = [1, 1]} : vector<72x290xf32> to vector<8x256xf32>
    %c0_181 = arith.constant 0 : index
    %c1_182 = arith.constant 1 : index
    %c0_183 = arith.constant 0 : index
    %c0_184 = arith.constant 0 : index
    %288 = vector.load %arg8[%c0_181, %c1_182, %c0_183, %c0_184] : memref<4x2x1x256xf32, #tpu.memory_space<vmem>>, vector<1x1x1x256xf32>
    %289 = vector.shape_cast %288 : vector<1x1x1x256xf32> to vector<1x256xf32>
    %290 = vector.broadcast %289 : vector<1x256xf32> to vector<8x256xf32>
    %291 = arith.mulf %287, %290 : vector<8x256xf32>
    %292 = arith.addf %286, %291 : vector<8x256xf32>
    %293 = vector.extract_strided_slice %263 {offsets = [48, 32], sizes = [8, 256], strides = [1, 1]} : vector<72x290xf32> to vector<8x256xf32>
    %c0_185 = arith.constant 0 : index
    %c0_186 = arith.constant 0 : index
    %c0_187 = arith.constant 0 : index
    %c0_188 = arith.constant 0 : index
    %294 = vector.load %arg8[%c0_185, %c0_186, %c0_187, %c0_188] : memref<4x2x1x256xf32, #tpu.memory_space<vmem>>, vector<1x1x1x256xf32>
    %295 = vector.shape_cast %294 : vector<1x1x1x256xf32> to vector<1x256xf32>
    %296 = vector.broadcast %295 : vector<1x256xf32> to vector<8x256xf32>
    %297 = arith.mulf %293, %296 : vector<8x256xf32>
    %298 = arith.addf %292, %297 : vector<8x256xf32>
    %299 = vector.extract_strided_slice %263 {offsets = [56, 33], sizes = [8, 256], strides = [1, 1]} : vector<72x290xf32> to vector<8x256xf32>
    %300 = arith.addf %298, %299 : vector<8x256xf32>
    %301 = vector.extract_strided_slice %263 {offsets = [64, 34], sizes = [8, 256], strides = [1, 1]} : vector<72x290xf32> to vector<8x256xf32>
    %c0_189 = arith.constant 0 : index
    %c1_190 = arith.constant 1 : index
    %c0_191 = arith.constant 0 : index
    %c0_192 = arith.constant 0 : index
    %302 = vector.load %arg8[%c0_189, %c1_190, %c0_191, %c0_192] : memref<4x2x1x256xf32, #tpu.memory_space<vmem>>, vector<1x1x1x256xf32>
    %303 = vector.shape_cast %302 : vector<1x1x1x256xf32> to vector<1x256xf32>
    %304 = vector.broadcast %303 : vector<1x256xf32> to vector<8x256xf32>
    %305 = arith.mulf %301, %304 : vector<8x256xf32>
    %306 = arith.addf %300, %305 : vector<8x256xf32>
    %c1_193 = arith.constant 1 : index
    %c0_194 = arith.constant 0 : index
    %c0_195 = arith.constant 0 : index
    %c0_196 = arith.constant 0 : index
    %307 = vector.load %arg6[%c1_193, %c0_194, %c0_195, %c0_196] : memref<2x4x8x1xf32, #tpu.memory_space<vmem>>, vector<1x1x8x1xf32>
    %308 = vector.shape_cast %307 : vector<1x1x8x1xf32> to vector<8x1xf32>
    %309 = vector.broadcast %308 : vector<8x1xf32> to vector<8x256xf32>
    %310 = arith.mulf %306, %309 : vector<8x256xf32>
    %c1_197 = arith.constant 1 : index
    %c0_198 = arith.constant 0 : index
    %c0_199 = arith.constant 0 : index
    %c0_200 = arith.constant 0 : index
    %311 = vector.load %arg7[%c1_197, %c0_198, %c0_199, %c0_200] : memref<2x4x8x1xf32, #tpu.memory_space<vmem>>, vector<1x1x8x1xf32>
    %312 = vector.shape_cast %311 : vector<1x1x8x1xf32> to vector<8x1xf32>
    %313 = vector.broadcast %312 : vector<8x1xf32> to vector<8x256xf32>
    %314 = arith.addf %310, %313 : vector<8x256xf32>
    %315 = arith.negf %314 : vector<8x256xf32>
    %316 = math.exp %315 : vector<8x256xf32>
    %cst_201 = arith.constant 1.000000e+00 : f32
    %317 = vector.broadcast %cst_201 : f32 to vector<8x256xf32>
    %318 = arith.addf %317, %316 : vector<8x256xf32>
    %319 = arith.divf %317, %318 : vector<8x256xf32>
    %320 = arith.mulf %314, %319 : vector<8x256xf32>
    %c1_202 = arith.constant 1 : index
    %c0_203 = arith.constant 0 : index
    %c0_204 = arith.constant 0 : index
    %c0_205 = arith.constant 0 : index
    %321 = vector.load %arg5[%c1_202, %c0_203, %c0_204, %c0_205] : memref<2x3x72x8xf32, #tpu.memory_space<vmem>>, vector<1x1x72x8xf32>
    %322 = vector.shape_cast %321 : vector<1x1x72x8xf32> to vector<72x8xf32>
    %cst_206 = arith.constant dense<0.000000e+00> : vector<72x256xf32>
    %323 = tpu.matmul %322, %320, %cst_206 {dimension_numbers = #tpu.dot_dimension_numbers<[1], [0], [0], [1], [0, 0, 1, 1], [], []>} : vector<72x8xf32>, vector<8x256xf32>, vector<72x256xf32> -> vector<72x256xf32>
    %cst_207 = arith.constant 0.000000e+00 : f32
    %324 = vector.broadcast %cst_207 : f32 to vector<72x34xf32>
    %325 = tpu.concatenate %324, %323, %324 in 1 : vector<72x34xf32>, vector<72x256xf32>, vector<72x34xf32> -> vector<72x324xf32>
    %cst_208 = arith.constant 0.000000e+00 : f32
    %326 = vector.broadcast %cst_208 : f32 to vector<8x256xf32>
    %327 = vector.extract_strided_slice %325 {offsets = [0, 0], sizes = [8, 256], strides = [1, 1]} : vector<72x324xf32> to vector<8x256xf32>
    %c1_209 = arith.constant 1 : index
    %c0_210 = arith.constant 0 : index
    %c0_211 = arith.constant 0 : index
    %c0_212 = arith.constant 0 : index
    %328 = vector.load %arg8[%c1_209, %c0_210, %c0_211, %c0_212] : memref<4x2x1x256xf32, #tpu.memory_space<vmem>>, vector<1x1x1x256xf32>
    %329 = vector.shape_cast %328 : vector<1x1x1x256xf32> to vector<1x256xf32>
    %330 = vector.broadcast %329 : vector<1x256xf32> to vector<8x256xf32>
    %331 = arith.mulf %327, %330 : vector<8x256xf32>
    %332 = arith.addf %326, %331 : vector<8x256xf32>
    %333 = vector.extract_strided_slice %325 {offsets = [8, 2], sizes = [8, 256], strides = [1, 1]} : vector<72x324xf32> to vector<8x256xf32>
    %334 = arith.addf %332, %333 : vector<8x256xf32>
    %335 = vector.extract_strided_slice %325 {offsets = [16, 4], sizes = [8, 256], strides = [1, 1]} : vector<72x324xf32> to vector<8x256xf32>
    %c1_213 = arith.constant 1 : index
    %c1_214 = arith.constant 1 : index
    %c0_215 = arith.constant 0 : index
    %c0_216 = arith.constant 0 : index
    %336 = vector.load %arg8[%c1_213, %c1_214, %c0_215, %c0_216] : memref<4x2x1x256xf32, #tpu.memory_space<vmem>>, vector<1x1x1x256xf32>
    %337 = vector.shape_cast %336 : vector<1x1x1x256xf32> to vector<1x256xf32>
    %338 = vector.broadcast %337 : vector<1x256xf32> to vector<8x256xf32>
    %339 = arith.mulf %335, %338 : vector<8x256xf32>
    %340 = arith.addf %334, %339 : vector<8x256xf32>
    %341 = vector.extract_strided_slice %325 {offsets = [24, 32], sizes = [8, 256], strides = [1, 1]} : vector<72x324xf32> to vector<8x256xf32>
    %c1_217 = arith.constant 1 : index
    %c0_218 = arith.constant 0 : index
    %c0_219 = arith.constant 0 : index
    %c0_220 = arith.constant 0 : index
    %342 = vector.load %arg8[%c1_217, %c0_218, %c0_219, %c0_220] : memref<4x2x1x256xf32, #tpu.memory_space<vmem>>, vector<1x1x1x256xf32>
    %343 = vector.shape_cast %342 : vector<1x1x1x256xf32> to vector<1x256xf32>
    %344 = vector.broadcast %343 : vector<1x256xf32> to vector<8x256xf32>
    %345 = arith.mulf %341, %344 : vector<8x256xf32>
    %346 = arith.addf %340, %345 : vector<8x256xf32>
    %347 = vector.extract_strided_slice %325 {offsets = [32, 34], sizes = [8, 256], strides = [1, 1]} : vector<72x324xf32> to vector<8x256xf32>
    %348 = arith.addf %346, %347 : vector<8x256xf32>
    %349 = vector.extract_strided_slice %325 {offsets = [40, 36], sizes = [8, 256], strides = [1, 1]} : vector<72x324xf32> to vector<8x256xf32>
    %c1_221 = arith.constant 1 : index
    %c1_222 = arith.constant 1 : index
    %c0_223 = arith.constant 0 : index
    %c0_224 = arith.constant 0 : index
    %350 = vector.load %arg8[%c1_221, %c1_222, %c0_223, %c0_224] : memref<4x2x1x256xf32, #tpu.memory_space<vmem>>, vector<1x1x1x256xf32>
    %351 = vector.shape_cast %350 : vector<1x1x1x256xf32> to vector<1x256xf32>
    %352 = vector.broadcast %351 : vector<1x256xf32> to vector<8x256xf32>
    %353 = arith.mulf %349, %352 : vector<8x256xf32>
    %354 = arith.addf %348, %353 : vector<8x256xf32>
    %355 = vector.extract_strided_slice %325 {offsets = [48, 64], sizes = [8, 256], strides = [1, 1]} : vector<72x324xf32> to vector<8x256xf32>
    %c1_225 = arith.constant 1 : index
    %c0_226 = arith.constant 0 : index
    %c0_227 = arith.constant 0 : index
    %c0_228 = arith.constant 0 : index
    %356 = vector.load %arg8[%c1_225, %c0_226, %c0_227, %c0_228] : memref<4x2x1x256xf32, #tpu.memory_space<vmem>>, vector<1x1x1x256xf32>
    %357 = vector.shape_cast %356 : vector<1x1x1x256xf32> to vector<1x256xf32>
    %358 = vector.broadcast %357 : vector<1x256xf32> to vector<8x256xf32>
    %359 = arith.mulf %355, %358 : vector<8x256xf32>
    %360 = arith.addf %354, %359 : vector<8x256xf32>
    %361 = vector.extract_strided_slice %325 {offsets = [56, 66], sizes = [8, 256], strides = [1, 1]} : vector<72x324xf32> to vector<8x256xf32>
    %362 = arith.addf %360, %361 : vector<8x256xf32>
    %363 = vector.extract_strided_slice %325 {offsets = [64, 68], sizes = [8, 256], strides = [1, 1]} : vector<72x324xf32> to vector<8x256xf32>
    %c1_229 = arith.constant 1 : index
    %c1_230 = arith.constant 1 : index
    %c0_231 = arith.constant 0 : index
    %c0_232 = arith.constant 0 : index
    %364 = vector.load %arg8[%c1_229, %c1_230, %c0_231, %c0_232] : memref<4x2x1x256xf32, #tpu.memory_space<vmem>>, vector<1x1x1x256xf32>
    %365 = vector.shape_cast %364 : vector<1x1x1x256xf32> to vector<1x256xf32>
    %366 = vector.broadcast %365 : vector<1x256xf32> to vector<8x256xf32>
    %367 = arith.mulf %363, %366 : vector<8x256xf32>
    %368 = arith.addf %362, %367 : vector<8x256xf32>
    %c1_233 = arith.constant 1 : index
    %c1_234 = arith.constant 1 : index
    %c0_235 = arith.constant 0 : index
    %c0_236 = arith.constant 0 : index
    %369 = vector.load %arg6[%c1_233, %c1_234, %c0_235, %c0_236] : memref<2x4x8x1xf32, #tpu.memory_space<vmem>>, vector<1x1x8x1xf32>
    %370 = vector.shape_cast %369 : vector<1x1x8x1xf32> to vector<8x1xf32>
    %371 = vector.broadcast %370 : vector<8x1xf32> to vector<8x256xf32>
    %372 = arith.mulf %368, %371 : vector<8x256xf32>
    %c1_237 = arith.constant 1 : index
    %c1_238 = arith.constant 1 : index
    %c0_239 = arith.constant 0 : index
    %c0_240 = arith.constant 0 : index
    %373 = vector.load %arg7[%c1_237, %c1_238, %c0_239, %c0_240] : memref<2x4x8x1xf32, #tpu.memory_space<vmem>>, vector<1x1x8x1xf32>
    %374 = vector.shape_cast %373 : vector<1x1x8x1xf32> to vector<8x1xf32>
    %375 = vector.broadcast %374 : vector<8x1xf32> to vector<8x256xf32>
    %376 = arith.addf %372, %375 : vector<8x256xf32>
    %377 = arith.negf %376 : vector<8x256xf32>
    %378 = math.exp %377 : vector<8x256xf32>
    %cst_241 = arith.constant 1.000000e+00 : f32
    %379 = vector.broadcast %cst_241 : f32 to vector<8x256xf32>
    %380 = arith.addf %379, %378 : vector<8x256xf32>
    %381 = arith.divf %379, %380 : vector<8x256xf32>
    %382 = arith.mulf %376, %381 : vector<8x256xf32>
    %c1_242 = arith.constant 1 : index
    %c1_243 = arith.constant 1 : index
    %c0_244 = arith.constant 0 : index
    %c0_245 = arith.constant 0 : index
    %383 = vector.load %arg5[%c1_242, %c1_243, %c0_244, %c0_245] : memref<2x3x72x8xf32, #tpu.memory_space<vmem>>, vector<1x1x72x8xf32>
    %384 = vector.shape_cast %383 : vector<1x1x72x8xf32> to vector<72x8xf32>
    %cst_246 = arith.constant dense<0.000000e+00> : vector<72x256xf32>
    %385 = tpu.matmul %384, %382, %cst_246 {dimension_numbers = #tpu.dot_dimension_numbers<[1], [0], [0], [1], [0, 0, 1, 1], [], []>} : vector<72x8xf32>, vector<8x256xf32>, vector<72x256xf32> -> vector<72x256xf32>
    %cst_247 = arith.constant 0.000000e+00 : f32
    %386 = vector.broadcast %cst_247 : f32 to vector<72x68xf32>
    %387 = tpu.concatenate %386, %385, %386 in 1 : vector<72x68xf32>, vector<72x256xf32>, vector<72x68xf32> -> vector<72x392xf32>
    %cst_248 = arith.constant 0.000000e+00 : f32
    %388 = vector.broadcast %cst_248 : f32 to vector<8x256xf32>
    %389 = vector.extract_strided_slice %387 {offsets = [0, 0], sizes = [8, 256], strides = [1, 1]} : vector<72x392xf32> to vector<8x256xf32>
    %c2_249 = arith.constant 2 : index
    %c0_250 = arith.constant 0 : index
    %c0_251 = arith.constant 0 : index
    %c0_252 = arith.constant 0 : index
    %390 = vector.load %arg8[%c2_249, %c0_250, %c0_251, %c0_252] : memref<4x2x1x256xf32, #tpu.memory_space<vmem>>, vector<1x1x1x256xf32>
    %391 = vector.shape_cast %390 : vector<1x1x1x256xf32> to vector<1x256xf32>
    %392 = vector.broadcast %391 : vector<1x256xf32> to vector<8x256xf32>
    %393 = arith.mulf %389, %392 : vector<8x256xf32>
    %394 = arith.addf %388, %393 : vector<8x256xf32>
    %395 = vector.extract_strided_slice %387 {offsets = [8, 4], sizes = [8, 256], strides = [1, 1]} : vector<72x392xf32> to vector<8x256xf32>
    %396 = arith.addf %394, %395 : vector<8x256xf32>
    %397 = vector.extract_strided_slice %387 {offsets = [16, 8], sizes = [8, 256], strides = [1, 1]} : vector<72x392xf32> to vector<8x256xf32>
    %c2_253 = arith.constant 2 : index
    %c1_254 = arith.constant 1 : index
    %c0_255 = arith.constant 0 : index
    %c0_256 = arith.constant 0 : index
    %398 = vector.load %arg8[%c2_253, %c1_254, %c0_255, %c0_256] : memref<4x2x1x256xf32, #tpu.memory_space<vmem>>, vector<1x1x1x256xf32>
    %399 = vector.shape_cast %398 : vector<1x1x1x256xf32> to vector<1x256xf32>
    %400 = vector.broadcast %399 : vector<1x256xf32> to vector<8x256xf32>
    %401 = arith.mulf %397, %400 : vector<8x256xf32>
    %402 = arith.addf %396, %401 : vector<8x256xf32>
    %403 = vector.extract_strided_slice %387 {offsets = [24, 64], sizes = [8, 256], strides = [1, 1]} : vector<72x392xf32> to vector<8x256xf32>
    %c2_257 = arith.constant 2 : index
    %c0_258 = arith.constant 0 : index
    %c0_259 = arith.constant 0 : index
    %c0_260 = arith.constant 0 : index
    %404 = vector.load %arg8[%c2_257, %c0_258, %c0_259, %c0_260] : memref<4x2x1x256xf32, #tpu.memory_space<vmem>>, vector<1x1x1x256xf32>
    %405 = vector.shape_cast %404 : vector<1x1x1x256xf32> to vector<1x256xf32>
    %406 = vector.broadcast %405 : vector<1x256xf32> to vector<8x256xf32>
    %407 = arith.mulf %403, %406 : vector<8x256xf32>
    %408 = arith.addf %402, %407 : vector<8x256xf32>
    %409 = vector.extract_strided_slice %387 {offsets = [32, 68], sizes = [8, 256], strides = [1, 1]} : vector<72x392xf32> to vector<8x256xf32>
    %410 = arith.addf %408, %409 : vector<8x256xf32>
    %411 = vector.extract_strided_slice %387 {offsets = [40, 72], sizes = [8, 256], strides = [1, 1]} : vector<72x392xf32> to vector<8x256xf32>
    %c2_261 = arith.constant 2 : index
    %c1_262 = arith.constant 1 : index
    %c0_263 = arith.constant 0 : index
    %c0_264 = arith.constant 0 : index
    %412 = vector.load %arg8[%c2_261, %c1_262, %c0_263, %c0_264] : memref<4x2x1x256xf32, #tpu.memory_space<vmem>>, vector<1x1x1x256xf32>
    %413 = vector.shape_cast %412 : vector<1x1x1x256xf32> to vector<1x256xf32>
    %414 = vector.broadcast %413 : vector<1x256xf32> to vector<8x256xf32>
    %415 = arith.mulf %411, %414 : vector<8x256xf32>
    %416 = arith.addf %410, %415 : vector<8x256xf32>
    %417 = vector.extract_strided_slice %387 {offsets = [48, 128], sizes = [8, 256], strides = [1, 1]} : vector<72x392xf32> to vector<8x256xf32>
    %c2_265 = arith.constant 2 : index
    %c0_266 = arith.constant 0 : index
    %c0_267 = arith.constant 0 : index
    %c0_268 = arith.constant 0 : index
    %418 = vector.load %arg8[%c2_265, %c0_266, %c0_267, %c0_268] : memref<4x2x1x256xf32, #tpu.memory_space<vmem>>, vector<1x1x1x256xf32>
    %419 = vector.shape_cast %418 : vector<1x1x1x256xf32> to vector<1x256xf32>
    %420 = vector.broadcast %419 : vector<1x256xf32> to vector<8x256xf32>
    %421 = arith.mulf %417, %420 : vector<8x256xf32>
    %422 = arith.addf %416, %421 : vector<8x256xf32>
    %423 = vector.extract_strided_slice %387 {offsets = [56, 132], sizes = [8, 256], strides = [1, 1]} : vector<72x392xf32> to vector<8x256xf32>
    %424 = arith.addf %422, %423 : vector<8x256xf32>
    %425 = vector.extract_strided_slice %387 {offsets = [64, 136], sizes = [8, 256], strides = [1, 1]} : vector<72x392xf32> to vector<8x256xf32>
    %c2_269 = arith.constant 2 : index
    %c1_270 = arith.constant 1 : index
    %c0_271 = arith.constant 0 : index
    %c0_272 = arith.constant 0 : index
    %426 = vector.load %arg8[%c2_269, %c1_270, %c0_271, %c0_272] : memref<4x2x1x256xf32, #tpu.memory_space<vmem>>, vector<1x1x1x256xf32>
    %427 = vector.shape_cast %426 : vector<1x1x1x256xf32> to vector<1x256xf32>
    %428 = vector.broadcast %427 : vector<1x256xf32> to vector<8x256xf32>
    %429 = arith.mulf %425, %428 : vector<8x256xf32>
    %430 = arith.addf %424, %429 : vector<8x256xf32>
    %c1_273 = arith.constant 1 : index
    %c2_274 = arith.constant 2 : index
    %c0_275 = arith.constant 0 : index
    %c0_276 = arith.constant 0 : index
    %431 = vector.load %arg6[%c1_273, %c2_274, %c0_275, %c0_276] : memref<2x4x8x1xf32, #tpu.memory_space<vmem>>, vector<1x1x8x1xf32>
    %432 = vector.shape_cast %431 : vector<1x1x8x1xf32> to vector<8x1xf32>
    %433 = vector.broadcast %432 : vector<8x1xf32> to vector<8x256xf32>
    %434 = arith.mulf %430, %433 : vector<8x256xf32>
    %c1_277 = arith.constant 1 : index
    %c2_278 = arith.constant 2 : index
    %c0_279 = arith.constant 0 : index
    %c0_280 = arith.constant 0 : index
    %435 = vector.load %arg7[%c1_277, %c2_278, %c0_279, %c0_280] : memref<2x4x8x1xf32, #tpu.memory_space<vmem>>, vector<1x1x8x1xf32>
    %436 = vector.shape_cast %435 : vector<1x1x8x1xf32> to vector<8x1xf32>
    %437 = vector.broadcast %436 : vector<8x1xf32> to vector<8x256xf32>
    %438 = arith.addf %434, %437 : vector<8x256xf32>
    %439 = arith.negf %438 : vector<8x256xf32>
    %440 = math.exp %439 : vector<8x256xf32>
    %cst_281 = arith.constant 1.000000e+00 : f32
    %441 = vector.broadcast %cst_281 : f32 to vector<8x256xf32>
    %442 = arith.addf %441, %440 : vector<8x256xf32>
    %443 = arith.divf %441, %442 : vector<8x256xf32>
    %444 = arith.mulf %438, %443 : vector<8x256xf32>
    %c1_282 = arith.constant 1 : index
    %c2_283 = arith.constant 2 : index
    %c0_284 = arith.constant 0 : index
    %c0_285 = arith.constant 0 : index
    %445 = vector.load %arg5[%c1_282, %c2_283, %c0_284, %c0_285] : memref<2x3x72x8xf32, #tpu.memory_space<vmem>>, vector<1x1x72x8xf32>
    %446 = vector.shape_cast %445 : vector<1x1x72x8xf32> to vector<72x8xf32>
    %cst_286 = arith.constant dense<0.000000e+00> : vector<72x256xf32>
    %447 = tpu.matmul %446, %444, %cst_286 {dimension_numbers = #tpu.dot_dimension_numbers<[1], [0], [0], [1], [0, 0, 1, 1], [], []>} : vector<72x8xf32>, vector<8x256xf32>, vector<72x256xf32> -> vector<72x256xf32>
    %cst_287 = arith.constant 0.000000e+00 : f32
    %448 = vector.broadcast %cst_287 : f32 to vector<72x136xf32>
    %449 = tpu.concatenate %448, %447, %448 in 1 : vector<72x136xf32>, vector<72x256xf32>, vector<72x136xf32> -> vector<72x528xf32>
    %cst_288 = arith.constant 0.000000e+00 : f32
    %450 = vector.broadcast %cst_288 : f32 to vector<8x256xf32>
    %451 = vector.extract_strided_slice %449 {offsets = [0, 0], sizes = [8, 256], strides = [1, 1]} : vector<72x528xf32> to vector<8x256xf32>
    %c3_289 = arith.constant 3 : index
    %c0_290 = arith.constant 0 : index
    %c0_291 = arith.constant 0 : index
    %c0_292 = arith.constant 0 : index
    %452 = vector.load %arg8[%c3_289, %c0_290, %c0_291, %c0_292] : memref<4x2x1x256xf32, #tpu.memory_space<vmem>>, vector<1x1x1x256xf32>
    %453 = vector.shape_cast %452 : vector<1x1x1x256xf32> to vector<1x256xf32>
    %454 = vector.broadcast %453 : vector<1x256xf32> to vector<8x256xf32>
    %455 = arith.mulf %451, %454 : vector<8x256xf32>
    %456 = arith.addf %450, %455 : vector<8x256xf32>
    %457 = vector.extract_strided_slice %449 {offsets = [8, 8], sizes = [8, 256], strides = [1, 1]} : vector<72x528xf32> to vector<8x256xf32>
    %458 = arith.addf %456, %457 : vector<8x256xf32>
    %459 = vector.extract_strided_slice %449 {offsets = [16, 16], sizes = [8, 256], strides = [1, 1]} : vector<72x528xf32> to vector<8x256xf32>
    %c3_293 = arith.constant 3 : index
    %c1_294 = arith.constant 1 : index
    %c0_295 = arith.constant 0 : index
    %c0_296 = arith.constant 0 : index
    %460 = vector.load %arg8[%c3_293, %c1_294, %c0_295, %c0_296] : memref<4x2x1x256xf32, #tpu.memory_space<vmem>>, vector<1x1x1x256xf32>
    %461 = vector.shape_cast %460 : vector<1x1x1x256xf32> to vector<1x256xf32>
    %462 = vector.broadcast %461 : vector<1x256xf32> to vector<8x256xf32>
    %463 = arith.mulf %459, %462 : vector<8x256xf32>
    %464 = arith.addf %458, %463 : vector<8x256xf32>
    %465 = vector.extract_strided_slice %449 {offsets = [24, 128], sizes = [8, 256], strides = [1, 1]} : vector<72x528xf32> to vector<8x256xf32>
    %c3_297 = arith.constant 3 : index
    %c0_298 = arith.constant 0 : index
    %c0_299 = arith.constant 0 : index
    %c0_300 = arith.constant 0 : index
    %466 = vector.load %arg8[%c3_297, %c0_298, %c0_299, %c0_300] : memref<4x2x1x256xf32, #tpu.memory_space<vmem>>, vector<1x1x1x256xf32>
    %467 = vector.shape_cast %466 : vector<1x1x1x256xf32> to vector<1x256xf32>
    %468 = vector.broadcast %467 : vector<1x256xf32> to vector<8x256xf32>
    %469 = arith.mulf %465, %468 : vector<8x256xf32>
    %470 = arith.addf %464, %469 : vector<8x256xf32>
    %471 = vector.extract_strided_slice %449 {offsets = [32, 136], sizes = [8, 256], strides = [1, 1]} : vector<72x528xf32> to vector<8x256xf32>
    %472 = arith.addf %470, %471 : vector<8x256xf32>
    %473 = vector.extract_strided_slice %449 {offsets = [40, 144], sizes = [8, 256], strides = [1, 1]} : vector<72x528xf32> to vector<8x256xf32>
    %c3_301 = arith.constant 3 : index
    %c1_302 = arith.constant 1 : index
    %c0_303 = arith.constant 0 : index
    %c0_304 = arith.constant 0 : index
    %474 = vector.load %arg8[%c3_301, %c1_302, %c0_303, %c0_304] : memref<4x2x1x256xf32, #tpu.memory_space<vmem>>, vector<1x1x1x256xf32>
    %475 = vector.shape_cast %474 : vector<1x1x1x256xf32> to vector<1x256xf32>
    %476 = vector.broadcast %475 : vector<1x256xf32> to vector<8x256xf32>
    %477 = arith.mulf %473, %476 : vector<8x256xf32>
    %478 = arith.addf %472, %477 : vector<8x256xf32>
    %479 = vector.extract_strided_slice %449 {offsets = [48, 256], sizes = [8, 256], strides = [1, 1]} : vector<72x528xf32> to vector<8x256xf32>
    %c3_305 = arith.constant 3 : index
    %c0_306 = arith.constant 0 : index
    %c0_307 = arith.constant 0 : index
    %c0_308 = arith.constant 0 : index
    %480 = vector.load %arg8[%c3_305, %c0_306, %c0_307, %c0_308] : memref<4x2x1x256xf32, #tpu.memory_space<vmem>>, vector<1x1x1x256xf32>
    %481 = vector.shape_cast %480 : vector<1x1x1x256xf32> to vector<1x256xf32>
    %482 = vector.broadcast %481 : vector<1x256xf32> to vector<8x256xf32>
    %483 = arith.mulf %479, %482 : vector<8x256xf32>
    %484 = arith.addf %478, %483 : vector<8x256xf32>
    %485 = vector.extract_strided_slice %449 {offsets = [56, 264], sizes = [8, 256], strides = [1, 1]} : vector<72x528xf32> to vector<8x256xf32>
    %486 = arith.addf %484, %485 : vector<8x256xf32>
    %487 = vector.extract_strided_slice %449 {offsets = [64, 272], sizes = [8, 256], strides = [1, 1]} : vector<72x528xf32> to vector<8x256xf32>
    %c3_309 = arith.constant 3 : index
    %c1_310 = arith.constant 1 : index
    %c0_311 = arith.constant 0 : index
    %c0_312 = arith.constant 0 : index
    %488 = vector.load %arg8[%c3_309, %c1_310, %c0_311, %c0_312] : memref<4x2x1x256xf32, #tpu.memory_space<vmem>>, vector<1x1x1x256xf32>
    %489 = vector.shape_cast %488 : vector<1x1x1x256xf32> to vector<1x256xf32>
    %490 = vector.broadcast %489 : vector<1x256xf32> to vector<8x256xf32>
    %491 = arith.mulf %487, %490 : vector<8x256xf32>
    %492 = arith.addf %486, %491 : vector<8x256xf32>
    %c1_313 = arith.constant 1 : index
    %c3_314 = arith.constant 3 : index
    %c0_315 = arith.constant 0 : index
    %c0_316 = arith.constant 0 : index
    %493 = vector.load %arg6[%c1_313, %c3_314, %c0_315, %c0_316] : memref<2x4x8x1xf32, #tpu.memory_space<vmem>>, vector<1x1x8x1xf32>
    %494 = vector.shape_cast %493 : vector<1x1x8x1xf32> to vector<8x1xf32>
    %495 = vector.broadcast %494 : vector<8x1xf32> to vector<8x256xf32>
    %496 = arith.mulf %492, %495 : vector<8x256xf32>
    %c1_317 = arith.constant 1 : index
    %c3_318 = arith.constant 3 : index
    %c0_319 = arith.constant 0 : index
    %c0_320 = arith.constant 0 : index
    %497 = vector.load %arg7[%c1_317, %c3_318, %c0_319, %c0_320] : memref<2x4x8x1xf32, #tpu.memory_space<vmem>>, vector<1x1x8x1xf32>
    %498 = vector.shape_cast %497 : vector<1x1x8x1xf32> to vector<8x1xf32>
    %499 = vector.broadcast %498 : vector<8x1xf32> to vector<8x256xf32>
    %500 = arith.addf %496, %499 : vector<8x256xf32>
    %501 = arith.negf %500 : vector<8x256xf32>
    %502 = math.exp %501 : vector<8x256xf32>
    %cst_321 = arith.constant 1.000000e+00 : f32
    %503 = vector.broadcast %cst_321 : f32 to vector<8x256xf32>
    %504 = arith.addf %503, %502 : vector<8x256xf32>
    %505 = arith.divf %503, %504 : vector<8x256xf32>
    %506 = arith.mulf %500, %505 : vector<8x256xf32>
    %507 = tpu.concatenate %320, %382, %444, %506 in 0 : vector<8x256xf32>, vector<8x256xf32>, vector<8x256xf32>, vector<8x256xf32> -> vector<32x256xf32>
    %508 = arith.addf %258, %507 : vector<32x256xf32>
    %c0_322 = arith.constant 0 : index
    %c0_323 = arith.constant 0 : index
    %c0_324 = arith.constant 0 : index
    %509 = vector.load %arg9[%c0_322, %c0_323, %c0_324] : memref<1x32x256xf32, #tpu.memory_space<vmem>>, vector<1x32x256xf32>
    %510 = vector.shape_cast %509 : vector<1x32x256xf32> to vector<32x256xf32>
    %511 = vector.shape_cast %508 : vector<32x256xf32> to vector<1x32x256xf32>
    tpu.vector_store %arg9[%c0_322, %c0_323, %c0_324], %511 {strides = array<i32>} : memref<1x32x256xf32, #tpu.memory_space<vmem>>, vector<1x32x256xf32>,
    return
  }
  func.func @transform_0(%arg0: i32) -> (i32, i32, i32) {
    %c0_i32 = arith.constant 0 : i32
    %c0_i32_0 = arith.constant 0 : i32
    %c0_i32_1 = arith.constant 0 : i32
    return %arg0, %c0_i32, %c0_i32_0 : i32, i32, i32
  }
  func.func @transform_1(%arg0: i32) -> (i32, i32) {
    %c0_i32 = arith.constant 0 : i32
    %c0_i32_0 = arith.constant 0 : i32
    %c0_i32_1 = arith.constant 0 : i32
    return %c0_i32, %c0_i32_0 : i32, i32
  }
  func.func @transform_2(%arg0: i32) -> (i32, i32) {
    %c0_i32 = arith.constant 0 : i32
    %c0_i32_0 = arith.constant 0 : i32
    %c0_i32_1 = arith.constant 0 : i32
    return %c0_i32, %c0_i32_0 : i32, i32
  }
  func.func @transform_3(%arg0: i32) -> (i32, i32, i32) {
    %c0_i32 = arith.constant 0 : i32
    %c0_i32_0 = arith.constant 0 : i32
    %c0_i32_1 = arith.constant 0 : i32
    %c0_i32_2 = arith.constant 0 : i32
    return %c0_i32, %c0_i32_0, %c0_i32_1 : i32, i32, i32
  }
  func.func @transform_4(%arg0: i32) -> (i32, i32, i32, i32) {
    %c0_i32 = arith.constant 0 : i32
    %c0_i32_0 = arith.constant 0 : i32
    %c0_i32_1 = arith.constant 0 : i32
    %c0_i32_2 = arith.constant 0 : i32
    %c0_i32_3 = arith.constant 0 : i32
    return %c0_i32, %c0_i32_0, %c0_i32_1, %c0_i32_2 : i32, i32, i32, i32
  }
  func.func @transform_5(%arg0: i32) -> (i32, i32, i32, i32) {
    %c0_i32 = arith.constant 0 : i32
    %c0_i32_0 = arith.constant 0 : i32
    %c0_i32_1 = arith.constant 0 : i32
    %c0_i32_2 = arith.constant 0 : i32
    %c0_i32_3 = arith.constant 0 : i32
    return %c0_i32, %c0_i32_0, %c0_i32_1, %c0_i32_2 : i32, i32, i32, i32
  }
  func.func @transform_6(%arg0: i32) -> (i32, i32, i32, i32) {
    %c0_i32 = arith.constant 0 : i32
    %c0_i32_0 = arith.constant 0 : i32
    %c0_i32_1 = arith.constant 0 : i32
    %c0_i32_2 = arith.constant 0 : i32
    %c0_i32_3 = arith.constant 0 : i32
    return %c0_i32, %c0_i32_0, %c0_i32_1, %c0_i32_2 : i32, i32, i32, i32
  }
  func.func @transform_7(%arg0: i32) -> (i32, i32, i32, i32) {
    %c0_i32 = arith.constant 0 : i32
    %c0_i32_0 = arith.constant 0 : i32
    %c0_i32_1 = arith.constant 0 : i32
    %c0_i32_2 = arith.constant 0 : i32
    %c0_i32_3 = arith.constant 0 : i32
    return %c0_i32, %c0_i32_0, %c0_i32_1, %c0_i32_2 : i32, i32, i32, i32
  }
  func.func @transform_8(%arg0: i32) -> (i32, i32, i32) {
    %c0_i32 = arith.constant 0 : i32
    %c0_i32_0 = arith.constant 0 : i32
    %c0_i32_1 = arith.constant 0 : i32
    return %arg0, %c0_i32, %c0_i32_0 : i32, i32, i32
  }
}

</mosaic_0001>

<bundles_post_ra>
// kernel: c3d_bottleneck_forward.1
= control target key start
LH: loop header
LB: loop body
LE: loop exit
PB: predicated region body
PF: predicated region fallthrough
CT: control target
= control target key end

     0   :  { %s4400_s27 = smov 0   ;;  %s6024_s0 = inlined_call_operand.vmem [shape: f32[2,4,256], index: 0, kind: input, shape index: {}]   ;;  %s6025_s1 = inlined_call_operand.vmem [shape: f32[32,4], index: 1, kind: input, shape index: {}]   ;;  %s6026_s2 = inlined_call_operand.vmem [shape: f32[32,1], index: 2, kind: input, shape index: {}]   ;;  %s6027_s3 = inlined_call_operand.vmem [shape: f32[2,72,32], index: 3, kind: input, shape index: {}]   ;;  %s6028_s4 = inlined_call_operand.vmem [shape: f32[2,3,72,8], index: 4, kind: input, shape index: {}]   ;;  %s6029_s5 = inlined_call_operand.vmem [shape: f32[2,4,8,1], index: 5, kind: input, shape index: {}]   ;;  %s6030_s6 = inlined_call_operand.vmem [shape: f32[2,4,8,1], index: 6, kind: input, shape index: {}]   ;;  %s6031_s7 = inlined_call_operand.vmem [shape: f32[4,2,1,256], index: 7, kind: input, shape index: {}]   ;;  %s6032_s8 = inlined_call_operand.vmem [shape: f32[2,32,256], index: 8, kind: output, shape index: {}]  }
   0x1 LB: > { %s4016_s28 = sadd.s32 4294967295, %s4325_s27   ;;  %p4020_p0 = scmp.ge.s32.totalorder %s4325_s27, 1  ;;  %s4325_s27 = sphi %s4400_s27, %s18_s27  }
   0x2   : > { %p262_p1 = scmp.lt.s32.totalorder %s4325_s27, 3 }
   0x4   : > { %p263_p2 = pnand %p4020_p0, %p262_p1 }
   0x6   : > { %266 = sbr.rel (%p263_p2) target bundleno = 4478 (0x117e), region = 52 }
   0xd   : > { %p296_p3 = scmp.lt.s32.totalorder %s4016_s28, 1  ;;  %v6045_v0 = vmov 0.0   ;;  %v311_v1 = vld [vmem:[%s6026_s2] sm:$0xff]  ;;  %v4328_v2 = vmov 0   ;;  %v313_v3 = vld [vmem:[%s6026_s2 + $0x10] sm:$0xff]  ;;  %v312_v4 = vld [vmem:[%s6026_s2 + $0x8] sm:$0xff]  ;;  %v714_v12 = vlaneseq }
   0xe   : > { %419 = vmatprep.mubr.f32.mxu0 %v6045_v0  ;;  %431 = vmatprep.mubr.f32.mxu1 %v6045_v0  ;;  %v314_v5 = vld [vmem:[%s6026_s2 + $0x18] sm:$0xff]  ;;  %vm350_vm0 = vcmask 1043456   ;;  %v307_v8 = vld [vmem:[%s6025_s1] sm:$0xff]  ;;  %vm337_vm1 = vcmask 31744   ;;  %v309_v9 = vld [vmem:[%s6025_s1 + $0x10] sm:$0xff]  ;;  %s4330_s12 = smov 16  }
   0xf   : > { %s6203_s28 = smov (!%p296_p3, %s4016_s28), 1  ;;  %4252 = vset.pattern.permute.xlu0 %v4328_v2  ;;  %4253 = vset.pattern.permute.xlu1 %v4328_v2  ;;  %v308_v10 = vld [vmem:[%s6025_s1 + $0x8] sm:$0xff]  ;;  %v310_v11 = vld [vmem:[%s6025_s1 + $0x18] sm:$0xff]  ;;  %v715_v13 = vshrl.u32 %v714_v12, 7  ;;  %v4040_v14 = vld [vmem:[%s6031_s7 + $0x2] sm:$0x3] }
  0x10   : > { %317 = vperm.xlu0 %4252, %v311_v1   ;;  %327 = vperm.xlu1 %4253, %v313_v3   ;;  %s4196_s11 = sshll.u32 %s6203_s28, 3  ;;  %v712_v17 = vld [vmem:[%s6031_s7] sm:$0x3]  ;;  %s4331_s13 = smov 18   ;;  %vm461_vm2 = vcmask 261120   ;;  %v453_v55 = vld [vmem:[%s6027_s3 + $0x8] sm:$0xff] }
  0x11   : > { %s300_s18 = scalar_lea.vmem %s6024_s0, %s4196_s11  ;;  %v4451_v15 = vsub.s32 1, %v715_v13  ;;  %v4453_v16 = vsub.s32 0, %v715_v13  ;;  %s4329_s11 = smov 2   ;;  %v452_v54 = vld [vmem:[%s6027_s3] sm:$0xff]  ;;  %v454_v56 = vld [vmem:[%s6027_s3 + $0x10] sm:$0xff]  ;;  %v455_v57 = vld [vmem:[%s6027_s3 + $0x18] sm:$0xff] }
  0x12   : > { %v306_v6 = vld [vmem:[%s300_s18] sm:$0xff]  ;;  %v457_v59 = vld [vmem:[%s6027_s3 + $0x28] sm:$0xff]  ;;  %v458_v60 = vld [vmem:[%s6027_s3 + $0x30] sm:$0xff]  ;;  %s4333_s14 = smov 17   ;;  %s6069_s15 = smov 34   ;;  %vm662_vm3 = vcmask 138240  }
  0x13   : > { %v336_v7 = vcombine.high %v306_v6, %v306_v6  ;;  %v4459_v18 = vrot.slane %v4040_v14, %v4451_v15  ;;  %v4462_v19 = vrot.slane %v4040_v14, %v4453_v16  ;;  %v4467_v20 = vrot.slane %v712_v17, %v4451_v15  ;;  %v456_v58 = vld [vmem:[%s6027_s3 + $0x20] sm:$0xff]  ;;  %v459_v61 = vld [vmem:[%s6027_s3 + $0x38] sm:$0xff]  ;;  %s4335_s20 = smov 127   ;;  %s4336_s21 = smov 126  }
  0x14   : > { %322 = vperm.xlu0 %4252, %v312_v4   ;;  %332 = vperm.xlu1 %4253, %v314_v5   ;;  %v4470_v21 = vrot.slane %v712_v17, %v4453_v16  ;;  %v460_v62 = vld [vmem:[%s6027_s3 + $0x40] sm:$0xff]  ;;  %vm758_vm4 = vcmask 15360   ;;  %vm786_vm5 = vcmask 130048   ;;  %s4337_s22 = smov 112   ;;  %s4338_s23 = smov 111   ;;  %vm829_vm6 = vcmask 146432  }
  0x15   : > { %4025 = vmatprep.subr.msk.mxu0 %vm350_vm0, %v336_v7  ;;  %4214 = vmatprep.subr.msk.mxu1 %vm350_vm0, %v336_v7  ;;  %6093 = vst [vmem:[#allocation2_spill] sm:$0xff] %v4467_v20  ;;  %s4339_s24 = smov 110   ;;  %vm6067_vm7 = vcmask 277504   ;;  %s4340_s25 = smov 96   ;;  %vm736_vm8 = vcmask 1039360   ;;  %vm775_vm9 = vcmask 1031168  }
  0x16   : > { %4026 = vmatpush1.msk.msra.mxu0 %vm350_vm0, %v306_v6  ;;  %4215 = vmatpush1.msk.msra.mxu1 %vm350_vm0, %v306_v6  ;;  %6094 = vst [vmem:[#allocation3_spill] sm:$0xff] %v4470_v21  ;;  %s4341_s26 = smov 95   ;;  %s6071_s29 = smov 94   ;;  %vm6092_vm10 = vcmask 916480   ;;  %vm818_vm11 = vcmask 908288   ;;  %vm6068_vm12 = vcmask 900096  }
  0x17   : > { %4027 = vmatmul.mubr.msk.f32.vlgmr.msra.gmra.mrb[0].mxu0 %vm337_vm1, %v307_v8  ;;  %4029 = vmatmul.mubr.msk.f32.vlgmr.msra.gmra.mrb[0].mxu1 %vm337_vm1, %v309_v9  ;;  %s4343_s16 = smov 4   ;;  %s4344_s17 = smov 36   ;;  %vm873_vm13 = vcmask 785408   ;;  %vm6061_vm14 = vcmask 777216   ;;  %vm916_vm15 = vcmask 769024   ;;  %vm962_vm0 = vcmask 64512  }
  0x18   : > { %425 = vmatprep.mubr.f32.mxu0 %v6045_v0  ;;  %437 = vmatprep.mubr.f32.mxu1 %v6045_v0  ;;  %s6083_s18 = smov 68   ;;  %s4350_s19 = smov 60  }
  0x19   : > { %756 = vrot.lane.b32.xlu1 %v4459_v18, %s4329_s11  ;;  %754 = vrot.lane.b32.xlu0 %v4462_v19, %s4329_s11  ;;  %s4347_s11 = smov 124   ;;  %s4353_s30 = smov 120  }
  0x1b   : > { %4028 = vmatmul.mubr.msk.f32.gmra.mrb[2].mxu0 %vm337_vm1, %v308_v10  ;;  %4030 = vmatmul.mubr.msk.f32.gmra.mrb[2].mxu1 %vm337_vm1, %v310_v11 }
  0x1c   : > { %553 = vmatprep.mubr.f32.mxu1 %v6045_v0  ;;  %1054 = vmatprep.mubr.f32.mxu0 %v6045_v0 }
  0x1d   : > { %784 = vrot.lane.b32.xlu1 %v4467_v20, %s4330_s12  ;;  %782 = vrot.lane.b32.xlu0 %v4470_v21, %s4330_s12 }
  0x21   : > { %827 = vrot.lane.b32.xlu1 %v4459_v18, %s4331_s13  ;;  %825 = vrot.lane.b32.xlu0 %v4462_v19, %s4331_s13  ;;  %s4332_s13 = smov 32  }
  0x25   : > { %855 = vrot.lane.b32.xlu1 %v4467_v20, %s4332_s13  ;;  %853 = vrot.lane.b32.xlu0 %v4470_v21, %s4332_s13 }
  0x8f   : > { %v318_v22 = vpop.permute.xlu0 %317  ;;  %v328_v23 = vpop.permute.xlu1 %327 }
  0x93   : > { %v323_v28 = vpop.permute.xlu0 %322  ;;  %v333_v29 = vpop.permute.xlu1 %332 }
  0xea   : > { %v421_v24 = vpop.f32.mrb[0].mxu0  ;;  %v433_v25 = vpop.f32.mrb[0].mxu1 }
  0xeb   : > { %v423_v26 = vpop.f32.mrb[1].mxu0  ;;  %v435_v27 = vpop.f32.mrb[1].mxu1  ;;  %v4482_v34 = vadd.f32 %v421_v24, %v318_v22  ;;  %v4490_v40 = vadd.f32 %v433_v25, %v328_v23  ;;  %v923_v24 = vld [vmem:[%s6029_s5] sm:$0xff] }
  0xec   : > { %v4478_v30 = vadd.f32 %v423_v26, %v318_v22  ;;  %v4480_v31 = vadd.f32 %v435_v27, %v328_v23  ;;  %v931_v25 = vld [vmem:[%s6030_s6] sm:$0xff]  ;;  %v4595_v26 = vpop.permute.xlu0 %754 }
  0xed   : > { %v6037_v47 = vmax.f32 %v4482_v34, 0.0  ;;  %v6034_v49 = vmax.f32 %v4490_v40, 0.0 }
  0xee   : > { %v427_v32 = vpop.f32.mrb[2].mxu0  ;;  %v439_v33 = vpop.f32.mrb[2].mxu1  ;;  %v6039_v43 = vmax.f32 %v4478_v30, 0.0  ;;  %v6036_v44 = vmax.f32 %v4480_v31, 0.0 }
  0xef   : > { %v4484_v35 = vadd.f32 %v427_v32, %v323_v28  ;;  %v429_v36 = vpop.f32.mrb[3].mxu0  ;;  %v441_v37 = vpop.f32.mrb[3].mxu1  ;;  %v4493_v42 = vadd.f32 %v439_v33, %v333_v29 }
  0xf0   : > { %v4486_v38 = vadd.f32 %v429_v36, %v323_v28  ;;  %v4488_v39 = vadd.f32 %v441_v37, %v333_v29  ;;  %v4599_v27 = vpop.permute.xlu0 %782 }
  0xf1   : > { %v6040_v41 = vmax.f32 %v4484_v35, 0.0  ;;  %v6033_v51 = vmax.f32 %v4493_v42, 0.0 }
  0xf2   : > { %v6038_v45 = vmax.f32 %v4486_v38, 0.0  ;;  %v6035_v46 = vmax.f32 %v4488_v39, 0.0 }
  0xf3   : > { %v4200_v50 = vpack.c.bf16 %v6040_v41, %v6037_v47  ;;  %v4204_v53 = vpack.c.bf16 %v6033_v51, %v6034_v49 }
  0xf4   : > { %v4198_v48 = vpack.c.bf16 %v6038_v45, %v6039_v43  ;;  %v4202_v52 = vpack.c.bf16 %v6035_v46, %v6036_v44  ;;  %v4603_v28 = vpop.permute.xlu0 %825 }
  0xf6   : > { %4199 = vmatprep.subr.bf16.mxu1 %v4198_v48 }
  0xf7   : > { %4201 = vmatpush1.bf16.msra.mxu1 %v4200_v50 }
  0xf8   : > { %4203 = vmatprep.subr.bf16.mxu1 %v4202_v52  ;;  %v4607_v32 = vpop.permute.xlu0 %853 }
  0xfb   : > { %4205 = vmatpush1.bf16.msra.mxu1 %v4204_v53 }
  0xfe   : > { %4031 = vmatmul.mubr.msk.f32.vlgmr.msra.gmra.mrb[4].mxu1 %vm461_vm2, %v452_v54 }
  0xff   : > { %559 = vmatprep.mubr.f32.mxu1 %v6045_v0 }
 0x102   : > { %4032 = vmatmul.mubr.msk.f32.gmra.mrb[6].mxu1 %vm461_vm2, %v453_v55 }
 0x103   : > { %565 = vmatprep.mubr.f32.mxu1 %v6045_v0 }
 0x106   : > { %4033 = vmatmul.mubr.msk.f32.gmra.mrb[8].mxu1 %vm461_vm2, %v454_v56 }
 0x107   : > { %571 = vmatprep.mubr.f32.mxu1 %v6045_v0 }
 0x10a   : > { %4034 = vmatmul.mubr.msk.f32.gmra.mrb[10].mxu1 %vm461_vm2, %v455_v57 }
 0x10b   : > { %577 = vmatprep.mubr.f32.mxu1 %v6045_v0 }
 0x10e   : > { %4035 = vmatmul.mubr.msk.f32.gmra.mrb[12].mxu1 %vm461_vm2, %v456_v58 }
 0x10f   : > { %583 = vmatprep.mubr.f32.mxu1 %v6045_v0 }
 0x112   : > { %4036 = vmatmul.mubr.msk.f32.gmra.mrb[14].mxu1 %vm461_vm2, %v457_v59 }
 0x113   : > { %589 = vmatprep.mubr.f32.mxu1 %v6045_v0 }
 0x116   : > { %4037 = vmatmul.mubr.msk.f32.gmra.mrb[16].mxu1 %vm461_vm2, %v458_v60 }
 0x117   : > { %595 = vmatprep.mubr.f32.mxu1 %v6045_v0 }
 0x11a   : > { %4038 = vmatmul.mubr.msk.f32.gmra.mrb[18].mxu1 %vm461_vm2, %v459_v61 }
 0x11b   : > { %601 = vmatprep.mubr.f32.mxu1 %v6045_v0 }
 0x11e   : > { %4039 = vmatmul.mubr.msk.f32.gmra.mrb[20].mxu1 %vm461_vm2, %v460_v62 }
 0x11f   : > { %1552 = vmatprep.mubr.f32.mxu1 %v6045_v0 }
 0x1d1   : > { %v555_v63 = vpop.f32.mrb[4].mxu1 }
 0x1d2   : > { %v557_v1 = vpop.f32.mrb[5].mxu1 }
 0x1d5   : > { %v561_v2 = vpop.f32.mrb[6].mxu1 }
 0x1d6   : > { %630 = vrot.lane.b32.xlu0 %v561_v2, %s4333_s14  ;;  %v563_v3 = vpop.f32.mrb[7].mxu1 }
 0x1d7   : > { %632 = vrot.lane.b32.xlu1 %v563_v3, %s4333_s14 }
 0x1d9   : > { %v567_v4 = vpop.f32.mrb[8].mxu1 }
 0x1da   : > { %634 = vrot.lane.b32.xlu0 %v567_v4, %s4333_s14  ;;  %v569_v5 = vpop.f32.mrb[9].mxu1 }
 0x1db   : > { %636 = vrot.lane.b32.xlu1 %v569_v5, %s4333_s14 }
 0x1dd   : > { %v573_v6 = vpop.f32.mrb[10].mxu1 }
 0x1de   : > { %638 = vrot.lane.b32.xlu0 %v573_v6, %s4333_s14  ;;  %v575_v7 = vpop.f32.mrb[11].mxu1 }
 0x1df   : > { %640 = vrot.lane.b32.xlu1 %v575_v7, %s4333_s14 }
 0x1e1   : > { %v579_v8 = vpop.f32.mrb[12].mxu1 }
 0x1e2   : > { %642 = vrot.lane.b32.xlu0 %v579_v8, %s4333_s14  ;;  %v581_v9 = vpop.f32.mrb[13].mxu1 }
 0x1e3   : > { %644 = vrot.lane.b32.xlu1 %v581_v9, %s4333_s14 }
 0x1e5   : > { %v585_v10 = vpop.f32.mrb[14].mxu1 }
 0x1e6   : > { %646 = vrot.lane.b32.xlu0 %v585_v10, %s4333_s14  ;;  %v587_v11 = vpop.f32.mrb[15].mxu1 }
 0x1e7   : > { %648 = vrot.lane.b32.xlu1 %v587_v11, %s4333_s14 }
 0x1e9   : > { %v591_v12 = vpop.f32.mrb[16].mxu1 }
 0x1ea   : > { %650 = vrot.lane.b32.xlu0 %v591_v12, %s4333_s14  ;;  %v593_v13 = vpop.f32.mrb[17].mxu1 }
 0x1eb   : > { %652 = vrot.lane.b32.xlu1 %v593_v13, %s4333_s14 }
 0x1ed   : > { %v597_v14 = vpop.f32.mrb[18].mxu1 }
 0x1ee   : > { %654 = vrot.lane.b32.xlu0 %v597_v14, %s4333_s14  ;;  %v599_v17 = vpop.f32.mrb[19].mxu1 }
 0x1ef   : > { %656 = vrot.lane.b32.xlu1 %v599_v17, %s4333_s14 }
 0x1f1   : > { %v603_v22 = vpop.f32.mrb[20].mxu1 }
 0x1f2   : > { %658 = vrot.lane.b32.xlu0 %v603_v22, %s4333_s14  ;;  %v605_v23 = vpop.f32.mrb[21].mxu1 }
 0x1f3   : > { %660 = vrot.lane.b32.xlu1 %v605_v23, %s4333_s14 }
 0x1f6   : > { %895 = vrot.lane.b32.xlu0 %v4462_v19, %s6069_s15  ;;  %v4597_v19 = vpop.permute.xlu1 %756 }
 0x1f7   : > { %897 = vrot.lane.b32.xlu1 %v4459_v18, %s6069_s15 }
 0x1fa   : > { %626 = vrot.lane.b32.xlu0 %v555_v63, %s4333_s14  ;;  %v4601_v18 = vpop.permute.xlu1 %784  ;;  %v4626_v63 = vsel %vm758_vm4, %v4595_v26, %v4597_v19  ;;  %vm1353_vm4 = vcmask 523264  }
 0x1fb   : > { %628 = vrot.lane.b32.xlu1 %v557_v1, %s4333_s14  ;;  %v4639_v8 = vsel %vm786_vm5, %v4599_v27, %v4601_v18 }
 0x1fe   : > { %v4605_v29 = vpop.permute.xlu1 %827 }
 0x1ff   : > { %926 = vperm.xlu1 %4253, %v923_v24  }
 0x202   : > { %v4609_v33 = vpop.permute.xlu1 %855 }
 0x203   : > { %934 = vperm.xlu1 %4253, %v931_v25  }
 0x248   : > { %v631_v36 = vpop.permute.xlu0 %630 }
 0x249   : > { %v633_v37 = vpop.permute.xlu1 %632  ;;  %v696_v48 = vsel %vm662_vm3, 0.0, %v631_v36 }
 0x24a   : > { %730 = vrot.lane.b32.xlu0 %v696_v48, %s4335_s20  ;;  %v704_v50 = vsel %vm662_vm3, %v633_v37, 0.0  ;;  %v664_v55 = vsel %vm662_vm3, %v631_v36, %v633_v37 }
 0x24b   : > { %734 = vrot.lane.b32.xlu1 %v704_v50, %s4335_s20 }
 0x24c   : > { %v635_v52 = vpop.permute.xlu0 %634 }
 0x24d   : > { %v697_v53 = vsel %vm662_vm3, 0.0, %v635_v52  ;;  %v637_v54 = vpop.permute.xlu1 %636 }
 0x24e   : > { %v705_v56 = vsel %vm662_vm3, %v637_v54, 0.0  ;;  %732 = vrot.lane.b32.xlu0 %v664_v55, %s4335_s20  ;;  %v763_v57 = vmul.f32 %v4595_v26, %v697_v53  ;;  %v665_v58 = vsel %vm662_vm3, %v635_v52, %v637_v54  ;;  %v4659_v53 = vsel %vm829_vm6, %v4603_v28, %v4605_v29 }
 0x24f   : > { %v765_v59 = vmul.f32 %v4597_v19, %v705_v56  ;;  %v764_v1 = vmul.f32 %v4626_v63, %v665_v58  ;;  %v4667_v58 = vsel %vm461_vm2, %v4607_v32, %v4609_v33  ;;  %vm1395_vm6 = vcmask 556032  }
 0x250   : > { %v639_v60 = vpop.permute.xlu0 %638  ;;  %769 = vrot.lane.b32.xlu1 %v763_v57, %s4336_s21 }
 0x251   : > { %v698_v61 = vsel %vm662_vm3, 0.0, %v639_v60  ;;  %v641_v62 = vpop.permute.xlu1 %640 }
 0x252   : > { %773 = vrot.lane.b32.xlu0 %v765_v59, %s4336_s21  ;;  %v706_v2 = vsel %vm662_vm3, %v641_v62, 0.0  ;;  %v791_v4 = vmul.f32 %v4599_v27, %v698_v61  ;;  %v666_v5 = vsel %vm662_vm3, %v639_v60, %v641_v62 }
 0x253   : > { %v793_v7 = vmul.f32 %v4601_v18, %v706_v2  ;;  %v792_v10 = vmul.f32 %v4639_v8, %v666_v5 }
 0x254   : > { %v643_v3 = vpop.permute.xlu0 %642  ;;  %771 = vrot.lane.b32.xlu1 %v764_v1, %s4336_s21 }
 0x255   : > { %v645_v6 = vpop.permute.xlu1 %644  ;;  %v699_v12 = vsel %vm662_vm3, 0.0, %v643_v3 }
 0x256   : > { %797 = vrot.lane.b32.xlu0 %v791_v4, %s4337_s22  ;;  %v707_v22 = vsel %vm662_vm3, %v645_v6, 0.0  ;;  %v667_v24 = vsel %vm662_vm3, %v643_v3, %v645_v6 }
 0x258   : > { %v647_v9 = vpop.permute.xlu0 %646  ;;  %801 = vrot.lane.b32.xlu1 %v793_v7, %s4337_s22 }
 0x259   : > { %v649_v11 = vpop.permute.xlu1 %648  ;;  %v700_v14 = vsel %vm662_vm3, 0.0, %v647_v9 }
 0x25a   : > { %799 = vrot.lane.b32.xlu0 %v792_v10, %s4337_s22  ;;  %v708_v23 = vsel %vm662_vm3, %v649_v11, 0.0  ;;  %v834_v36 = vmul.f32 %v4603_v28, %v700_v14  ;;  %v668_v37 = vsel %vm662_vm3, %v647_v9, %v649_v11 }
 0x25b   : > { %v836_v50 = vmul.f32 %v4605_v29, %v708_v23  ;;  %v835_v55 = vmul.f32 %v4659_v53, %v668_v37 }
 0x25c   : > { %v651_v13 = vpop.permute.xlu0 %650  ;;  %812 = vrot.lane.b32.xlu1 %v699_v12, %s4338_s23 }
 0x25d   : > { %v653_v17 = vpop.permute.xlu1 %652  ;;  %v701_v56 = vsel %vm662_vm3, 0.0, %v651_v13 }
 0x25e   : > { %816 = vrot.lane.b32.xlu0 %v707_v22, %s4338_s23  ;;  %v669_v52 = vsel %vm662_vm3, %v651_v13, %v653_v17  ;;  %v861_v60 = vmul.f32 %v4607_v32, %v701_v56  ;;  %v709_v61 = vsel %vm662_vm3, %v653_v17, 0.0  ;;  %v4053_v17 = vld [vmem:[%s6031_s7 + $0x6] sm:$0x3]  ;;  %v4052_v22 = vld [vmem:[%s6031_s7 + $0x4] sm:$0x3] }
 0x25f   : > { %v862_v59 = vmul.f32 %v4667_v58, %v669_v52  ;;  %v863_v5 = vmul.f32 %v4609_v33, %v709_v61  ;;  %v4721_v37 = vrot.slane %v4052_v22, %v4451_v15 }
 0x260   : > { %v655_v25 = vpop.permute.xlu0 %654  ;;  %814 = vrot.lane.b32.xlu1 %v667_v24, %s4338_s23  ;;  %v4710_v24 = vrot.slane %v4053_v17, %v4453_v16 }
 0x261   : > { %v657_v48 = vpop.permute.xlu1 %656  ;;  %v702_v9 = vsel %vm662_vm3, 0.0, %v655_v25 }
 0x262   : > { %840 = vrot.lane.b32.xlu0 %v834_v36, %s4339_s24  ;;  %v670_v3 = vsel %vm662_vm3, %v655_v25, %v657_v48  ;;  %v710_v12 = vsel %vm662_vm3, %v657_v48, 0.0  ;;  %v4713_v25 = vrot.slane %v4053_v17, %v4451_v15  ;;  %v4718_v36 = vrot.slane %v4052_v22, %v4453_v16 }
 0x264   : > { %v659_v54 = vpop.permute.xlu0 %658  ;;  %844 = vrot.lane.b32.xlu1 %v836_v50, %s4339_s24  ;;  %6096 = vst [vmem:[#allocation5_spill] sm:$0xff] %v4718_v36 }
 0x265   : > { %v661_v57 = vpop.permute.xlu1 %660  ;;  %v703_v7 = vsel %vm662_vm3, 0.0, %v659_v54 }
 0x266   : > { %842 = vrot.lane.b32.xlu0 %v835_v55, %s4339_s24  ;;  %v671_v62 = vsel %vm662_vm3, %v659_v54, %v661_v57  ;;  %v711_v11 = vsel %vm662_vm3, %v661_v57, 0.0 }
 0x268   : > { %869 = vrot.lane.b32.xlu1 %v862_v59, %s4340_s25  ;;  %v4675_v1 = vpop.permute.xlu0 %895 }
 0x269   : > { %v4677_v2 = vpop.permute.xlu1 %897  ;;  %v904_v10 = vmul.f32 %v4675_v1, %v703_v7 }
 0x26a   : > { %6095 = vst [vmem:[#allocation4_spill] sm:$0xff] %v4677_v2  ;;  %867 = vrot.lane.b32.xlu0 %v861_v60, %s4340_s25  ;;  %v4684_v4 = vsel %vm6067_vm7, %v4675_v1, %v4677_v2  ;;  %v906_v13 = vmul.f32 %v4677_v2, %v711_v11 }
 0x26b   : > { %v905_v6 = vmul.f32 %v4684_v4, %v671_v62 }
 0x26c   : > { %884 = vrot.lane.b32.xlu1 %v670_v3, %s4341_s26  ;;  %v627_v48 = vpop.permute.xlu0 %626 }
 0x26d   : > { %v629_v14 = vpop.permute.xlu1 %628 }
 0x26e   : > { %871 = vrot.lane.b32.xlu0 %v863_v5, %s4340_s25  ;;  %v663_v49 = vsel %vm662_vm3, %v627_v48, %v629_v14 }
 0x270   : > { %912 = vrot.lane.b32.xlu1 %v905_v6, %s6071_s29 }
 0x272   : > { %882 = vrot.lane.b32.xlu0 %v702_v9, %s4341_s26  ;;  %v695_v9 = vsel %vm662_vm3, 0.0, %v627_v48 }
 0x274   : > { %910 = vrot.lane.b32.xlu1 %v904_v10, %s6071_s29 }
 0x276   : > { %886 = vrot.lane.b32.xlu0 %v710_v12, %s4341_s26  ;;  %v724_v12 = vmul.f32 %v4470_v21, %v695_v9  ;;  %v725_v9 = vmul.f32 %v4467_v20, %v663_v49 }
 0x278   : > { %1256 = vrot.lane.b32.xlu1 %v4713_v25, %s4343_s16 }
 0x27a   : > { %914 = vrot.lane.b32.xlu0 %v906_v13, %s6071_s29 }
 0x27c   : > { %1283 = vrot.lane.b32.xlu1 %v4721_v37, %s4332_s13 }
 0x27e   : > { %v4707_v23 = vpop.permute.xlu1 %926  ;;  %1254 = vrot.lane.b32.xlu0 %v4710_v24, %s4343_s16  ;;  %s6041_s16 = smov 92  }
 0x280   : > { %1323 = vrot.lane.b32.xlu1 %v4713_v25, %s4344_s17 }
 0x282   : > { %v4723_v50 = vpop.permute.xlu1 %934  ;;  %1281 = vrot.lane.b32.xlu0 %v4718_v36, %s4332_s13  ;;  %s4345_s13 = smov 64  }
 0x284   : > { %1351 = vrot.lane.b32.xlu1 %v4721_v37, %s4345_s13 }
 0x286   : > { %1321 = vrot.lane.b32.xlu0 %v4710_v24, %s4344_s17  ;;  %s6043_s17 = smov 62  }
 0x28a   : > { %1349 = vrot.lane.b32.xlu0 %v4718_v36, %s4345_s13 }
 0x2bc   : > { %v731_v52 = vpop.permute.xlu0 %730 }
 0x2bd   : > { %v735_v54 = vpop.permute.xlu1 %734 }
 0x2c0   : > { %v733_v55 = vpop.permute.xlu0 %732 }
 0x2c1   : > { %v737_v11 = vsel %vm736_vm8, %v731_v52, %v733_v55  ;;  %v738_v45 = vsel %vm736_vm8, %v733_v55, %v735_v54 }
 0x2c2   : > { %v770_v56 = vpop.permute.xlu1 %769  ;;  %v741_v22 = vadd.f32 %v737_v11, %v724_v12  ;;  %v742_v12 = vadd.f32 %v738_v45, %v725_v9 }
 0x2c4   : > { %v774_v57 = vpop.permute.xlu0 %773 }
 0x2c6   : > { %v772_v59 = vpop.permute.xlu1 %771 }
 0x2c7   : > { %v776_v17 = vsel %vm775_vm9, %v770_v56, %v772_v59  ;;  %v777_v56 = vsel %vm775_vm9, %v772_v59, %v774_v57 }
 0x2c8   : > { %v798_v60 = vpop.permute.xlu0 %797  ;;  %v780_v44 = vadd.f32 %v776_v17, %v741_v22  ;;  %v781_v22 = vadd.f32 %v777_v56, %v742_v12 }
 0x2ca   : > { %v802_v61 = vpop.permute.xlu1 %801 }
 0x2cc   : > { %v800_v62 = vpop.permute.xlu0 %799 }
 0x2cd   : > { %v804_v46 = vsel %vm6092_vm10, %v798_v60, %v800_v62  ;;  %v805_v60 = vsel %vm6092_vm10, %v800_v62, %v802_v61 }
 0x2ce   : > { %v813_v3 = vpop.permute.xlu1 %812  ;;  %v808_v43 = vadd.f32 %v804_v46, %v780_v44  ;;  %v809_v44 = vadd.f32 %v805_v60, %v781_v22 }
 0x2d0   : > { %v817_v5 = vpop.permute.xlu0 %816 }
 0x2d2   : > { %v815_v6 = vpop.permute.xlu1 %814 }
 0x2d3   : > { %v819_v52 = vsel %vm818_vm11, %v813_v3, %v815_v6  ;;  %v820_v49 = vsel %vm818_vm11, %v815_v6, %v817_v5 }
 0x2d4   : > { %v841_v7 = vpop.permute.xlu0 %840  ;;  %v823_v14 = vadd.f32 %v819_v52, %v808_v43  ;;  %v824_v43 = vadd.f32 %v820_v49, %v809_v44 }
 0x2d6   : > { %v845_v10 = vpop.permute.xlu1 %844 }
 0x2d8   : > { %v843_v13 = vpop.permute.xlu0 %842 }
 0x2d9   : > { %v847_v11 = vsel %vm6068_vm12, %v841_v7, %v843_v13  ;;  %v848_v57 = vsel %vm6068_vm12, %v843_v13, %v845_v10  ;;  %vm1412_vm12 = vcmask 490496  }
 0x2da   : > { %v870_v51 = vpop.permute.xlu1 %869  ;;  %v851_v54 = vadd.f32 %v847_v11, %v823_v14  ;;  %v852_v62 = vadd.f32 %v848_v57, %v824_v43  ;;  %v955_v57 = vld [vmem:[%s6028_s4 + $0x10] sm:$0xff]  ;;  %v957_v43 = vld [vmem:[%s6028_s4 + $0x20] sm:$0xff] }
 0x2dc   : > { %v868_v47 = vpop.permute.xlu0 %867 }
 0x2dd   : > { %v874_v17 = vsel %vm873_vm13, %v868_v47, %v870_v51 }
 0x2de   : > { %v885_v41 = vpop.permute.xlu1 %884  ;;  %v878_v46 = vadd.f32 %v874_v17, %v851_v54 }
 0x2e0   : > { %v872_v48 = vpop.permute.xlu0 %871 }
 0x2e1   : > { %v875_v61 = vsel %vm873_vm13, %v870_v51, %v872_v48 }
 0x2e2   : > { %v913_v55 = vpop.permute.xlu1 %912  ;;  %v879_v6 = vadd.f32 %v875_v61, %v852_v62  ;;  %v960_v61 = vld [vmem:[%s6028_s4 + $0x38] sm:$0xff] }
 0x2e4   : > { %v883_v3 = vpop.permute.xlu0 %882 }
 0x2e5   : > { %v889_v45 = vsel %vm6061_vm14, %v883_v3, %v885_v41 }
 0x2e6   : > { %v893_v59 = vadd.f32 %v889_v45, %v878_v46  ;;  %v911_v7 = vpop.permute.xlu1 %910  ;;  %v956_v45 = vld [vmem:[%s6028_s4 + $0x18] sm:$0xff] }
 0x2e7   : > { %v917_v47 = vsel %vm916_vm15, %v911_v7, %v913_v55  ;;  %v959_v7 = vld [vmem:[%s6028_s4 + $0x30] sm:$0xff] }
 0x2e8   : > { %v921_v52 = vadd.f32 %v917_v47, %v893_v59  ;;  %v887_v9 = vpop.permute.xlu0 %886  ;;  %v958_v59 = vld [vmem:[%s6028_s4 + $0x28] sm:$0xff]  ;;  %v961_v47 = vld [vmem:[%s6028_s4 + $0x40] sm:$0xff] }
 0x2e9   : > { %v890_v5 = vsel %vm6061_vm14, %v885_v41, %v887_v9  ;;  %vm6080_vm14 = vcmask 752640  }
 0x2ea   : > { %v929_v56 = vmul.f32 %v4707_v23, %v921_v52  ;;  %v894_v10 = vadd.f32 %v890_v5, %v879_v6 }
 0x2ec   : > { %v937_v11 = vadd.f32 %v4723_v50, %v929_v56  ;;  %v915_v13 = vpop.permute.xlu0 %914 }
 0x2ed   : > { %v918_v12 = vsel %vm916_vm15, %v913_v55, %v915_v13 }
 0x2ee   : > { %v4041_v14 = vmul.f32 -1.442695, %v937_v11  ;;  %v922_v60 = vadd.f32 %v918_v12, %v894_v10 }
 0x2f0   : > { %v930_v51 = vmul.f32 %v4707_v23, %v922_v60  ;;  %4255 = vpow2.f32 %v4041_v14  ;;  %v953_v23 = vld [vmem:[%s6028_s4] sm:$0xff] }
 0x2f2   : > { %v938_v48 = vadd.f32 %v4723_v50, %v930_v51  ;;  %v954_v50 = vld [vmem:[%s6028_s4 + $0x8] sm:$0xff] }
 0x2f4   : > { %v4042_v17 = vmul.f32 -1.442695, %v938_v48 }
 0x2f6   : > { %4257 = vpow2.f32 %v4042_v17 }
 0x2fa   : > { %v4256_v22 = vpop.eup %4255 }
 0x2fb   : > { %v945_v41 = vadd.f32 1.0, %v4256_v22 }
 0x2fd   : > { %4259 = vrcp.f32 %v945_v41 }
 0x300   : > { %v4258_v54 = vpop.eup %4257 }
 0x301   : > { %v946_v49 = vadd.f32 1.0, %v4258_v54 }
 0x303   : > { %4261 = vrcp.f32 %v946_v49  ;;  %v4054_v49 = vld [vmem:[%s6029_s5 + $0x8] sm:$0xff] }
 0x307   : > { %v4260_v44 = vpop.eup %4259 }
 0x308   : > { %v4757_v55 = vmul.f32 %v4260_v44, %v937_v11  ;;  %v4055_v44 = vld [vmem:[%s6030_s6 + $0x8] sm:$0xff] }
 0x30d   : > { %v4262_v46 = vpop.eup %4261 }
 0x30e   : > { %v4755_v3 = vmul.f32 %v4262_v46, %v938_v48  ;;  %v4838_v46 = vpop.permute.xlu0 %1254 }
 0x30f   : > { %6097 = vst [vmem:[#allocation6_spill] sm:$0xff] %v4838_v46 }
 0x310   : > { %990 = vmatprep.subr.mxu0 %v4755_v3 }
 0x311   : > { %991 = vmatpush1.msra.mxu0 %v4757_v55 }
 0x312   : > { %4043 = vmatmul.mubr.msk.f32.vlgmr.msra.gmra.mrb[4].mxu0 %vm962_vm0, %v953_v23  ;;  %v4842_v23 = vpop.permute.xlu0 %1281 }
 0x313   : > { %1060 = vmatprep.mubr.f32.mxu0 %v6045_v0  ;;  %6099 = vst [vmem:[#allocation8_spill] sm:$0xff] %v4842_v23 }
 0x316   : > { %4044 = vmatmul.mubr.msk.f32.gmra.mrb[6].mxu0 %vm962_vm0, %v954_v50  ;;  %v4846_v50 = vpop.permute.xlu0 %1321 }
 0x317   : > { %1066 = vmatprep.mubr.f32.mxu0 %v6045_v0  ;;  %6101 = vst [vmem:[#allocation10_spill] sm:$0xff] %v4846_v50 }
 0x31a   : > { %4045 = vmatmul.mubr.msk.f32.gmra.mrb[8].mxu0 %vm962_vm0, %v955_v57 }
 0x31b   : > { %1072 = vmatprep.mubr.f32.mxu0 %v6045_v0 }
 0x31e   : > { %4046 = vmatmul.mubr.msk.f32.gmra.mrb[10].mxu0 %vm962_vm0, %v956_v45  ;;  %v4850_v45 = vpop.permute.xlu0 %1349 }
 0x31f   : > { %1078 = vmatprep.mubr.f32.mxu0 %v6045_v0  ;;  %6103 = vst [vmem:[#allocation12_spill] sm:$0xff] %v4850_v45 }
 0x322   : > { %4047 = vmatmul.mubr.msk.f32.gmra.mrb[12].mxu0 %vm962_vm0, %v957_v43 }
 0x323   : > { %1084 = vmatprep.mubr.f32.mxu0 %v6045_v0 }
 0x326   : > { %4048 = vmatmul.mubr.msk.f32.gmra.mrb[14].mxu0 %vm962_vm0, %v958_v59 }
 0x327   : > { %1090 = vmatprep.mubr.f32.mxu0 %v6045_v0 }
 0x32a   : > { %4049 = vmatmul.mubr.msk.f32.gmra.mrb[16].mxu0 %vm962_vm0, %v959_v7 }
 0x32b   : > { %1096 = vmatprep.mubr.f32.mxu0 %v6045_v0 }
 0x32e   : > { %4050 = vmatmul.mubr.msk.f32.gmra.mrb[18].mxu0 %vm962_vm0, %v960_v61 }
 0x32f   : > { %1102 = vmatprep.mubr.f32.mxu0 %v6045_v0 }
 0x332   : > { %4051 = vmatmul.mubr.msk.f32.gmra.mrb[20].mxu0 %vm962_vm0, %v961_v47 }
 0x333   : > { %2010 = vmatprep.mubr.f32.mxu0 %v6045_v0 }
 0x3e5   : > { %v1056_v62 = vpop.f32.mrb[4].mxu0 }
 0x3e6   : > { %v1058_v52 = vpop.f32.mrb[5].mxu0 }
 0x3e9   : > { %v1062_v9 = vpop.f32.mrb[6].mxu0 }
 0x3ea   : > { %1131 = vrot.lane.b32.xlu0 %v1062_v9, %s6069_s15  ;;  %v1064_v5 = vpop.f32.mrb[7].mxu0 }
 0x3eb   : > { %1133 = vrot.lane.b32.xlu1 %v1064_v5, %s6069_s15 }
 0x3ed   : > { %v1068_v6 = vpop.f32.mrb[8].mxu0 }
 0x3ee   : > { %1135 = vrot.lane.b32.xlu0 %v1068_v6, %s6069_s15  ;;  %v1070_v56 = vpop.f32.mrb[9].mxu0 }
 0x3ef   : > { %1137 = vrot.lane.b32.xlu1 %v1070_v56, %s6069_s15 }
 0x3f1   : > { %v1074_v11 = vpop.f32.mrb[10].mxu0 }
 0x3f2   : > { %1139 = vrot.lane.b32.xlu0 %v1074_v11, %s6069_s15  ;;  %v1076_v10 = vpop.f32.mrb[11].mxu0 }
 0x3f3   : > { %1141 = vrot.lane.b32.xlu1 %v1076_v10, %s6069_s15 }
 0x3f5   : > { %v1080_v13 = vpop.f32.mrb[12].mxu0 }
 0x3f6   : > { %1143 = vrot.lane.b32.xlu0 %v1080_v13, %s6069_s15  ;;  %v1082_v12 = vpop.f32.mrb[13].mxu0 }
 0x3f7   : > { %1145 = vrot.lane.b32.xlu1 %v1082_v12, %s6069_s15 }
 0x3f9   : > { %v1086_v14 = vpop.f32.mrb[14].mxu0 }
 0x3fa   : > { %1147 = vrot.lane.b32.xlu0 %v1086_v14, %s6069_s15  ;;  %v1088_v60 = vpop.f32.mrb[15].mxu0 }
 0x3fb   : > { %1149 = vrot.lane.b32.xlu1 %v1088_v60, %s6069_s15 }
 0x3fd   : > { %v1092_v51 = vpop.f32.mrb[16].mxu0 }
 0x3fe   : > { %1151 = vrot.lane.b32.xlu0 %v1092_v51, %s6069_s15  ;;  %v1094_v48 = vpop.f32.mrb[17].mxu0 }
 0x3ff   : > { %1153 = vrot.lane.b32.xlu1 %v1094_v48, %s6069_s15 }
 0x401   : > { %v1098_v17 = vpop.f32.mrb[18].mxu0 }
 0x402   : > { %1155 = vrot.lane.b32.xlu0 %v1098_v17, %s6069_s15  ;;  %v1100_v22 = vpop.f32.mrb[19].mxu0 }
 0x403   : > { %1157 = vrot.lane.b32.xlu1 %v1100_v22, %s6069_s15 }
 0x405   : > { %v1104_v41 = vpop.f32.mrb[20].mxu0 }
 0x406   : > { %1159 = vrot.lane.b32.xlu0 %v1104_v41, %s6069_s15  ;;  %v1106_v54 = vpop.f32.mrb[21].mxu0 }
 0x407   : > { %1161 = vrot.lane.b32.xlu1 %v1106_v54, %s6069_s15 }
 0x40a   : > { %1391 = vrot.lane.b32.xlu0 %v4710_v24, %s6083_s18  ;;  %v4840_v24 = vpop.permute.xlu1 %1256 }
 0x40b   : > { %1393 = vrot.lane.b32.xlu1 %v4713_v25, %s6083_s18  ;;  %6098 = vst [vmem:[#allocation7_spill] sm:$0xff] %v4840_v24  ;;  %v4870_v60 = vsel %vm337_vm1, %v4838_v46, %v4840_v24  ;;  %vm1325_vm1 = vcmask 293888  }
 0x40c   : > { %6105 = vst [vmem:[#allocation14_spill] sm:$0xff] %v4870_v60 }
 0x40e   : > { %1127 = vrot.lane.b32.xlu0 %v1056_v62, %s6069_s15  ;;  %v4844_v25 = vpop.permute.xlu1 %1283 }
 0x40f   : > { %1129 = vrot.lane.b32.xlu1 %v1058_v52, %s6069_s15  ;;  %6100 = vst [vmem:[#allocation9_spill] sm:$0xff] %v4844_v25  ;;  %s4352_s15 = smov 72  }
 0x412   : > { %v4848_v57 = vpop.permute.xlu1 %1323 }
 0x413   : > { %1423 = vperm.xlu1 %4253, %v4054_v49   ;;  %6102 = vst [vmem:[#allocation11_spill] sm:$0xff] %v4848_v57 }
 0x416   : > { %v4852_v43 = vpop.permute.xlu1 %1351 }
 0x417   : > { %1432 = vperm.xlu1 %4253, %v4055_v44   ;;  %6104 = vst [vmem:[#allocation13_spill] sm:$0xff] %v4852_v43  ;;  %v4883_v44 = vsel %vm461_vm2, %v4842_v23, %v4844_v25 }
 0x418   : > { %6106 = vst [vmem:[#allocation15_spill] sm:$0xff] %v4883_v44 }
 0x45c   : > { %v1132_v59 = vpop.permute.xlu0 %1131 }
 0x45d   : > { %v1134_v7 = vpop.permute.xlu1 %1133  ;;  %v1196_v61 = vsel %vm6067_vm7, 0.0, %v1132_v59 }
 0x45e   : > { %1231 = vrot.lane.b32.xlu0 %v1196_v61, %s4336_s21  ;;  %v1204_v47 = vsel %vm6067_vm7, %v1134_v7, 0.0  ;;  %v1164_v5 = vsel %vm6067_vm7, %v1132_v59, %v1134_v7 }
 0x45f   : > { %1235 = vrot.lane.b32.xlu1 %v1204_v47, %s4336_s21 }
 0x460   : > { %v1136_v62 = vpop.permute.xlu0 %1135 }
 0x461   : > { %v1197_v52 = vsel %vm6067_vm7, 0.0, %v1136_v62  ;;  %v1138_v9 = vpop.permute.xlu1 %1137 }
 0x462   : > { %v1205_v6 = vsel %vm6067_vm7, %v1138_v9, 0.0  ;;  %1233 = vrot.lane.b32.xlu0 %v1164_v5, %s4336_s21  ;;  %v1262_v56 = vmul.f32 %v4838_v46, %v1197_v52  ;;  %v1165_v11 = vsel %vm6067_vm7, %v1136_v62, %v1138_v9 }
 0x463   : > { %v1264_v10 = vmul.f32 %v4840_v24, %v1205_v6  ;;  %v1263_v51 = vmul.f32 %v4870_v60, %v1165_v11 }
 0x464   : > { %v1140_v13 = vpop.permute.xlu0 %1139  ;;  %1268 = vrot.lane.b32.xlu1 %v1262_v56, %s4347_s11 }
 0x465   : > { %v1198_v12 = vsel %vm6067_vm7, 0.0, %v1140_v13  ;;  %v1142_v14 = vpop.permute.xlu1 %1141 }
 0x466   : > { %1272 = vrot.lane.b32.xlu0 %v1264_v10, %s4347_s11  ;;  %v1206_v48 = vsel %vm6067_vm7, %v1142_v14, 0.0  ;;  %v1289_v22 = vmul.f32 %v4842_v23, %v1198_v12  ;;  %v1166_v41 = vsel %vm6067_vm7, %v1140_v13, %v1142_v14 }
 0x467   : > { %v1291_v49 = vmul.f32 %v4844_v25, %v1206_v48  ;;  %v1290_v7 = vmul.f32 %v4883_v44, %v1166_v41 }
 0x468   : > { %v1144_v17 = vpop.permute.xlu0 %1143  ;;  %1270 = vrot.lane.b32.xlu1 %v1263_v51, %s4347_s11  ;;  %v4902_v51 = vsel %vm1325_vm1, %v4846_v50, %v4848_v57  ;;  %vm1274_vm1 = vcmask 1014784  }
 0x469   : > { %v1146_v54 = vpop.permute.xlu1 %1145  ;;  %v1199_v47 = vsel %vm6067_vm7, 0.0, %v1144_v17  ;;  %6107 = vst [vmem:[#allocation16_spill] sm:$0xff] %v4902_v51 }
 0x46a   : > { %1295 = vrot.lane.b32.xlu0 %v1289_v22, %s4340_s25  ;;  %v1207_v5 = vsel %vm6067_vm7, %v1146_v54, 0.0  ;;  %v1167_v56 = vsel %vm6067_vm7, %v1144_v17, %v1146_v54  ;;  %v4911_v54 = vsel %vm1353_vm4, %v4850_v45, %v4852_v43 }
 0x46b   : > { %6108 = vst [vmem:[#allocation17_spill] sm:$0xff] %v4911_v54 }
 0x46c   : > { %v1148_v59 = vpop.permute.xlu0 %1147  ;;  %1299 = vrot.lane.b32.xlu1 %v1291_v49, %s4340_s25 }
 0x46d   : > { %v1150_v61 = vpop.permute.xlu1 %1149  ;;  %v1200_v52 = vsel %vm6067_vm7, 0.0, %v1148_v59 }
 0x46e   : > { %1297 = vrot.lane.b32.xlu0 %v1290_v7, %s4340_s25  ;;  %v1208_v6 = vsel %vm6067_vm7, %v1150_v61, 0.0  ;;  %v1330_v11 = vmul.f32 %v4846_v50, %v1200_v52  ;;  %v1168_v13 = vsel %vm6067_vm7, %v1148_v59, %v1150_v61 }
 0x46f   : > { %v1332_v14 = vmul.f32 %v4848_v57, %v1208_v6  ;;  %v1331_v17 = vmul.f32 %v4902_v51, %v1168_v13 }
 0x470   : > { %v1152_v62 = vpop.permute.xlu0 %1151  ;;  %1309 = vrot.lane.b32.xlu1 %v1199_v47, %s6071_s29 }
 0x471   : > { %v1154_v9 = vpop.permute.xlu1 %1153  ;;  %v1201_v41 = vsel %vm6067_vm7, 0.0, %v1152_v62 }
 0x472   : > { %1313 = vrot.lane.b32.xlu0 %v1207_v5, %s6071_s29  ;;  %v1169_v48 = vsel %vm6067_vm7, %v1152_v62, %v1154_v9  ;;  %v1358_v7 = vmul.f32 %v4850_v45, %v1201_v41  ;;  %v1209_v61 = vsel %vm6067_vm7, %v1154_v9, 0.0 }
 0x473   : > { %v1359_v59 = vmul.f32 %v4911_v54, %v1169_v48 }
 0x474   : > { %v1156_v10 = vpop.permute.xlu0 %1155  ;;  %1311 = vrot.lane.b32.xlu1 %v1167_v56, %s6071_s29  ;;  %v1360_v56 = vmul.f32 %v4852_v43, %v1209_v61  ;;  %s6184_s29 = smov 68  }
 0x475   : > { %v1158_v12 = vpop.permute.xlu1 %1157  ;;  %v1202_v13 = vsel %vm6067_vm7, 0.0, %v1156_v10 }
 0x476   : > { %1336 = vrot.lane.b32.xlu0 %v1330_v11, %s6041_s16  ;;  %v1170_v5 = vsel %vm6067_vm7, %v1156_v10, %v1158_v12  ;;  %v4077_v10 = vld [vmem:[%s6031_s7 + $0xa] sm:$0x3] }
 0x478   : > { %v1160_v22 = vpop.permute.xlu0 %1159  ;;  %1340 = vrot.lane.b32.xlu1 %v1332_v14, %s6041_s16 }
 0x479   : > { %v1162_v49 = vpop.permute.xlu1 %1161  ;;  %v1203_v9 = vsel %vm6067_vm7, 0.0, %v1160_v22 }
 0x47a   : > { %1338 = vrot.lane.b32.xlu0 %v1331_v17, %s6041_s16  ;;  %v1171_v47 = vsel %vm6067_vm7, %v1160_v22, %v1162_v49  ;;  %v1211_v48 = vsel %vm6067_vm7, %v1162_v49, 0.0  ;;  %v1210_v17 = vsel %vm6067_vm7, %v1158_v12, 0.0  ;;  %v4954_v49 = vrot.slane %v4077_v10, %v4453_v16 }
 0x47b   : > { %v4957_v12 = vrot.slane %v4077_v10, %v4451_v15 }
 0x47c   : > { %1366 = vrot.lane.b32.xlu1 %v1359_v59, %s4345_s13  ;;  %v4919_v62 = vpop.permute.xlu0 %1391  ;;  %v4076_v59 = vld [vmem:[%s6031_s7 + $0x8] sm:$0x3] }
 0x47d   : > { %6109 = vst [vmem:[#allocation18_spill] sm:$0xff] %v4919_v62  ;;  %v4921_v52 = vpop.permute.xlu1 %1393  ;;  %v1400_v14 = vmul.f32 %v4919_v62, %v1203_v9  ;;  %v4964_v61 = vrot.slane %v4076_v59, %v4453_v16 }
 0x47e   : > { %6110 = vst [vmem:[#allocation19_spill] sm:$0xff] %v4921_v52  ;;  %v4927_v6 = vsel %vm1395_vm6, %v4919_v62, %v4921_v52  ;;  %1364 = vrot.lane.b32.xlu0 %v1358_v7, %s4345_s13  ;;  %v1402_v41 = vmul.f32 %v4921_v52, %v1211_v48 }
 0x47f   : > { %6111 = vst [vmem:[#allocation20_spill] sm:$0xff] %v4927_v6  ;;  %v1401_v11 = vmul.f32 %v4927_v6, %v1171_v47  ;;  %v4967_v47 = vrot.slane %v4076_v59, %v4451_v15 }
 0x480   : > { %1380 = vrot.lane.b32.xlu1 %v1170_v5, %s6043_s17  ;;  %v1128_v5 = vpop.permute.xlu0 %1127 }
 0x481   : > { %v1130_v22 = vpop.permute.xlu1 %1129  ;;  %v1195_v43 = vsel %vm6067_vm7, 0.0, %v1128_v5 }
 0x482   : > { %1368 = vrot.lane.b32.xlu0 %v1360_v56, %s4345_s13  ;;  %v1225_v51 = vmul.f32 %v4718_v36, %v1195_v43  ;;  %v1163_v23 = vsel %vm6067_vm7, %v1128_v5, %v1130_v22  ;;  %vm6073_vm7 = vcmask 506880  }
 0x484   : > { %1408 = vrot.lane.b32.xlu1 %v1401_v11, %s4350_s19 }
 0x486   : > { %1378 = vrot.lane.b32.xlu0 %v1202_v13, %s6043_s17 }
 0x488   : > { %1406 = vrot.lane.b32.xlu1 %v1400_v14, %s4350_s19 }
 0x48a   : > { %1382 = vrot.lane.b32.xlu0 %v1210_v17, %s6043_s17  ;;  %s4351_s17 = smov 8  }
 0x48c   : > { %1748 = vrot.lane.b32.xlu1 %v4957_v12, %s4351_s17 }
 0x48e   : > { %1410 = vrot.lane.b32.xlu0 %v1402_v41, %s4350_s19 }
 0x490   : > { %1775 = vrot.lane.b32.xlu1 %v4967_v47, %s4345_s13 }
 0x492   : > { %v4951_v7 = vpop.permute.xlu1 %1423  ;;  %1746 = vrot.lane.b32.xlu0 %v4954_v49, %s4351_s17 }
 0x494   : > { %1815 = vrot.lane.b32.xlu1 %v4957_v12, %s4352_s15 }
 0x496   : > { %v4969_v56 = vpop.permute.xlu1 %1432  ;;  %1773 = vrot.lane.b32.xlu0 %v4964_v61, %s4345_s13 }
 0x49a   : > { %1813 = vrot.lane.b32.xlu0 %v4954_v49, %s4352_s15  ;;  %s6081_s15 = smov 56  }
 0x4d0   : > { %v1232_v11 = vpop.permute.xlu0 %1231 }
 0x4d1   : > { %v1236_v9 = vpop.permute.xlu1 %1235 }
 0x4d4   : > { %v1234_v13 = vpop.permute.xlu0 %1233 }
 0x4d5   : > { %v1237_v54 = vsel %vm775_vm9, %v1232_v11, %v1234_v13  ;;  %v1238_v20 = vsel %vm775_vm9, %v1234_v13, %v1236_v9  ;;  %v1226_v11 = vmul.f32 %v4721_v37, %v1163_v23 }
 0x4d6   : > { %v1269_v14 = vpop.permute.xlu1 %1268  ;;  %v1241_v44 = vadd.f32 %v1237_v54, %v1225_v51 }
 0x4d7   : > { %v1242_v54 = vadd.f32 %v1238_v20, %v1226_v11 }
 0x4d8   : > { %v1273_v48 = vpop.permute.xlu0 %1272 }
 0x4da   : > { %v1271_v17 = vpop.permute.xlu1 %1270 }
 0x4db   : > { %v1275_v50 = vsel %vm1274_vm1, %v1269_v14, %v1271_v17  ;;  %v1276_v36 = vsel %vm1274_vm1, %v1271_v17, %v1273_v48 }
 0x4dc   : > { %v1296_v41 = vpop.permute.xlu0 %1295  ;;  %v1279_v24 = vadd.f32 %v1275_v50, %v1241_v44  ;;  %v1280_v44 = vadd.f32 %v1276_v36, %v1242_v54 }
 0x4de   : > { %v1300_v10 = vpop.permute.xlu1 %1299 }
 0x4e0   : > { %v1298_v0 = vpop.permute.xlu0 %1297 }
 0x4e1   : > { %v1301_v60 = vsel %vm873_vm13, %v1296_v41, %v1298_v0  ;;  %v1302_v5 = vsel %vm873_vm13, %v1298_v0, %v1300_v10 }
 0x4e2   : > { %v1310_v59 = vpop.permute.xlu1 %1309  ;;  %v1305_v2 = vadd.f32 %v1301_v60, %v1279_v24  ;;  %v1306_v23 = vadd.f32 %v1302_v5, %v1280_v44 }
 0x4e4   : > { %v1314_v52 = vpop.permute.xlu0 %1313 }
 0x4e6   : > { %v1312_v62 = vpop.permute.xlu1 %1311 }
 0x4e7   : > { %v1315_v21 = vsel %vm916_vm15, %v1310_v59, %v1312_v62  ;;  %v1316_v13 = vsel %vm916_vm15, %v1312_v62, %v1314_v52 }
 0x4e8   : > { %v1337_v6 = vpop.permute.xlu0 %1336  ;;  %v1319_v14 = vadd.f32 %v1315_v21, %v1305_v2  ;;  %v1320_v21 = vadd.f32 %v1316_v13, %v1306_v23 }
 0x4ea   : > { %v1341_v45 = vpop.permute.xlu1 %1340 }
 0x4ec   : > { %v1339_v57 = vpop.permute.xlu0 %1338 }
 0x4ed   : > { %v1343_v51 = vsel %vm6080_vm14, %v1337_v6, %v1339_v57  ;;  %v1344_v48 = vsel %vm6080_vm14, %v1339_v57, %v1341_v45  ;;  %vm1834_vm14 = vcmask 457728  }
 0x4ee   : > { %v1367_v25 = vpop.permute.xlu1 %1366  ;;  %v1347_v41 = vadd.f32 %v1343_v51, %v1319_v14 }
 0x4f0   : > { %v1365_v46 = vpop.permute.xlu0 %1364 }
 0x4f1   : > { %v1370_v50 = vsel %vm1353_vm4, %v1365_v46, %v1367_v25  ;;  %v1348_v46 = vadd.f32 %v1344_v48, %v1320_v21  ;;  %v6114_v21 = vmax.f32 %v4486_v38, 0.0  ;;  %v4059_v38 = vld [vmem:[%s6028_s4 + $0x50] sm:$0xff] }
 0x4f2   : > { %v1381_v43 = vpop.permute.xlu1 %1380  ;;  %v1374_v24 = vadd.f32 %v1370_v50, %v1347_v41 }
 0x4f4   : > { %v1369_v22 = vpop.permute.xlu0 %1368 }
 0x4f5   : > { %v1371_v0 = vsel %vm1353_vm4, %v1367_v25, %v1369_v22 }
 0x4f6   : > { %v1409_v9 = vpop.permute.xlu1 %1408  ;;  %v1375_v52 = vadd.f32 %v1371_v0, %v1348_v46  ;;  %v4063_v46 = vld [vmem:[%s6028_s4 + $0x70] sm:$0xff] }
 0x4f8   : > { %v1379_v60 = vpop.permute.xlu0 %1378 }
 0x4f9   : > { %v1385_v20 = vsel %vm6073_vm7, %v1379_v60, %v1381_v43 }
 0x4fa   : > { %v1389_v2 = vadd.f32 %v1385_v20, %v1374_v24  ;;  %v1407_v6 = vpop.permute.xlu1 %1406 }
 0x4fb   : > { %v1413_v36 = vsel %vm1412_vm12, %v1407_v6, %v1409_v9  ;;  %v6115_v6 = vmax.f32 %v4482_v34, 0.0  ;;  %v4060_v34 = vld [vmem:[%s6028_s4 + $0x58] sm:$0xff] }
 0x4fc   : > { %v1417_v17 = vadd.f32 %v1413_v36, %v1389_v2  ;;  %v1383_v10 = vpop.permute.xlu0 %1382  ;;  %v6116_v36 = vmov 0.0  }
 0x4fd   : > { %v1386_v62 = vsel %vm6073_vm7, %v1381_v43, %v1383_v10  ;;  %v5018_v0 = vadd.f32 %v4757_v55, %v6115_v6  ;;  %v4062_v55 = vld [vmem:[%s6028_s4 + $0x68] sm:$0xff]  ;;  %v4065_v10 = vld [vmem:[%s6028_s4 + $0x80] sm:$0xff]  ;;  %vm1817_vm7 = vcmask 588800  }
 0x4fe   : > { %v1426_v59 = vmul.f32 %v4951_v7, %v1417_v17  ;;  %v1390_v57 = vadd.f32 %v1386_v62, %v1375_v52  ;;  %v4064_v17 = vld [vmem:[%s6028_s4 + $0x78] sm:$0xff]  ;;  %v4066_v62 = vld [vmem:[%s6028_s4 + $0x88] sm:$0xff] }
 0x500   : > { %v1435_v11 = vadd.f32 %v4969_v56, %v1426_v59  ;;  %v1411_v45 = vpop.permute.xlu0 %1410 }
 0x501   : > { %v1414_v51 = vsel %vm1412_vm12, %v1409_v9, %v1411_v45  ;;  %v4058_v9 = vld [vmem:[%s6028_s4 + $0x48] sm:$0xff] }
 0x502   : > { %v4056_v54 = vmul.f32 -1.442695, %v1435_v11  ;;  %v1418_v14 = vadd.f32 %v1414_v51, %v1390_v57 }
 0x504   : > { %4263 = vpow2.f32 %v4056_v54  ;;  %v1427_v25 = vmul.f32 %v4951_v7, %v1418_v14  ;;  %v6112_v7 = vmax.f32 %v4484_v35, 0.0 }
 0x506   : > { %v1436_v22 = vadd.f32 %v4969_v56, %v1427_v25  ;;  %v6113_v56 = vmax.f32 %v4478_v30, 0.0 }
 0x508   : > { %v4057_v5 = vmul.f32 -1.442695, %v1436_v22  ;;  %v5009_v20 = vadd.f32 %v4755_v3, %v6113_v56  ;;  %v4061_v3 = vld [vmem:[%s6028_s4 + $0x60] sm:$0xff] }
 0x50a   : > { %4265 = vpow2.f32 %v4057_v5 }
 0x50e   : > { %v4264_v50 = vpop.eup %4263 }
 0x50f   : > { %v1443_v43 = vadd.f32 1.0, %v4264_v50 }
 0x511   : > { %4267 = vrcp.f32 %v1443_v43 }
 0x514   : > { %v4266_v44 = vpop.eup %4265 }
 0x515   : > { %v1444_v41 = vadd.f32 1.0, %v4266_v44 }
 0x517   : > { %4269 = vrcp.f32 %v1444_v41 }
 0x51b   : > { %v4268_v13 = vpop.eup %4267 }
 0x51c   : > { %v1449_v23 = vmul.f32 %v4268_v13, %v1435_v11 }
 0x51e   : > { %v5004_v48 = vadd.f32 %v1449_v23, %v6112_v7 }
 0x520   : > { %v4208_v30 = vpack.c.bf16 %v5004_v48, %v5018_v0 }
 0x521   : > { %v4270_v24 = vpop.eup %4269 }
 0x522   : > { %v1450_v60 = vmul.f32 %v4270_v24, %v1436_v22  ;;  %v4078_v24 = vld [vmem:[%s6029_s5 + $0x10] sm:$0xff] }
 0x524   : > { %1488 = vmatprep.subr.mxu1 %v1450_v60  ;;  %v5013_v2 = vadd.f32 %v1450_v60, %v6114_v21  ;;  %v5094_v60 = vpop.permute.xlu0 %1746 }
 0x525   : > { %1489 = vmatpush1.msra.mxu1 %v1449_v23  ;;  %v4079_v23 = vld [vmem:[%s6030_s6 + $0x10] sm:$0xff] }
 0x526   : > { %4067 = vmatmul.mubr.msk.f32.vlgmr.msra.gmra.mrb[22].mxu1 %vm962_vm0, %v4058_v9  ;;  %v4206_v35 = vpack.c.bf16 %v5013_v2, %v5009_v20  ;;  %v5096_v9 = vpop.permute.xlu1 %1748 }
 0x527   : > { %1558 = vmatprep.mubr.f32.mxu1 %v6116_v36 }
 0x528   : > { %4207 = vmatprep.subr.bf16.mxu1 %v4206_v35  ;;  %v5098_v7 = vpop.permute.xlu0 %1773 }
 0x529   : > { %4209 = vmatpush1.bf16.msra.mxu1 %v4208_v30  ;;  %6117 = vst [vmem:[#allocation21_spill] sm:$0xff] %v5098_v7 }
 0x52a   : > { %4068 = vmatmul.mubr.msk.f32.gmra.mrb[24].mxu1 %vm962_vm0, %v4059_v38  ;;  %v5100_v56 = vpop.permute.xlu1 %1775 }
 0x52b   : > { %1564 = vmatprep.mubr.f32.mxu1 %v6116_v36  ;;  %6118 = vst [vmem:[#allocation22_spill] sm:$0xff] %v5100_v56 }
 0x52c   : > { %v5102_v21 = vpop.permute.xlu0 %1813 }
 0x52d   : > { %6119 = vst [vmem:[#allocation23_spill] sm:$0xff] %v5102_v21 }
 0x52e   : > { %4069 = vmatmul.mubr.msk.f32.gmra.mrb[26].mxu1 %vm962_vm0, %v4060_v34  ;;  %v5104_v6 = vpop.permute.xlu1 %1815 }
 0x52f   : > { %1570 = vmatprep.mubr.f32.mxu1 %v6116_v36  ;;  %6120 = vst [vmem:[#allocation24_spill] sm:$0xff] %v5104_v6 }
 0x532   : > { %4070 = vmatmul.mubr.msk.f32.gmra.mrb[28].mxu1 %vm962_vm0, %v4061_v3 }
 0x533   : > { %1576 = vmatprep.mubr.f32.mxu1 %v6116_v36 }
 0x536   : > { %4071 = vmatmul.mubr.msk.f32.gmra.mrb[30].mxu1 %vm962_vm0, %v4062_v55 }
 0x537   : > { %1582 = vmatprep.mubr.f32.mxu1 %v6116_v36 }
 0x53a   : > { %4072 = vmatmul.mubr.msk.f32.gmra.mrb[32].mxu1 %vm962_vm0, %v4063_v46 }
 0x53b   : > { %1588 = vmatprep.mubr.f32.mxu1 %v6116_v36 }
 0x53e   : > { %4073 = vmatmul.mubr.msk.f32.gmra.mrb[34].mxu1 %vm962_vm0, %v4064_v17 }
 0x53f   : > { %1594 = vmatprep.mubr.f32.mxu1 %v6116_v36 }
 0x542   : > { %4074 = vmatmul.mubr.msk.f32.gmra.mrb[36].mxu1 %vm962_vm0, %v4065_v10 }
 0x543   : > { %1600 = vmatprep.mubr.f32.mxu1 %v6116_v36 }
 0x546   : > { %4075 = vmatmul.mubr.msk.f32.gmra.mrb[38].mxu1 %vm962_vm0, %v4066_v62 }
 0x547   : > { %2427 = vmatprep.mubr.f32.mxu1 %v6116_v36 }
 0x5f9   : > { %v1554_v52 = vpop.f32.mrb[22].mxu1 }
 0x5fa   : > { %v1556_v59 = vpop.f32.mrb[23].mxu1 }
 0x5fd   : > { %v1560_v11 = vpop.f32.mrb[24].mxu1 }
 0x5fe   : > { %1629 = vrot.lane.b32.xlu0 %v1560_v11, %s6083_s18  ;;  %v1562_v57 = vpop.f32.mrb[25].mxu1 }
 0x5ff   : > { %1631 = vrot.lane.b32.xlu1 %v1562_v57, %s6083_s18  ;;  %v5121_v57 = vsel %vm962_vm0, %v5094_v60, %v5096_v9 }
 0x601   : > { %v1566_v45 = vpop.f32.mrb[26].mxu1 }
 0x602   : > { %1633 = vrot.lane.b32.xlu0 %v1566_v45, %s6083_s18  ;;  %v1568_v51 = vpop.f32.mrb[27].mxu1 }
 0x603   : > { %1635 = vrot.lane.b32.xlu1 %v1568_v51, %s6083_s18 }
 0x605   : > { %v1572_v54 = vpop.f32.mrb[28].mxu1 }
 0x606   : > { %1637 = vrot.lane.b32.xlu0 %v1572_v54, %s6083_s18  ;;  %v1574_v49 = vpop.f32.mrb[29].mxu1 }
 0x607   : > { %1639 = vrot.lane.b32.xlu1 %v1574_v49, %s6083_s18 }
 0x609   : > { %v1578_v12 = vpop.f32.mrb[30].mxu1 }
 0x60a   : > { %1641 = vrot.lane.b32.xlu0 %v1578_v12, %s6083_s18  ;;  %v1580_v14 = vpop.f32.mrb[31].mxu1 }
 0x60b   : > { %1643 = vrot.lane.b32.xlu1 %v1580_v14, %s6083_s18 }
 0x60d   : > { %v1584_v25 = vpop.f32.mrb[32].mxu1 }
 0x60e   : > { %1645 = vrot.lane.b32.xlu0 %v1584_v25, %s6083_s18  ;;  %v1586_v22 = vpop.f32.mrb[33].mxu1 }
 0x60f   : > { %1647 = vrot.lane.b32.xlu1 %v1586_v22, %s6083_s18 }
 0x611   : > { %v1590_v5 = vpop.f32.mrb[34].mxu1 }
 0x612   : > { %v1592_v50 = vpop.f32.mrb[35].mxu1 }
 0x615   : > { %v1596_v43 = vpop.f32.mrb[36].mxu1 }
 0x616   : > { %v1598_v44 = vpop.f32.mrb[37].mxu1 }
 0x617   : > { %1655 = vrot.lane.b32.xlu0 %v1598_v44, %s6083_s18 }
 0x619   : > { %v1602_v41 = vpop.f32.mrb[38].mxu1 }
 0x61a   : > { %v1604_v13 = vpop.f32.mrb[39].mxu1 }
 0x61b   : > { %1653 = vrot.lane.b32.xlu0 %v1596_v43, %s6083_s18  ;;  %1659 = vrot.lane.b32.xlu1 %v1604_v13, %s6083_s18 }
 0x61f   : > { %1625 = vrot.lane.b32.xlu0 %v1554_v52, %s6083_s18  ;;  %1657 = vrot.lane.b32.xlu1 %v1602_v41, %s6083_s18 }
 0x623   : > { %1651 = vrot.lane.b32.xlu0 %v1592_v50, %s6083_s18  ;;  %1627 = vrot.lane.b32.xlu1 %v1556_v59, %s6083_s18  ;;  %v5135_v50 = vsel %vm1353_vm4, %v5098_v7, %v5100_v56 }
 0x624   : > { %6121 = vst [vmem:[#allocation25_spill] sm:$0xff] %v5135_v50 }
 0x627   : > { %1890 = vperm.xlu0 %4252, %v4079_v23   ;;  %1649 = vrot.lane.b32.xlu1 %v1590_v5, %s6083_s18 }
 0x62b   : > { %1881 = vperm.xlu1 %4253, %v4078_v24  }
 0x62f   : > { %1851 = vrot.lane.b32.xlu1 %v6116_v36, %s4347_s11 }
 0x670   : > { %v1630_v35 = vpop.permute.xlu0 %1629 }
 0x671   : > { %v1632_v30 = vpop.permute.xlu1 %1631  ;;  %v1691_v38 = vsel %vm1395_vm6, 0.0, %v1630_v35 }
 0x672   : > { %1723 = vrot.lane.b32.xlu0 %v1691_v38, %s4347_s11  ;;  %v1696_v34 = vsel %vm1395_vm6, %v1632_v30, 0.0  ;;  %v1662_v17 = vsel %vm1395_vm6, %v1630_v35, %v1632_v30 }
 0x673   : > { %1727 = vrot.lane.b32.xlu1 %v1696_v34, %s4347_s11  ;;  %v5151_v34 = vsel %vm1817_vm7, %v5102_v21, %v5104_v6  ;;  %vm1766_vm7 = vcmask 982016  }
 0x674   : > { %v1634_v3 = vpop.permute.xlu0 %1633  ;;  %6122 = vst [vmem:[#allocation26_spill] sm:$0xff] %v5151_v34 }
 0x675   : > { %v1692_v55 = vsel %vm1395_vm6, 0.0, %v1634_v3  ;;  %v1636_v46 = vpop.permute.xlu1 %1635 }
 0x676   : > { %v1754_v10 = vmul.f32 %v5094_v60, %v1692_v55  ;;  %v1697_v62 = vsel %vm1395_vm6, %v1636_v46, 0.0  ;;  %1725 = vrot.lane.b32.xlu0 %v1662_v17, %s4347_s11  ;;  %v1663_v52 = vsel %vm1395_vm6, %v1634_v3, %v1636_v46 }
 0x677   : > { %v1756_v59 = vmul.f32 %v5096_v9, %v1697_v62  ;;  %v1755_v54 = vmul.f32 %v5121_v57, %v1663_v52 }
 0x678   : > { %v1638_v11 = vpop.permute.xlu0 %1637  ;;  %1760 = vrot.lane.b32.xlu1 %v1754_v10, %s4353_s30 }
 0x679   : > { %v1693_v45 = vsel %vm1395_vm6, 0.0, %v1638_v11  ;;  %v1640_v51 = vpop.permute.xlu1 %1639 }
 0x67a   : > { %1764 = vrot.lane.b32.xlu0 %v1756_v59, %s4353_s30  ;;  %v1698_v49 = vsel %vm1395_vm6, %v1640_v51, 0.0  ;;  %v1781_v12 = vmul.f32 %v5098_v7, %v1693_v45  ;;  %v1664_v25 = vsel %vm1395_vm6, %v1638_v11, %v1640_v51  ;;  %v1861_v51 = vmul.f32 0.0, %v5096_v9 }
 0x67b   : > { %v1783_v22 = vmul.f32 %v5100_v56, %v1698_v49  ;;  %v1782_v43 = vmul.f32 %v5135_v50, %v1664_v25  ;;  %v5174_v25 = vld [vmem:[%s6031_s7 + $0xe] sm:$0x3] }
 0x67c   : > { %v1642_v14 = vpop.permute.xlu0 %1641  ;;  %1762 = vrot.lane.b32.xlu1 %v1755_v54, %s4353_s30 }
 0x67d   : > { %v1644_v5 = vpop.permute.xlu1 %1643  ;;  %v1694_v44 = vsel %vm1395_vm6, 0.0, %v1642_v14 }
 0x67e   : > { %1787 = vrot.lane.b32.xlu0 %v1781_v12, %s4345_s13  ;;  %v1699_v24 = vsel %vm1395_vm6, %v1644_v5, 0.0  ;;  %v1665_v30 = vsel %vm1395_vm6, %v1642_v14, %v1644_v5 }
 0x680   : > { %1791 = vrot.lane.b32.xlu1 %v1783_v22, %s4345_s13  ;;  %v1646_v41 = vpop.permute.xlu0 %1645  ;;  %v2186_v22 = vrot.slane %v5174_v25, %v4453_v16 }
 0x681   : > { %v1648_v13 = vpop.permute.xlu1 %1647  ;;  %v1695_v23 = vsel %vm1395_vm6, 0.0, %v1646_v41 }
 0x682   : > { %1789 = vrot.lane.b32.xlu0 %v1782_v43, %s4345_s13  ;;  %v1666_v35 = vsel %vm1395_vm6, %v1646_v41, %v1648_v13  ;;  %v1822_v38 = vmul.f32 %v5102_v21, %v1695_v23  ;;  %v1700_v3 = vsel %vm1395_vm6, %v1648_v13, 0.0 }
 0x683   : > { %v1823_v46 = vmul.f32 %v5151_v34, %v1666_v35  ;;  %v1824_v17 = vmul.f32 %v5104_v6, %v1700_v3 }
 0x684   : > { %1801 = vrot.lane.b32.xlu1 %v1694_v44, %s4350_s19 }
 0x686   : > { %1805 = vrot.lane.b32.xlu0 %v1699_v24, %s4350_s19 }
 0x688   : > { %1803 = vrot.lane.b32.xlu1 %v1665_v30, %s4350_s19 }
 0x689   : > { %v1656_v55 = vpop.permute.xlu0 %1655 }
 0x68a   : > { %1828 = vrot.lane.b32.xlu0 %v1822_v38, %s6081_s15  ;;  %v1702_v11 = vsel %vm1395_vm6, %v1656_v55, 0.0 }
 0x68c   : > { %1830 = vrot.lane.b32.xlu1 %v1823_v46, %s6081_s15 }
 0x68d   : > { %v1654_v10 = vpop.permute.xlu0 %1653  ;;  %v1660_v62 = vpop.permute.xlu1 %1659 }
 0x68e   : > { %v1668_v52 = vsel %vm1395_vm6, %v1654_v10, %v1656_v55  ;;  %1832 = vrot.lane.b32.xlu0 %v1824_v17, %s6081_s15  ;;  %v1703_v59 = vsel %vm1395_vm6, %v1660_v62, 0.0  ;;  %s6139_s15 = smov 34  }
 0x68f   : > { %v1860_v54 = vmul.f32 %v5121_v57, %v1703_v59 }
 0x690   : > { %1847 = vrot.lane.b32.xlu1 %v1668_v52, %s4347_s11 }
 0x691   : > { %v1658_v45 = vpop.permute.xlu1 %1657  ;;  %v1626_v5 = vpop.permute.xlu0 %1625 }
 0x692   : > { %1849 = vrot.lane.b32.xlu0 %v1702_v11, %s4347_s11  ;;  %v1669_v49 = vsel %vm1395_vm6, %v1658_v45, %v1660_v62 }
 0x693   : > { %v1859_v12 = vmul.f32 %v5094_v60, %v1669_v49 }
 0x694   : > { %1869 = vrot.lane.b32.xlu1 %v1861_v51, %s4353_s30  ;;  %v1690_v51 = vsel %vm1395_vm6, 0.0, %v1626_v5 }
 0x695   : > { %v1628_v14 = vpop.permute.xlu1 %1627  ;;  %v1652_v41 = vpop.permute.xlu0 %1651  ;;  %v1717_v34 = vmul.f32 %v4964_v61, %v1690_v51 }
 0x696   : > { %1867 = vrot.lane.b32.xlu0 %v1860_v54, %s4353_s30  ;;  %v1661_v62 = vsel %vm1395_vm6, %v1626_v5, %v1628_v14  ;;  %v1701_v5 = vsel %vm1395_vm6, %v1652_v41, 0.0 }
 0x697   : > { %v1718_v11 = vmul.f32 %v4967_v47, %v1661_v62  ;;  %v1842_v51 = vmul.f32 %v4967_v47, %v1701_v5 }
 0x698   : > { %2191 = vrot.lane.b32.xlu1 %v2186_v22, %s4330_s12 }
 0x699   : > { %v1650_v43 = vpop.permute.xlu1 %1649 }
 0x69a   : > { %1865 = vrot.lane.b32.xlu0 %v1859_v12, %s4353_s30 }
 0x6a6   : > { %v5183_v23 = vpop.permute.xlu0 %1890 }
 0x6aa   : > { %v5179_v44 = vpop.permute.xlu1 %1881 }
 0x6ae   : > { %v5181_v13 = vpop.permute.xlu1 %1851 }
 0x6e4   : > { %v1724_v24 = vpop.permute.xlu0 %1723 }
 0x6e5   : > { %v1728_v35 = vpop.permute.xlu1 %1727 }
 0x6e8   : > { %v1726_v30 = vpop.permute.xlu0 %1725 }
 0x6e9   : > { %v1730_v59 = vsel %vm1274_vm1, %v1726_v30, %v1728_v35  ;;  %v1729_v22 = vsel %vm1274_vm1, %v1724_v24, %v1726_v30 }
 0x6ea   : > { %v1761_v38 = vpop.permute.xlu1 %1760  ;;  %v1734_v49 = vadd.f32 %v1730_v59, %v1718_v11  ;;  %v1733_v62 = vadd.f32 %v1729_v22, %v1717_v34 }
 0x6ec   : > { %v1765_v3 = vpop.permute.xlu0 %1764 }
 0x6ee   : > { %v1763_v55 = vpop.permute.xlu1 %1762 }
 0x6ef   : > { %v1768_v54 = vsel %vm1766_vm7, %v1763_v55, %v1765_v3  ;;  %v1767_v50 = vsel %vm1766_vm7, %v1761_v38, %v1763_v55 }
 0x6f0   : > { %v1788_v46 = vpop.permute.xlu0 %1787  ;;  %v1772_v14 = vadd.f32 %v1768_v54, %v1734_v49  ;;  %v1771_v59 = vadd.f32 %v1767_v50, %v1733_v62 }
 0x6f2   : > { %v1792_v17 = vpop.permute.xlu1 %1791 }
 0x6f4   : > { %v1790_v10 = vpop.permute.xlu0 %1789 }
 0x6f5   : > { %v1794_v6 = vsel %vm1353_vm4, %v1790_v10, %v1792_v17  ;;  %v1793_v3 = vsel %vm1353_vm4, %v1788_v46, %v1790_v10  ;;  %v1667_v46 = vsel %vm1395_vm6, %v1650_v43, %v1652_v41 }
 0x6f6   : > { %v1802_v52 = vpop.permute.xlu1 %1801  ;;  %v1798_v56 = vadd.f32 %v1794_v6, %v1772_v14  ;;  %v1797_v38 = vadd.f32 %v1793_v3, %v1771_v59  ;;  %v1841_v10 = vmul.f32 %v4964_v61, %v1667_v46  ;;  %v4084_v46 = vld [vmem:[%s6028_s4 + $0xa0] sm:$0xff] }
 0x6f8   : > { %v1806_v45 = vpop.permute.xlu0 %1805 }
 0x6fa   : > { %v1804_v12 = vpop.permute.xlu1 %1803 }
 0x6fb   : > { %v1808_v35 = vsel %vm1412_vm12, %v1804_v12, %v1806_v45  ;;  %v1807_v30 = vsel %vm1412_vm12, %v1802_v52, %v1804_v12 }
 0x6fc   : > { %v1829_v21 = vpop.permute.xlu0 %1828  ;;  %v1812_v11 = vadd.f32 %v1808_v35, %v1798_v56  ;;  %v1811_v34 = vadd.f32 %v1807_v30, %v1797_v38 }
 0x6fe   : > { %v1831_v7 = vpop.permute.xlu1 %1830 }
 0x6ff   : > { %v1835_v6 = vsel %vm1834_vm14, %v1829_v21, %v1831_v7 }
 0x700   : > { %v1833_v24 = vpop.permute.xlu0 %1832  ;;  %v1839_v50 = vadd.f32 %v1835_v6, %v1811_v34 }
 0x701   : > { %v1836_v17 = vsel %vm1834_vm14, %v1831_v7, %v1833_v24 }
 0x702   : > { %v1840_v55 = vadd.f32 %v1836_v17, %v1812_v11  ;;  %v1848_v45 = vpop.permute.xlu1 %1847  ;;  %v1843_v21 = vadd.f32 %v1841_v10, %v1839_v50  ;;  %v4086_v50 = vld [vmem:[%s6028_s4 + $0xb0] sm:$0xff]  ;;  %v4087_v10 = vld [vmem:[%s6028_s4 + $0xb8] sm:$0xff] }
 0x704   : > { %v1844_v54 = vadd.f32 %v1842_v51, %v1840_v55  ;;  %v1850_v49 = vpop.permute.xlu0 %1849 }
 0x705   : > { %v1854_v56 = vsel %vm1274_vm1, %v1850_v49, %v5181_v13  ;;  %v1853_v14 = vsel %vm1274_vm1, %v1848_v45, %v1850_v49 }
 0x706   : > { %v1858_v52 = vadd.f32 %v1854_v56, %v1844_v54  ;;  %v5205_v12 = vpop.permute.xlu1 %1869  ;;  %v1857_v62 = vadd.f32 %v1853_v14, %v1843_v21  ;;  %v4085_v56 = vld [vmem:[%s6028_s4 + $0xa8] sm:$0xff]  ;;  %v4090_v14 = vld [vmem:[%s6028_s4 + $0xd0] sm:$0xff] }
 0x708   : > { %v1868_v22 = vpop.permute.xlu0 %1867 }
 0x709   : > { %v1872_v7 = vsel %vm1766_vm7, %v1868_v22, %v5205_v12 }
 0x70a   : > { %v1876_v35 = vadd.f32 %v1872_v7, %v1858_v52  ;;  %v4088_v52 = vld [vmem:[%s6028_s4 + $0xc0] sm:$0xff]  ;;  %v2190_v7 = vrot.slane %v5174_v25, %v4451_v15 }
 0x70c   : > { %v1885_v43 = vmul.f32 %v5179_v44, %v1876_v35  ;;  %v1866_v41 = vpop.permute.xlu0 %1865  ;;  %2193 = vrot.lane.b32.xlu0 %v2190_v7, %s4330_s12 }
 0x70d   : > { %v1871_v5 = vsel %vm1766_vm7, %v1866_v41, %v1868_v22  ;;  %v4089_v22 = vld [vmem:[%s6028_s4 + $0xc8] sm:$0xff] }
 0x70e   : > { %v1875_v3 = vadd.f32 %v1871_v5, %v1857_v62  ;;  %v1894_v59 = vadd.f32 %v5183_v23, %v1885_v43 }
 0x710   : > { %v1884_v11 = vmul.f32 %v5179_v44, %v1875_v3  ;;  %v4081_v24 = vmul.f32 -1.442695, %v1894_v59  ;;  %v4082_v44 = vld [vmem:[%s6028_s4 + $0x90] sm:$0xff] }
 0x712   : > { %v1893_v30 = vadd.f32 %v5183_v23, %v1884_v11  ;;  %4271 = vpow2.f32 %v4081_v24  ;;  %v4083_v23 = vld [vmem:[%s6028_s4 + $0x98] sm:$0xff] }
 0x714   : > { %v4080_v17 = vmul.f32 -1.442695, %v1893_v30 }
 0x716   : > { %4273 = vpow2.f32 %v4080_v17 }
 0x71c   : > { %v4272_v51 = vpop.eup %4271 }
 0x71d   : > { %v1902_v38 = vadd.f32 1.0, %v4272_v51 }
 0x71f   : > { %4275 = vrcp.f32 %v1902_v38 }
 0x720   : > { %v4274_v55 = vpop.eup %4273 }
 0x721   : > { %v1901_v45 = vadd.f32 1.0, %v4274_v55 }
 0x723   : > { %4277 = vrcp.f32 %v1901_v45 }
 0x729   : > { %v4276_v6 = vpop.eup %4275 }
 0x72a   : > { %v5215_v34 = vmul.f32 %v4276_v6, %v1894_v59 }
 0x72c   : > { %1946 = vmatprep.subr.mxu0 %v5215_v34 }
 0x72d   : > { %v4278_v54 = vpop.eup %4277 }
 0x72e   : > { %v5218_v49 = vmul.f32 %v4278_v54, %v1893_v30  ;;  %v5282_v54 = vpop.permute.xlu1 %2191 }
 0x72f   : > { %6123 = vst [vmem:[#allocation27_spill] sm:$0xff] %v5282_v54 }
 0x730   : > { %1947 = vmatpush1.msra.mxu0 %v5218_v49 }
 0x731   : > { %4091 = vmatmul.mubr.msk.f32.vlgmr.msra.gmra.mrb[22].mxu0 %vm962_vm0, %v4082_v44  ;;  %v2199_v44 = vmul.f32 0.0, %v5282_v54 }
 0x732   : > { %2015 = vmatprep.mubr.f32.mxu0 %v6116_v36 }
 0x735   : > { %4092 = vmatmul.mubr.msk.f32.gmra.mrb[24].mxu0 %vm962_vm0, %v4083_v23  ;;  %v4102_v23 = vld [vmem:[%s6029_s5 + $0x18] sm:$0xff] }
 0x736   : > { %2021 = vmatprep.mubr.f32.mxu0 %v6116_v36 }
 0x739   : > { %4093 = vmatmul.mubr.msk.f32.gmra.mrb[26].mxu0 %vm962_vm0, %v4084_v46  ;;  %v4103_v46 = vld [vmem:[%s6030_s6 + $0x18] sm:$0xff] }
 0x73a   : > { %2027 = vmatprep.mubr.f32.mxu0 %v6116_v36 }
 0x73d   : > { %4094 = vmatmul.mubr.msk.f32.gmra.mrb[28].mxu0 %vm962_vm0, %v4085_v56 }
 0x73e   : > { %2033 = vmatprep.mubr.f32.mxu0 %v6116_v36 }
 0x741   : > { %4095 = vmatmul.mubr.msk.f32.gmra.mrb[30].mxu0 %vm962_vm0, %v4086_v50 }
 0x742   : > { %2039 = vmatprep.mubr.f32.mxu0 %v6116_v36 }
 0x745   : > { %4096 = vmatmul.mubr.msk.f32.gmra.mrb[32].mxu0 %vm962_vm0, %v4087_v10 }
 0x746   : > { %2045 = vmatprep.mubr.f32.mxu0 %v6116_v36 }
 0x749   : > { %4097 = vmatmul.mubr.msk.f32.gmra.mrb[34].mxu0 %vm962_vm0, %v4088_v52 }
 0x74a   : > { %2051 = vmatprep.mubr.f32.mxu0 %v6116_v36 }
 0x74d   : > { %4098 = vmatmul.mubr.msk.f32.gmra.mrb[36].mxu0 %vm962_vm0, %v4089_v22 }
 0x74e   : > { %2057 = vmatprep.mubr.f32.mxu0 %v6116_v36 }
 0x751   : > { %4099 = vmatmul.mubr.msk.f32.gmra.mrb[38].mxu0 %vm962_vm0, %v4090_v14 }
 0x752   : > { %2854 = vmatprep.mubr.f32.mxu0 %v6116_v36 }
 0x77e   : > { %v5298_v56 = vpop.permute.xlu0 %2193 }
 0x77f   : > { %6124 = vst [vmem:[#allocation28_spill] sm:$0xff] %v5298_v56  ;;  %v5307_v7 = vsel %vm786_vm5, %v5282_v54, %v5298_v56  ;;  %vm6137_vm5 = vcmask 777216  }
 0x780   : > { %6125 = vst [vmem:[#allocation29_spill] sm:$0xff] %v5307_v7 }
 0x804   : > { %v2012_v21 = vpop.f32.mrb[22].mxu0 }
 0x805   : > { %v2014_v35 = vpop.f32.mrb[23].mxu0 }
 0x808   : > { %v2017_v62 = vpop.f32.mrb[24].mxu0 }
 0x809   : > { %2083 = vrot.lane.b32.xlu1 %v2017_v62, %s4351_s17  ;;  %v2019_v43 = vpop.f32.mrb[25].mxu0 }
 0x80a   : > { %2085 = vrot.lane.b32.xlu0 %v2019_v43, %s4351_s17 }
 0x80c   : > { %v2023_v41 = vpop.f32.mrb[26].mxu0 }
 0x80d   : > { %2087 = vrot.lane.b32.xlu1 %v2023_v41, %s4351_s17  ;;  %v2025_v5 = vpop.f32.mrb[27].mxu0 }
 0x80e   : > { %2089 = vrot.lane.b32.xlu0 %v2025_v5, %s4351_s17 }
 0x810   : > { %v2029_v3 = vpop.f32.mrb[28].mxu0 }
 0x811   : > { %v2031_v59 = vpop.f32.mrb[29].mxu0 }
 0x814   : > { %v2035_v11 = vpop.f32.mrb[30].mxu0 }
 0x815   : > { %2095 = vrot.lane.b32.xlu1 %v2035_v11, %s4351_s17  ;;  %v2037_v25 = vpop.f32.mrb[31].mxu0 }
 0x816   : > { %2097 = vrot.lane.b32.xlu0 %v2037_v25, %s4351_s17 }
 0x818   : > { %v2041_v24 = vpop.f32.mrb[32].mxu0 }
 0x819   : > { %2099 = vrot.lane.b32.xlu1 %v2041_v24, %s4351_s17  ;;  %v2043_v30 = vpop.f32.mrb[33].mxu0 }
 0x81a   : > { %2101 = vrot.lane.b32.xlu0 %v2043_v30, %s4351_s17 }
 0x81c   : > { %v2047_v17 = vpop.f32.mrb[34].mxu0 }
 0x81d   : > { %v2049_v51 = vpop.f32.mrb[35].mxu0 }
 0x820   : > { %v2053_v38 = vpop.f32.mrb[36].mxu0 }
 0x821   : > { %v2055_v55 = vpop.f32.mrb[37].mxu0 }
 0x822   : > { %2109 = vrot.lane.b32.xlu1 %v2055_v55, %s4351_s17 }
 0x824   : > { %v2059_v45 = vpop.f32.mrb[38].mxu0 }
 0x825   : > { %v2061_v6 = vpop.f32.mrb[39].mxu0 }
 0x826   : > { %2107 = vrot.lane.b32.xlu1 %v2053_v38, %s4351_s17  ;;  %2113 = vrot.lane.b32.xlu0 %v2061_v6, %s4351_s17 }
 0x82a   : > { %2081 = vrot.lane.b32.xlu1 %v2012_v21, %s4351_s17  ;;  %2111 = vrot.lane.b32.xlu0 %v2059_v45, %s4351_s17 }
 0x82e   : > { %2091 = vrot.lane.b32.xlu1 %v2029_v3, %s4351_s17  ;;  %2168 = vrot.lane.b32.xlu0 %v6116_v36, %s4353_s30 }
 0x832   : > { %2093 = vrot.lane.b32.xlu0 %v2031_v59, %s4351_s17  ;;  %2205 = vrot.lane.b32.xlu1 %v2199_v44, %s4337_s22 }
 0x836   : > { %2103 = vrot.lane.b32.xlu0 %v2047_v17, %s4351_s17  ;;  %2105 = vrot.lane.b32.xlu1 %v2049_v51, %s4351_s17 }
 0x83a   : > { %2290 = vperm.xlu0 %4252, %v4102_v23  }
 0x83e   : > { %2299 = vperm.xlu0 %4252, %v4103_v46  }
 0x87b   : > { %v2084_v50 = vpop.permute.xlu1 %2083 }
 0x87c   : > { %v2086_v10 = vpop.permute.xlu0 %2085  ;;  %v2140_v52 = vsel %vm962_vm0, 0.0, %v2084_v50 }
 0x87d   : > { %v2115_v22 = vsel %vm962_vm0, %v2084_v50, %v2086_v10  ;;  %2170 = vrot.lane.b32.xlu0 %v2140_v52, %s4353_s30 }
 0x87e   : > { %2172 = vrot.lane.b32.xlu1 %v2115_v22, %s4353_s30 }
 0x87f   : > { %v2088_v14 = vpop.permute.xlu1 %2087 }
 0x880   : > { %v2141_v21 = vsel %vm962_vm0, 0.0, %v2088_v14  ;;  %v2090_v35 = vpop.permute.xlu0 %2089 }
 0x881   : > { %v2200_v62 = vmul.f32 %v5307_v7, %v2141_v21  ;;  %v2116_v43 = vsel %vm962_vm0, %v2088_v14, %v2090_v35  ;;  %v2270_v35 = vmul.f32 0.0, %v5298_v56 }
 0x882   : > { %v2201_v41 = vmul.f32 %v5298_v56, %v2116_v43 }
 0x883   : > { %2207 = vrot.lane.b32.xlu1 %v2200_v62, %s4337_s22 }
 0x884   : > { %2209 = vrot.lane.b32.xlu0 %v2201_v41, %s4337_s22 }
 0x887   : > { %v2096_v5 = vpop.permute.xlu1 %2095 }
 0x888   : > { %v2098_v3 = vpop.permute.xlu0 %2097  ;;  %v2143_v59 = vsel %vm962_vm0, 0.0, %v2096_v5 }
 0x889   : > { %2223 = vrot.lane.b32.xlu0 %v2143_v59, %s4353_s30  ;;  %v2145_v11 = vsel %vm962_vm0, %v2098_v3, 0.0  ;;  %v2118_v17 = vsel %vm962_vm0, %v2096_v5, %v2098_v3 }
 0x88a   : > { %2227 = vrot.lane.b32.xlu1 %v2145_v11, %s4353_s30 }
 0x88b   : > { %v2100_v25 = vpop.permute.xlu1 %2099 }
 0x88c   : > { %v2144_v24 = vsel %vm962_vm0, 0.0, %v2100_v25  ;;  %v2102_v30 = vpop.permute.xlu0 %2101 }
 0x88d   : > { %v2235_v51 = vmul.f32 %v5282_v54, %v2144_v24  ;;  %v2119_v38 = vsel %vm962_vm0, %v2100_v25, %v2102_v30  ;;  %2225 = vrot.lane.b32.xlu0 %v2118_v17, %s4353_s30  ;;  %v2146_v55 = vsel %vm962_vm0, %v2102_v30, 0.0 }
 0x88e   : > { %v2236_v45 = vmul.f32 %v5307_v7, %v2119_v38  ;;  %v2237_v6 = vmul.f32 %v5298_v56, %v2146_v55  ;;  %v4100_v38 = vld [vmem:[%s6031_s7 + $0xc] sm:$0x3] }
 0x88f   : > { %2241 = vrot.lane.b32.xlu1 %v2235_v51, %s4337_s22 }
 0x891   : > { %2243 = vrot.lane.b32.xlu0 %v2236_v45, %s4337_s22 }
 0x893   : > { %2245 = vrot.lane.b32.xlu1 %v2237_v6, %s4337_s22  ;;  %v5350_v6 = vrot.slane %v4100_v38, %v4451_v15 }
 0x894   : > { %v2110_v44 = vpop.permute.xlu1 %2109 }
 0x895   : > { %v2148_v23 = vsel %vm962_vm0, %v2110_v44, 0.0 }
 0x897   : > { %2260 = vrot.lane.b32.xlu1 %v2148_v23, %s4353_s30 }
 0x898   : > { %v2114_v46 = vpop.permute.xlu0 %2113  ;;  %v2108_v50 = vpop.permute.xlu1 %2107 }
 0x899   : > { %v2149_v10 = vsel %vm962_vm0, %v2114_v46, 0.0  ;;  %v2121_v52 = vsel %vm962_vm0, %v2108_v50, %v2110_v44 }
 0x89a   : > { %v2269_v22 = vmul.f32 %v5307_v7, %v2149_v10 }
 0x89b   : > { %2258 = vrot.lane.b32.xlu1 %v2121_v52, %s4353_s30 }
 0x89c   : > { %v2112_v14 = vpop.permute.xlu0 %2111  ;;  %2276 = vrot.lane.b32.xlu0 %v2269_v22, %s4337_s22  ;;  %v2082_v41 = vpop.permute.xlu1 %2081 }
 0x89d   : > { %v2122_v21 = vsel %vm962_vm0, %v2112_v14, %v2114_v46  ;;  %v2139_v44 = vsel %vm962_vm0, 0.0, %v2082_v41  ;;  %v5354_v46 = vrot.slane %v4100_v38, %v4453_v16 }
 0x89e   : > { %v2268_v62 = vmul.f32 %v5282_v54, %v2122_v21  ;;  %v2164_v52 = vmul.f32 %v5350_v6, %v2139_v44 }
 0x89f   : > { %2278 = vrot.lane.b32.xlu1 %v2270_v35, %s4337_s22  ;;  %v5359_v22 = vmul.f32 0.0, %v5354_v46 }
 0x8a0   : > { %2274 = vrot.lane.b32.xlu0 %v2268_v62, %s4337_s22  ;;  %v5342_v43 = vpop.permute.xlu0 %2168  ;;  %v2092_v3 = vpop.permute.xlu1 %2091 }
 0x8a1   : > { %6126 = vst [vmem:[#allocation30_spill] sm:$0xff] %v5359_v22  ;;  %v2142_v44 = vsel %vm962_vm0, 0.0, %v2092_v3 }
 0x8a4   : > { %v2094_v5 = vpop.permute.xlu0 %2093  ;;  %v5344_v11 = vpop.permute.xlu1 %2205 }
 0x8a5   : > { %v2117_v62 = vsel %vm962_vm0, %v2092_v3, %v2094_v5 }
 0x8a6   : > { %v2218_v54 = vmul.f32 %v5350_v6, %v2117_v62 }
 0x8a8   : > { %v2104_v59 = vpop.permute.xlu0 %2103  ;;  %v2106_v24 = vpop.permute.xlu1 %2105 }
 0x8b9   : > { %v2291_v25 = vpop.permute.xlu0 %2290 }
 0x8bd   : > { %v2300_v30 = vpop.permute.xlu0 %2299 }
 0x8ef   : > { %v2171_v17 = vpop.permute.xlu0 %2170 }
 0x8f0   : > { %v2173_v51 = vpop.permute.xlu1 %2172  ;;  %v2174_v15 = vsel %vm1766_vm7, %v5342_v43, %v2171_v17 }
 0x8f1   : > { %v2175_v50 = vsel %vm1766_vm7, %v2171_v17, %v2173_v51  ;;  %v2178_v38 = vadd.f32 %v2174_v15, %v5359_v22 }
 0x8f2   : > { %v2179_v21 = vadd.f32 %v2175_v50, %v2164_v52  ;;  %v2217_v52 = vmul.f32 %v5354_v46, %v2142_v44 }
 0x8f5   : > { %v2208_v45 = vpop.permute.xlu1 %2207 }
 0x8f6   : > { %v2210_v55 = vpop.permute.xlu0 %2209  ;;  %v2211_v16 = vsel %vm6092_vm10, %v5344_v11, %v2208_v45 }
 0x8f7   : > { %v2212_v14 = vsel %vm6092_vm10, %v2208_v45, %v2210_v55  ;;  %v2215_v56 = vadd.f32 %v2211_v16, %v2178_v38 }
 0x8f8   : > { %v2216_v41 = vadd.f32 %v2212_v14, %v2179_v21  ;;  %v2147_v21 = vsel %vm962_vm0, %v2106_v24, 0.0 }
 0x8f9   : > { %v2219_v15 = vadd.f32 %v2217_v52, %v2215_v56 }
 0x8fa   : > { %v2220_v7 = vadd.f32 %v2218_v54, %v2216_v41  ;;  %v2254_v54 = vmul.f32 %v5350_v6, %v2147_v21 }
 0x8fb   : > { %v2224_v23 = vpop.permute.xlu0 %2223 }
 0x8fc   : > { %v2228_v10 = vpop.permute.xlu1 %2227 }
 0x8ff   : > { %v2226_v35 = vpop.permute.xlu0 %2225 }
 0x900   : > { %v2230_v55 = vsel %vm1766_vm7, %v2226_v35, %v2228_v10  ;;  %v2229_v45 = vsel %vm1766_vm7, %v2224_v23, %v2226_v35  ;;  %v2120_v10 = vsel %vm962_vm0, %v2104_v59, %v2106_v24 }
 0x901   : > { %v2242_v51 = vpop.permute.xlu1 %2241  ;;  %v2234_v14 = vadd.f32 %v2230_v55, %v2220_v7  ;;  %v2233_v16 = vadd.f32 %v2229_v45, %v2219_v15 }
 0x903   : > { %v2244_v17 = vpop.permute.xlu0 %2243 }
 0x904   : > { %v2247_v3 = vsel %vm6092_vm10, %v2242_v51, %v2244_v17 }
 0x905   : > { %v2246_v50 = vpop.permute.xlu1 %2245  ;;  %v2251_v41 = vadd.f32 %v2247_v3, %v2233_v16 }
 0x906   : > { %v2248_v5 = vsel %vm6092_vm10, %v2244_v17, %v2246_v50  ;;  %v2253_v50 = vmul.f32 %v5354_v46, %v2120_v10 }
 0x907   : > { %v2252_v22 = vadd.f32 %v2248_v5, %v2234_v14 }
 0x908   : > { %v2255_v35 = vadd.f32 %v2253_v50, %v2251_v41 }
 0x909   : > { %v2261_v62 = vpop.permute.xlu1 %2260  ;;  %v2256_v38 = vadd.f32 %v2254_v54, %v2252_v22 }
 0x90a   : > { %v2263_v7 = vsel %vm1766_vm7, %v2261_v62, %v5342_v43 }
 0x90b   : > { %v2267_v51 = vadd.f32 %v2263_v7, %v2256_v38 }
 0x90d   : > { %v2259_v44 = vpop.permute.xlu1 %2258 }
 0x90e   : > { %v2277_v23 = vpop.permute.xlu0 %2276  ;;  %v2262_v56 = vsel %vm1766_vm7, %v2259_v44, %v2261_v62 }
 0x90f   : > { %v2266_v17 = vadd.f32 %v2262_v56, %v2255_v35  ;;  %v6129_v35 = vmax.f32 %v4490_v40, 0.0  ;;  %v4107_v40 = vld [vmem:[%s6027_s3 + $0x50] sm:$0xff] }
 0x911   : > { %v5382_v55 = vpop.permute.xlu1 %2278 }
 0x912   : > { %v2281_v59 = vsel %vm6092_vm10, %v2277_v23, %v5382_v55  ;;  %v2275_v24 = vpop.permute.xlu0 %2274 }
 0x913   : > { %v2285_v52 = vadd.f32 %v2281_v59, %v2267_v51  ;;  %v2280_v22 = vsel %vm6092_vm10, %v2275_v24, %v2277_v23  ;;  %v6127_v23 = vmax.f32 %v4480_v31, 0.0  ;;  %v5399_v51 = vadd.f32 %v5218_v49, %v6129_v35  ;;  %v4110_v49 = vld [vmem:[%s6027_s3 + $0x68] sm:$0xff] }
 0x914   : > { %v2284_v5 = vadd.f32 %v2280_v22, %v2266_v17  ;;  %v6130_v17 = vmax.f32 %v4493_v42, 0.0  ;;  %v4108_v42 = vld [vmem:[%s6027_s3 + $0x58] sm:$0xff] }
 0x915   : > { %v2294_v45 = vmul.f32 %v2291_v25, %v2285_v52  ;;  %v4111_v52 = vld [vmem:[%s6027_s3 + $0x70] sm:$0xff]  ;;  %v4112_v22 = vld [vmem:[%s6027_s3 + $0x78] sm:$0xff] }
 0x916   : > { %v2293_v14 = vmul.f32 %v2291_v25, %v2284_v5  ;;  %v5390_v25 = vadd.f32 %v5215_v34, %v6127_v23  ;;  %v4109_v34 = vld [vmem:[%s6027_s3 + $0x60] sm:$0xff] }
 0x917   : > { %v2303_v21 = vadd.f32 %v2300_v30, %v2294_v45  ;;  %v4113_v5 = vld [vmem:[%s6027_s3 + $0x80] sm:$0xff]  ;;  %v4114_v45 = vld [vmem:[%s6027_s3 + $0x88] sm:$0xff] }
 0x918   : > { %v2302_v15 = vadd.f32 %v2300_v30, %v2293_v14  ;;  %v6128_v30 = vmax.f32 %v4488_v39, 0.0  ;;  %v4106_v39 = vld [vmem:[%s6027_s3 + $0x48] sm:$0xff] }
 0x919   : > { %v4105_v3 = vmul.f32 -1.442695, %v2303_v21 }
 0x91a   : > { %v4104_v16 = vmul.f32 -1.442695, %v2302_v15 }
 0x91b   : > { %4279 = vpow2.f32 %v4105_v3 }
 0x91c   : > { %4281 = vpow2.f32 %v4104_v16 }
 0x925   : > { %v4280_v62 = vpop.eup %4279 }
 0x926   : > { %v4282_v10 = vpop.eup %4281  ;;  %v2311_v54 = vadd.f32 1.0, %v4280_v62 }
 0x927   : > { %v2310_v41 = vadd.f32 1.0, %v4282_v10 }
 0x928   : > { %4283 = vrcp.f32 %v2311_v54 }
 0x929   : > { %4285 = vrcp.f32 %v2310_v41 }
 0x932   : > { %v4284_v38 = vpop.eup %4283 }
 0x933   : > { %v4286_v44 = vpop.eup %4285  ;;  %v2317_v50 = vmul.f32 %v4284_v38, %v2303_v21 }
 0x934   : > { %v2316_v7 = vmul.f32 %v4286_v44, %v2302_v15 }
 0x935   : > { %v5394_v56 = vadd.f32 %v2317_v50, %v6128_v30 }
 0x936   : > { %v5403_v59 = vadd.f32 %v2316_v7, %v6130_v17 }
 0x937   : > { %v4210_v24 = vpack.c.bf16 %v5394_v56, %v5390_v25 }
 0x938   : > { %v4212_v31 = vpack.c.bf16 %v5403_v59, %v5399_v51 }
 0x939   : > { %4211 = vmatprep.subr.bf16.mxu1 %v4210_v24 }
 0x93a   : > { %4213 = vmatpush1.bf16.msra.mxu1 %v4212_v31  ;;  %v4124_v31 = vld [vmem:[%s6029_s5 + $0x20] sm:$0xff] }
 0x93d   : > { %4115 = vmatmul.mubr.msk.f32.vlgmr.msra.gmra.mrb[40].mxu1 %vm461_vm2, %v4106_v39  ;;  %v4125_v39 = vld [vmem:[%s6030_s6 + $0x20] sm:$0xff] }
 0x93e   : > { %2433 = vmatprep.mubr.f32.mxu1 %v6116_v36 }
 0x941   : > { %4116 = vmatmul.mubr.msk.f32.gmra.mrb[42].mxu1 %vm461_vm2, %v4107_v40 }
 0x942   : > { %2439 = vmatprep.mubr.f32.mxu1 %v6116_v36 }
 0x945   : > { %4117 = vmatmul.mubr.msk.f32.gmra.mrb[44].mxu1 %vm461_vm2, %v4108_v42 }
 0x946   : > { %2445 = vmatprep.mubr.f32.mxu1 %v6116_v36 }
 0x949   : > { %4118 = vmatmul.mubr.msk.f32.gmra.mrb[46].mxu1 %vm461_vm2, %v4109_v34 }
 0x94a   : > { %2451 = vmatprep.mubr.f32.mxu1 %v6116_v36 }
 0x94d   : > { %4119 = vmatmul.mubr.msk.f32.gmra.mrb[48].mxu1 %vm461_vm2, %v4110_v49 }
 0x94e   : > { %2457 = vmatprep.mubr.f32.mxu1 %v6116_v36 }
 0x951   : > { %4120 = vmatmul.mubr.msk.f32.gmra.mrb[50].mxu1 %vm461_vm2, %v4111_v52 }
 0x952   : > { %2463 = vmatprep.mubr.f32.mxu1 %v6116_v36 }
 0x955   : > { %4121 = vmatmul.mubr.msk.f32.gmra.mrb[52].mxu1 %vm461_vm2, %v4112_v22 }
 0x956   : > { %2469 = vmatprep.mubr.f32.mxu1 %v6116_v36 }
 0x959   : > { %4122 = vmatmul.mubr.msk.f32.gmra.mrb[54].mxu1 %vm461_vm2, %v4113_v5 }
 0x95a   : > { %2475 = vmatprep.mubr.f32.mxu1 %v6116_v36 }
 0x95d   : > { %4123 = vmatmul.mubr.msk.f32.gmra.mrb[56].mxu1 %vm461_vm2, %v4114_v45  ;;  %vm6135_vm2 = vcmask 900096  }
 0x95e   : > { %3281 = vmatprep.mubr.f32.mxu1 %v6116_v36 }
 0xa10   : > { %v2429_v14 = vpop.f32.mrb[40].mxu1 }
 0xa11   : > { %v2431_v21 = vpop.f32.mrb[41].mxu1 }
 0xa14   : > { %v2435_v15 = vpop.f32.mrb[42].mxu1 }
 0xa15   : > { %2504 = vrot.lane.b32.xlu1 %v2435_v15, %s4333_s14  ;;  %v2437_v3 = vpop.f32.mrb[43].mxu1 }
 0xa16   : > { %2506 = vrot.lane.b32.xlu0 %v2437_v3, %s4333_s14 }
 0xa18   : > { %v2441_v16 = vpop.f32.mrb[44].mxu1 }
 0xa19   : > { %2508 = vrot.lane.b32.xlu1 %v2441_v16, %s4333_s14  ;;  %v2443_v62 = vpop.f32.mrb[45].mxu1 }
 0xa1a   : > { %2510 = vrot.lane.b32.xlu0 %v2443_v62, %s4333_s14 }
 0xa1c   : > { %v2447_v10 = vpop.f32.mrb[46].mxu1 }
 0xa1d   : > { %2512 = vrot.lane.b32.xlu1 %v2447_v10, %s4333_s14  ;;  %v2449_v54 = vpop.f32.mrb[47].mxu1 }
 0xa1e   : > { %2514 = vrot.lane.b32.xlu0 %v2449_v54, %s4333_s14 }
 0xa20   : > { %v2453_v41 = vpop.f32.mrb[48].mxu1 }
 0xa21   : > { %2516 = vrot.lane.b32.xlu1 %v2453_v41, %s4333_s14  ;;  %v2455_v38 = vpop.f32.mrb[49].mxu1 }
 0xa22   : > { %2518 = vrot.lane.b32.xlu0 %v2455_v38, %s4333_s14 }
 0xa24   : > { %v2459_v44 = vpop.f32.mrb[50].mxu1 }
 0xa25   : > { %2520 = vrot.lane.b32.xlu1 %v2459_v44, %s4333_s14  ;;  %v2461_v50 = vpop.f32.mrb[51].mxu1 }
 0xa26   : > { %2522 = vrot.lane.b32.xlu0 %v2461_v50, %s4333_s14 }
 0xa28   : > { %v2465_v7 = vpop.f32.mrb[52].mxu1 }
 0xa29   : > { %2524 = vrot.lane.b32.xlu1 %v2465_v7, %s4333_s14  ;;  %v2467_v23 = vpop.f32.mrb[53].mxu1 }
 0xa2a   : > { %2526 = vrot.lane.b32.xlu0 %v2467_v23, %s4333_s14 }
 0xa2c   : > { %v2471_v30 = vpop.f32.mrb[54].mxu1 }
 0xa2d   : > { %2528 = vrot.lane.b32.xlu1 %v2471_v30, %s4333_s14  ;;  %v2473_v35 = vpop.f32.mrb[55].mxu1 }
 0xa2e   : > { %2530 = vrot.lane.b32.xlu0 %v2473_v35, %s4333_s14 }
 0xa30   : > { %v2477_v17 = vpop.f32.mrb[56].mxu1 }
 0xa31   : > { %2532 = vrot.lane.b32.xlu1 %v2477_v17, %s4333_s14  ;;  %v2479_v24 = vpop.f32.mrb[57].mxu1 }
 0xa32   : > { %2534 = vrot.lane.b32.xlu0 %v2479_v24, %s4333_s14 }
 0xa35   : > { %2500 = vrot.lane.b32.xlu1 %v2429_v14, %s4333_s14 }
 0xa36   : > { %2502 = vrot.lane.b32.xlu0 %v2431_v21, %s4333_s14  ;;  %s6131_s14 = smov 94  }
 0xa3a   : > { %2725 = vperm.xlu0 %4252, %v4124_v31  }
 0xa3e   : > { %2734 = vperm.xlu0 %4252, %v4125_v39  }
 0xa87   : > { %v2505_v40 = vpop.permute.xlu1 %2504 }
 0xa88   : > { %v2507_v42 = vpop.permute.xlu0 %2506  ;;  %v2569_v34 = vsel %vm662_vm3, 0.0, %v2505_v40 }
 0xa89   : > { %2591 = vrot.lane.b32.xlu1 %v2569_v34, %s4335_s20  ;;  %v2577_v49 = vsel %vm662_vm3, %v2507_v42, 0.0  ;;  %v2537_v45 = vsel %vm662_vm3, %v2505_v40, %v2507_v42 }
 0xa8a   : > { %2595 = vrot.lane.b32.xlu0 %v2577_v49, %s4335_s20 }
 0xa8b   : > { %v2509_v52 = vpop.permute.xlu1 %2508 }
 0xa8c   : > { %v2570_v22 = vsel %vm662_vm3, 0.0, %v2509_v52  ;;  %v2511_v5 = vpop.permute.xlu0 %2510 }
 0xa8d   : > { %v2603_v14 = vmul.f32 %v2570_v22, %v4595_v26  ;;  %v2578_v21 = vsel %vm662_vm3, %v2511_v5, 0.0  ;;  %2593 = vrot.lane.b32.xlu1 %v2537_v45, %s4335_s20  ;;  %v2538_v15 = vsel %vm662_vm3, %v2509_v52, %v2511_v5  ;;  %s4197_s20 = sshll.u32 %s6203_s28, 6 }
 0xa8e   : > { %v2605_v3 = vmul.f32 %v2578_v21, %v4597_v19  ;;  %v2604_v54 = vmul.f32 %v2538_v15, %v4626_v63 }
 0xa8f   : > { %v2513_v16 = vpop.permute.xlu1 %2512  ;;  %2609 = vrot.lane.b32.xlu0 %v2603_v14, %s4336_s21 }
 0xa90   : > { %v2571_v62 = vsel %vm662_vm3, 0.0, %v2513_v16  ;;  %v2515_v10 = vpop.permute.xlu0 %2514 }
 0xa91   : > { %2613 = vrot.lane.b32.xlu1 %v2605_v3, %s4336_s21  ;;  %v2579_v26 = vsel %vm662_vm3, %v2515_v10, 0.0  ;;  %v2621_v41 = vmul.f32 %v2571_v62, %v4599_v27  ;;  %v2539_v44 = vsel %vm662_vm3, %v2513_v16, %v2515_v10 }
 0xa92   : > { %v2623_v50 = vmul.f32 %v2579_v26, %v4601_v18  ;;  %v2622_v7 = vmul.f32 %v2539_v44, %v4639_v8 }
 0xa93   : > { %v2517_v38 = vpop.permute.xlu1 %2516  ;;  %2611 = vrot.lane.b32.xlu0 %v2604_v54, %s4336_s21 }
 0xa94   : > { %v2519_v19 = vpop.permute.xlu0 %2518  ;;  %v2572_v30 = vsel %vm662_vm3, 0.0, %v2517_v38 }
 0xa95   : > { %2627 = vrot.lane.b32.xlu1 %v2621_v41, %s4337_s22  ;;  %v2580_v18 = vsel %vm662_vm3, %v2519_v19, 0.0  ;;  %v2540_v24 = vsel %vm662_vm3, %v2517_v38, %v2519_v19 }
 0xa97   : > { %v2521_v23 = vpop.permute.xlu1 %2520  ;;  %2631 = vrot.lane.b32.xlu0 %v2623_v50, %s4337_s22 }
 0xa98   : > { %v2523_v63 = vpop.permute.xlu0 %2522  ;;  %v2573_v35 = vsel %vm662_vm3, 0.0, %v2521_v23 }
 0xa99   : > { %2629 = vrot.lane.b32.xlu1 %v2622_v7, %s4337_s22  ;;  %v2581_v8 = vsel %vm662_vm3, %v2523_v63, 0.0  ;;  %v2653_v31 = vmul.f32 %v2573_v35, %v4603_v28  ;;  %v2541_v39 = vsel %vm662_vm3, %v2521_v23, %v2523_v63 }
 0xa9a   : > { %v2655_v40 = vmul.f32 %v2581_v8, %v4605_v29  ;;  %v2654_v52 = vmul.f32 %v2541_v39, %v4659_v53 }
 0xa9b   : > { %v2525_v27 = vpop.permute.xlu1 %2524  ;;  %2641 = vrot.lane.b32.xlu0 %v2572_v30, %s4338_s23 }
 0xa9c   : > { %v2527_v17 = vpop.permute.xlu0 %2526  ;;  %v2574_v22 = vsel %vm662_vm3, 0.0, %v2525_v27 }
 0xa9d   : > { %2645 = vrot.lane.b32.xlu1 %v2580_v18, %s4338_s23  ;;  %v2542_v49 = vsel %vm662_vm3, %v2525_v27, %v2527_v17  ;;  %v2671_v5 = vmul.f32 %v2574_v22, %v4607_v32  ;;  %v2582_v14 = vsel %vm662_vm3, %v2527_v17, 0.0 }
 0xa9e   : > { %v2672_v28 = vmul.f32 %v2542_v49, %v4667_v58  ;;  %v2673_v15 = vmul.f32 %v2582_v14, %v4609_v33 }
 0xa9f   : > { %2643 = vrot.lane.b32.xlu0 %v2540_v24, %s4338_s23  ;;  %v2529_v42 = vpop.permute.xlu1 %2528 }
 0xaa0   : > { %v2531_v34 = vpop.permute.xlu0 %2530  ;;  %v2575_v3 = vsel %vm662_vm3, 0.0, %v2529_v42 }
 0xaa1   : > { %2659 = vrot.lane.b32.xlu1 %v2653_v31, %s4339_s24  ;;  %v2543_v21 = vsel %vm662_vm3, %v2529_v42, %v2531_v34  ;;  %v2583_v62 = vsel %vm662_vm3, %v2531_v34, 0.0 }
 0xaa3   : > { %2663 = vrot.lane.b32.xlu0 %v2655_v40, %s4339_s24  ;;  %v2533_v45 = vpop.permute.xlu1 %2532  ;;  %v6133_v40 = vld [vmem:[#allocation3_spill] sm:$0xff] }
 0xaa4   : > { %v2535_v29 = vpop.permute.xlu0 %2534  ;;  %v2576_v32 = vsel %vm662_vm3, 0.0, %v2533_v45 }
 0xaa5   : > { %2661 = vrot.lane.b32.xlu1 %v2654_v52, %s4339_s24  ;;  %v2544_v53 = vsel %vm662_vm3, %v2533_v45, %v2535_v29  ;;  %v2703_v16 = vmul.f32 %v2576_v32, %v4675_v1  ;;  %v2584_v33 = vsel %vm662_vm3, %v2535_v29, 0.0 }
 0xaa6   : > { %v2704_v58 = vmul.f32 %v2544_v53, %v4684_v4  ;;  %v6132_v4 = vld [vmem:[#allocation4_spill] sm:$0xff]  ;;  %v6134_v53 = vld [vmem:[#allocation2_spill] sm:$0xff] }
 0xaa7   : > { %2679 = vrot.lane.b32.xlu0 %v2672_v28, %s4340_s25  ;;  %v2705_v10 = vmul.f32 %v2584_v33, %v6132_v4  ;;  %v2501_v41 = vpop.permute.xlu1 %2500 }
 0xaa8   : > { %v2503_v54 = vpop.permute.xlu0 %2502  ;;  %v2568_v24 = vsel %vm662_vm3, 0.0, %v2501_v41 }
 0xaa9   : > { %2677 = vrot.lane.b32.xlu1 %v2671_v5, %s4340_s25  ;;  %v2585_v42 = vmul.f32 %v2568_v24, %v6133_v40  ;;  %v2536_v28 = vsel %vm662_vm3, %v2501_v41, %v2503_v54  ;;  %vm6136_vm3 = vmmov %vm6135_vm2 }
 0xaab   : > { %2693 = vrot.lane.b32.xlu0 %v2543_v21, %s4341_s26 }
 0xaad   : > { %2681 = vrot.lane.b32.xlu1 %v2673_v15, %s4340_s25  ;;  %v2586_v15 = vmul.f32 %v2536_v28, %v6134_v53 }
 0xaaf   : > { %2711 = vrot.lane.b32.xlu0 %v2704_v58, %s6131_s14 }
 0xab1   : > { %2691 = vrot.lane.b32.xlu1 %v2575_v3, %s4341_s26 }
 0xab3   : > { %2709 = vrot.lane.b32.xlu0 %v2703_v16, %s6131_s14 }
 0xab5   : > { %2695 = vrot.lane.b32.xlu1 %v2583_v62, %s4341_s26  ;;  %s5573_s26 = scalar_lea.vmem %s6032_s8, %s4197_s20 }
 0xab9   : > { %2713 = vrot.lane.b32.xlu1 %v2705_v10, %s6131_s14  ;;  %v5541_v26 = vpop.permute.xlu0 %2725 }
 0xabd   : > { %v5543_v38 = vpop.permute.xlu0 %2734 }
 0xafb   : > { %v2592_v1 = vpop.permute.xlu1 %2591 }
 0xafc   : > { %v2596_v44 = vpop.permute.xlu0 %2595 }
 0xaff   : > { %v2594_v19 = vpop.permute.xlu1 %2593 }
 0xb00   : > { %v2597_v39 = vsel %vm736_vm8, %v2592_v1, %v2594_v19  ;;  %v2598_v14 = vsel %vm736_vm8, %v2594_v19, %v2596_v44  ;;  %vm6138_vm8 = vmmov %vm6137_vm5 }
 0xb01   : > { %v2610_v50 = vpop.permute.xlu0 %2609  ;;  %v2601_v52 = vadd.f32 %v2597_v39, %v2585_v42  ;;  %v2602_v33 = vadd.f32 %v2598_v14, %v2586_v15 }
 0xb03   : > { %v2614_v7 = vpop.permute.xlu1 %2613 }
 0xb05   : > { %v2612_v23 = vpop.permute.xlu0 %2611 }
 0xb06   : > { %v2615_v49 = vsel %vm775_vm9, %v2610_v50, %v2612_v23  ;;  %v2616_v3 = vsel %vm775_vm9, %v2612_v23, %v2614_v7 }
 0xb07   : > { %v2628_v63 = vpop.permute.xlu1 %2627  ;;  %v2619_v45 = vadd.f32 %v2615_v49, %v2601_v52  ;;  %v2620_v41 = vadd.f32 %v2616_v3, %v2602_v33 }
 0xb09   : > { %v2632_v30 = vpop.permute.xlu0 %2631 }
 0xb0b   : > { %v2630_v27 = vpop.permute.xlu1 %2629 }
 0xb0c   : > { %v2633_v5 = vsel %vm6092_vm10, %v2628_v63, %v2630_v27  ;;  %v2634_v10 = vsel %vm6092_vm10, %v2630_v27, %v2632_v30 }
 0xb0d   : > { %v2642_v35 = vpop.permute.xlu0 %2641  ;;  %v2637_v58 = vadd.f32 %v2633_v5, %v2619_v45  ;;  %v2638_v50 = vadd.f32 %v2634_v10, %v2620_v41  ;;  %v4130_v10 = vld [vmem:[%s6028_s4 + $0xe8] sm:$0xff]  ;;  %v4133_v41 = vld [vmem:[%s6028_s4 + $0x100] sm:$0xff] }
 0xb0f   : > { %v2646_v17 = vpop.permute.xlu1 %2645 }
 0xb11   : > { %v2644_v18 = vpop.permute.xlu0 %2643 }
 0xb12   : > { %v2647_v21 = vsel %vm818_vm11, %v2642_v35, %v2644_v18  ;;  %v2648_v19 = vsel %vm818_vm11, %v2644_v18, %v2646_v17  ;;  %vm6140_vm11 = vcmask 277504  }
 0xb13   : > { %v2660_v8 = vpop.permute.xlu1 %2659  ;;  %v2651_v62 = vadd.f32 %v2647_v21, %v2637_v58  ;;  %v2652_v23 = vadd.f32 %v2648_v19, %v2638_v50  ;;  %v4136_v19 = vld [vmem:[%s6028_s4 + $0x118] sm:$0xff] }
 0xb15   : > { %v2664_v31 = vpop.permute.xlu0 %2663 }
 0xb17   : > { %v2662_v34 = vpop.permute.xlu1 %2661 }
 0xb18   : > { %v2665_v16 = vsel %vm6135_vm2, %v2660_v8, %v2662_v34  ;;  %v2666_v24 = vsel %vm6136_vm3, %v2662_v34, %v2664_v31  ;;  %vm6141_vm2 = vmmov %vm6140_vm11 }
 0xb19   : > { %v2680_v22 = vpop.permute.xlu0 %2679  ;;  %v2669_v1 = vadd.f32 %v2665_v16, %v2651_v62  ;;  %v2670_v27 = vadd.f32 %v2666_v24, %v2652_v23  ;;  %v4128_v62 = vld [vmem:[%s6028_s4 + $0xd8] sm:$0xff]  ;;  %vm6142_vm3 = vmmov %vm6141_vm2 }
 0xb1a   : > { %vm6146_vm10 = vmmov %vm6141_vm2 }
 0xb1b   : > { %v2678_v29 = vpop.permute.xlu1 %2677 }
 0xb1c   : > { %v2683_v54 = vsel %vm873_vm13, %v2678_v29, %v2680_v22 }
 0xb1d   : > { %v2694_v32 = vpop.permute.xlu0 %2693  ;;  %v2687_v63 = vadd.f32 %v2683_v54, %v2669_v1  ;;  %v4132_v54 = vld [vmem:[%s6028_s4 + $0xf8] sm:$0xff]  ;;  %v4134_v1 = vld [vmem:[%s6028_s4 + $0x108] sm:$0xff] }
 0xb1f   : > { %v2682_v4 = vpop.permute.xlu1 %2681 }
 0xb20   : > { %v2684_v40 = vsel %vm873_vm13, %v2680_v22, %v2682_v4 }
 0xb21   : > { %v2712_v44 = vpop.permute.xlu0 %2711  ;;  %v2688_v17 = vadd.f32 %v2684_v40, %v2670_v27 }
 0xb23   : > { %v2692_v35 = vpop.permute.xlu1 %2691 }
 0xb24   : > { %v2697_v7 = vsel %vm6137_vm5, %v2692_v35, %v2694_v32  ;;  %vm6143_vm5 = vmmov %vm6141_vm2 }
 0xb25   : > { %v2701_v8 = vadd.f32 %v2697_v7, %v2687_v63  ;;  %v2710_v39 = vpop.permute.xlu0 %2709 }
 0xb26   : > { %v2715_v30 = vsel %vm916_vm15, %v2710_v39, %v2712_v44 }
 0xb27   : > { %v2719_v42 = vadd.f32 %v2715_v30, %v2701_v8  ;;  %v2696_v49 = vpop.permute.xlu1 %2695 }
 0xb28   : > { %v2698_v52 = vsel %vm6138_vm8, %v2694_v32, %v2696_v49  ;;  %vm6145_vm8 = vmmov %vm6141_vm2 }
 0xb29   : > { %v2728_v18 = vmul.f32 %v5541_v26, %v2719_v42  ;;  %v2702_v31 = vadd.f32 %v2698_v52, %v2688_v17 }
 0xb2b   : > { %v2737_v28 = vadd.f32 %v5543_v38, %v2728_v18  ;;  %v2714_v34 = vpop.permute.xlu1 %2713 }
 0xb2c   : > { %v2716_v5 = vsel %vm916_vm15, %v2712_v44, %v2714_v34  ;;  %v4135_v44 = vld [vmem:[%s6028_s4 + $0x110] sm:$0xff]  ;;  %v4146_v34 = vld [vmem:[%s6029_s5 + $0x28] sm:$0xff] }
 0xb2d   : > { %v4126_v45 = vmul.f32 -1.442695, %v2737_v28  ;;  %v2720_v29 = vadd.f32 %v2716_v5, %v2702_v31  ;;  %v4147_v5 = vld [vmem:[%s6030_s6 + $0x28] sm:$0xff] }
 0xb2f   : > { %4287 = vpow2.f32 %v4126_v45  ;;  %v2729_v22 = vmul.f32 %v5541_v26, %v2720_v29 }
 0xb31   : > { %v2738_v14 = vadd.f32 %v5543_v38, %v2729_v22 }
 0xb33   : > { %v4127_v21 = vmul.f32 -1.442695, %v2738_v14 }
 0xb35   : > { %4289 = vpow2.f32 %v4127_v21 }
 0xb39   : > { %v4288_v53 = vpop.eup %4287 }
 0xb3a   : > { %v2745_v15 = vadd.f32 1.0, %v4288_v53 }
 0xb3c   : > { %4291 = vrcp.f32 %v2745_v15 }
 0xb3f   : > { %v4290_v58 = vpop.eup %4289 }
 0xb40   : > { %v2746_v32 = vadd.f32 1.0, %v4290_v58 }
 0xb42   : > { %4293 = vrcp.f32 %v2746_v32  ;;  %v6144_v32 = vld [vmem:[#allocation6_spill] sm:$0xff] }
 0xb46   : > { %v4292_v3 = vpop.eup %4291 }
 0xb47   : > { %v2751_v16 = vmul.f32 %v4292_v3, %v2737_v28 }
 0xb49   : > { %v3945_v26 = vadd.f32 %v2751_v16, %v5018_v0  ;;  %v4129_v0 = vld [vmem:[%s6028_s4 + $0xe0] sm:$0xff] }
 0xb4b   : > { %3953 = vst [vmem:[%s5573_s26] sm:$0xff] %v3945_v26 }
 0xb4c   : > { %v4294_v38 = vpop.eup %4293 }
 0xb4d   : > { %v2752_v33 = vmul.f32 %v4294_v38, %v2738_v14  ;;  %v6147_v38 = vld [vmem:[#allocation7_spill] sm:$0xff] }
 0xb4f   : > { %2790 = vmatprep.subr.mxu0 %v2752_v33  ;;  %v3946_v4 = vadd.f32 %v2752_v33, %v5009_v20  ;;  %v4131_v20 = vld [vmem:[%s6028_s4 + $0xf0] sm:$0xff] }
 0xb50   : > { %2791 = vmatpush1.msra.mxu0 %v2751_v16 }
 0xb51   : > { %3954 = vst [vmem:[%s5573_s26 + $0x8] sm:$0xff] %v3946_v4  ;;  %4137 = vmatmul.mubr.msk.f32.vlgmr.msra.gmra.mrb[40].mxu0 %vm962_vm0, %v4128_v62 }
 0xb52   : > { %2860 = vmatprep.mubr.f32.mxu0 %v6116_v36 }
 0xb55   : > { %4138 = vmatmul.mubr.msk.f32.gmra.mrb[42].mxu0 %vm962_vm0, %v4129_v0 }
 0xb56   : > { %2866 = vmatprep.mubr.f32.mxu0 %v6116_v36 }
 0xb59   : > { %4139 = vmatmul.mubr.msk.f32.gmra.mrb[44].mxu0 %vm962_vm0, %v4130_v10  ;;  %v6149_v10 = vld [vmem:[#allocation14_spill] sm:$0xff] }
 0xb5a   : > { %2872 = vmatprep.mubr.f32.mxu0 %v6116_v36 }
 0xb5d   : > { %4140 = vmatmul.mubr.msk.f32.gmra.mrb[46].mxu0 %vm962_vm0, %v4131_v20 }
 0xb5e   : > { %2878 = vmatprep.mubr.f32.mxu0 %v6116_v36 }
 0xb61   : > { %4141 = vmatmul.mubr.msk.f32.gmra.mrb[48].mxu0 %vm962_vm0, %v4132_v54 }
 0xb62   : > { %2884 = vmatprep.mubr.f32.mxu0 %v6116_v36 }
 0xb65   : > { %4142 = vmatmul.mubr.msk.f32.gmra.mrb[50].mxu0 %vm962_vm0, %v4133_v41  ;;  %v6150_v41 = vld [vmem:[#allocation8_spill] sm:$0xff] }
 0xb66   : > { %2890 = vmatprep.mubr.f32.mxu0 %v6116_v36 }
 0xb69   : > { %4143 = vmatmul.mubr.msk.f32.gmra.mrb[52].mxu0 %vm962_vm0, %v4134_v1 }
 0xb6a   : > { %2896 = vmatprep.mubr.f32.mxu0 %v6116_v36 }
 0xb6d   : > { %4144 = vmatmul.mubr.msk.f32.gmra.mrb[54].mxu0 %vm962_vm0, %v4135_v44 }
 0xb6e   : > { %2902 = vmatprep.mubr.f32.mxu0 %v6116_v36 }
 0xb71   : > { %4145 = vmatmul.mubr.msk.f32.gmra.mrb[56].mxu0 %vm962_vm0, %v4136_v19 }
 0xb72   : > { %3681 = vmatprep.mubr.f32.mxu0 %v6116_v36 }
 0xc24   : > { %v2856_v50 = vpop.f32.mrb[40].mxu0 }
 0xc25   : > { %v2858_v63 = vpop.f32.mrb[41].mxu0 }
 0xc28   : > { %v2862_v35 = vpop.f32.mrb[42].mxu0 }
 0xc29   : > { %2931 = vrot.lane.b32.xlu1 %v2862_v35, %s6139_s15  ;;  %v2864_v24 = vpop.f32.mrb[43].mxu0 }
 0xc2a   : > { %2933 = vrot.lane.b32.xlu0 %v2864_v24, %s6139_s15  ;;  %v6153_v24 = vld [vmem:[#allocation15_spill] sm:$0xff] }
 0xc2c   : > { %v2868_v7 = vpop.f32.mrb[44].mxu0 }
 0xc2d   : > { %2935 = vrot.lane.b32.xlu1 %v2868_v7, %s6139_s15  ;;  %v2870_v23 = vpop.f32.mrb[45].mxu0 }
 0xc2e   : > { %2937 = vrot.lane.b32.xlu0 %v2870_v23, %s6139_s15 }
 0xc30   : > { %v2874_v8 = vpop.f32.mrb[46].mxu0 }
 0xc31   : > { %2939 = vrot.lane.b32.xlu1 %v2874_v8, %s6139_s15  ;;  %v2876_v39 = vpop.f32.mrb[47].mxu0 }
 0xc32   : > { %2941 = vrot.lane.b32.xlu0 %v2876_v39, %s6139_s15 }
 0xc34   : > { %v2880_v40 = vpop.f32.mrb[48].mxu0 }
 0xc35   : > { %2943 = vrot.lane.b32.xlu1 %v2880_v40, %s6139_s15  ;;  %v2882_v30 = vpop.f32.mrb[49].mxu0 }
 0xc36   : > { %2945 = vrot.lane.b32.xlu0 %v2882_v30, %s6139_s15 }
 0xc38   : > { %v2886_v27 = vpop.f32.mrb[50].mxu0 }
 0xc39   : > { %2947 = vrot.lane.b32.xlu1 %v2886_v27, %s6139_s15  ;;  %v2888_v42 = vpop.f32.mrb[51].mxu0 }
 0xc3a   : > { %2949 = vrot.lane.b32.xlu0 %v2888_v42, %s6139_s15 }
 0xc3c   : > { %v2892_v49 = vpop.f32.mrb[52].mxu0 }
 0xc3d   : > { %2951 = vrot.lane.b32.xlu1 %v2892_v49, %s6139_s15  ;;  %v2894_v52 = vpop.f32.mrb[53].mxu0 }
 0xc3e   : > { %2953 = vrot.lane.b32.xlu0 %v2894_v52, %s6139_s15 }
 0xc40   : > { %v2898_v17 = vpop.f32.mrb[54].mxu0 }
 0xc41   : > { %2955 = vrot.lane.b32.xlu1 %v2898_v17, %s6139_s15  ;;  %v2900_v18 = vpop.f32.mrb[55].mxu0  ;;  %v6158_v17 = vld [vmem:[#allocation10_spill] sm:$0xff] }
 0xc42   : > { %2957 = vrot.lane.b32.xlu0 %v2900_v18, %s6139_s15 }
 0xc44   : > { %v2904_v28 = vpop.f32.mrb[56].mxu0 }
 0xc45   : > { %2959 = vrot.lane.b32.xlu1 %v2904_v28, %s6139_s15  ;;  %v2906_v31 = vpop.f32.mrb[57].mxu0 }
 0xc46   : > { %2961 = vrot.lane.b32.xlu0 %v2906_v31, %s6139_s15  ;;  %v6160_v31 = vld [vmem:[#allocation11_spill] sm:$0xff] }
 0xc49   : > { %2927 = vrot.lane.b32.xlu1 %v2856_v50, %s6139_s15 }
 0xc4a   : > { %2929 = vrot.lane.b32.xlu0 %v2858_v63, %s6139_s15  ;;  %v6152_v63 = vld [vmem:[#allocation9_spill] sm:$0xff] }
 0xc4e   : > { %3152 = vperm.xlu0 %4252, %v4146_v34  }
 0xc52   : > { %3161 = vperm.xlu0 %4252, %v4147_v5  }
 0xc9b   : > { %v2932_v45 = vpop.permute.xlu1 %2931 }
 0xc9c   : > { %v2934_v29 = vpop.permute.xlu0 %2933  ;;  %v2996_v22 = vsel %vm6140_vm11, 0.0, %v2932_v45  ;;  %vm6148_vm11 = vmmov %vm6141_vm2 }
 0xc9d   : > { %3018 = vrot.lane.b32.xlu1 %v2996_v22, %s4336_s21  ;;  %v3004_v14 = vsel %vm6141_vm2, %v2934_v29, 0.0  ;;  %v2964_v58 = vsel %vm6143_vm5, %v2932_v45, %v2934_v29  ;;  %vm6155_vm5 = vmmov %vm6141_vm2  ;;  %v6163_v22 = vld [vmem:[#allocation16_spill] sm:$0xff] }
 0xc9e   : > { %3022 = vrot.lane.b32.xlu0 %v3004_v14, %s4336_s21 }
 0xc9f   : > { %v2936_v21 = vpop.permute.xlu1 %2935 }
 0xca0   : > { %v2997_v53 = vsel %vm6142_vm3, 0.0, %v2936_v21  ;;  %v2938_v15 = vpop.permute.xlu0 %2937  ;;  %vm6154_vm3 = vmmov %vm6141_vm2 }
 0xca1   : > { %v3030_v3 = vmul.f32 %v2997_v53, %v6144_v32  ;;  %v3005_v16 = vsel %vm6145_vm8, %v2938_v15, 0.0  ;;  %3020 = vrot.lane.b32.xlu1 %v2964_v58, %s4336_s21  ;;  %v2965_v26 = vsel %vm6146_vm10, %v2936_v21, %v2938_v15  ;;  %vm6151_vm10 = vmmov %vm6141_vm2  ;;  %s6161_s21 = smov 92   ;;  %v6165_v53 = vld [vmem:[#allocation17_spill] sm:$0xff]  ;;  %v6166_v58 = vld [vmem:[#allocation12_spill] sm:$0xff] }
 0xca2   : > { %v3032_v33 = vmul.f32 %v3005_v16, %v6147_v38  ;;  %v3031_v20 = vmul.f32 %v2965_v26, %v6149_v10  ;;  %vm6156_vm8 = vmmov %vm6141_vm2 }
 0xca3   : > { %v2940_v62 = vpop.permute.xlu1 %2939  ;;  %3036 = vrot.lane.b32.xlu0 %v3030_v3, %s4347_s11 }
 0xca4   : > { %v2998_v4 = vsel %vm6148_vm11, 0.0, %v2940_v62  ;;  %v2942_v0 = vpop.permute.xlu0 %2941  ;;  %vm6157_vm11 = vmmov %vm6141_vm2 }
 0xca5   : > { %3040 = vrot.lane.b32.xlu1 %v3032_v33, %s4347_s11  ;;  %v3006_v54 = vsel %vm6141_vm2, %v2942_v0, 0.0  ;;  %v3048_v1 = vmul.f32 %v2998_v4, %v6150_v41  ;;  %v2966_v19 = vsel %vm6151_vm10, %v2940_v62, %v2942_v0  ;;  %vm6159_vm10 = vmmov %vm6141_vm2  ;;  %v6169_v62 = vld [vmem:[#allocation13_spill] sm:$0xff]  ;;  %v6171_v0 = vld [vmem:[#allocation20_spill] sm:$0xff] }
 0xca6   : > { %v3050_v35 = vmul.f32 %v3006_v54, %v6152_v63  ;;  %v3049_v7 = vmul.f32 %v2966_v19, %v6153_v24  ;;  %v6174_v41 = vld [vmem:[#allocation18_spill] sm:$0xff] }
 0xca7   : > { %v2944_v44 = vpop.permute.xlu1 %2943  ;;  %3038 = vrot.lane.b32.xlu0 %v3031_v20, %s4347_s11 }
 0xca8   : > { %v2946_v50 = vpop.permute.xlu0 %2945  ;;  %v2999_v39 = vsel %vm6154_vm3, 0.0, %v2944_v44  ;;  %vm6162_vm3 = vmmov %vm6141_vm2 }
 0xca9   : > { %3054 = vrot.lane.b32.xlu1 %v3048_v1, %s4340_s25  ;;  %v3007_v42 = vsel %vm6156_vm8, %v2946_v50, 0.0  ;;  %v2967_v52 = vsel %vm6141_vm2, %v2944_v44, %v2946_v50  ;;  %vm6167_vm8 = vmmov %vm6141_vm2  ;;  %v6177_v50 = vld [vmem:[#allocation19_spill] sm:$0xff] }
 0xcab   : > { %v2948_v23 = vpop.permute.xlu1 %2947  ;;  %3058 = vrot.lane.b32.xlu0 %v3050_v35, %s4340_s25 }
 0xcac   : > { %v2950_v8 = vpop.permute.xlu0 %2949  ;;  %v3000_v30 = vsel %vm6155_vm5, 0.0, %v2948_v23  ;;  %vm6164_vm5 = vmmov %vm6141_vm2 }
 0xcad   : > { %3056 = vrot.lane.b32.xlu1 %v3049_v7, %s4340_s25  ;;  %v3008_v49 = vsel %vm6157_vm11, %v2950_v8, 0.0  ;;  %v3080_v18 = vmul.f32 %v3000_v30, %v6158_v17  ;;  %v2968_v28 = vsel %vm6159_vm10, %v2948_v23, %v2950_v8  ;;  %vm6168_vm11 = vmmov %vm6141_vm2  ;;  %s6170_s25 = smov 62  }
 0xcae   : > { %v3082_v34 = vmul.f32 %v3008_v49, %v6160_v31  ;;  %v3081_v14 = vmul.f32 %v2968_v28, %v6163_v22  ;;  %vm6172_vm10 = vmmov %vm6141_vm2  ;;  %v6179_v22 = vld [vmem:[#allocation5_spill] sm:$0xff] }
 0xcaf   : > { %v2952_v40 = vpop.permute.xlu1 %2951  ;;  %3068 = vrot.lane.b32.xlu0 %v2999_v39, %s6131_s14 }
 0xcb0   : > { %v2954_v27 = vpop.permute.xlu0 %2953  ;;  %v3001_v21 = vsel %vm6164_vm5, 0.0, %v2952_v40  ;;  %vm6175_vm5 = vmmov %vm6141_vm2 }
 0xcb1   : > { %3072 = vrot.lane.b32.xlu1 %v3007_v42, %s6131_s14  ;;  %v2969_v29 = vsel %vm6162_vm3, %v2952_v40, %v2954_v27  ;;  %v3098_v32 = vmul.f32 %v3001_v21, %v6166_v58  ;;  %v3009_v26 = vsel %vm6167_vm8, %v2954_v27, 0.0  ;;  %vm6173_vm3 = vmmov %vm6141_vm2 }
 0xcb2   : > { %v3099_v15 = vmul.f32 %v2969_v29, %v6165_v53  ;;  %v3100_v4 = vmul.f32 %v3009_v26, %v6169_v62  ;;  %vm6176_vm8 = vmmov %vm6141_vm2 }
 0xcb3   : > { %3070 = vrot.lane.b32.xlu0 %v2967_v52, %s6131_s14  ;;  %v2956_v5 = vpop.permute.xlu1 %2955 }
 0xcb4   : > { %v2958_v45 = vpop.permute.xlu0 %2957  ;;  %v3002_v54 = vsel %vm6173_vm3, 0.0, %v2956_v5  ;;  %vm6182_vm3 = vcmask 506880  }
 0xcb5   : > { %3086 = vrot.lane.b32.xlu1 %v3080_v18, %s6161_s21  ;;  %v2970_v38 = vsel %vm6168_vm11, %v2956_v5, %v2958_v45  ;;  %v3010_v19 = vsel %vm6176_vm8, %v2958_v45, 0.0  ;;  %vm6178_vm11 = vmmov %vm6141_vm2 }
 0xcb7   : > { %3090 = vrot.lane.b32.xlu0 %v3082_v34, %s6161_s21  ;;  %v2960_v3 = vpop.permute.xlu1 %2959 }
 0xcb8   : > { %v2962_v16 = vpop.permute.xlu0 %2961  ;;  %v3003_v20 = vsel %vm6172_vm10, 0.0, %v2960_v3  ;;  %vm6180_vm10 = vcmask 752640  }
 0xcb9   : > { %3088 = vrot.lane.b32.xlu1 %v3081_v14, %s6161_s21  ;;  %v2971_v33 = vsel %vm6141_vm2, %v2960_v3, %v2962_v16  ;;  %v3130_v1 = vmul.f32 %v3003_v20, %v6174_v41  ;;  %v3011_v44 = vsel %vm6175_vm5, %v2962_v16, 0.0 }
 0xcba   : > { %v3131_v10 = vmul.f32 %v2971_v33, %v6171_v0  ;;  %v3132_v63 = vmul.f32 %v3011_v44, %v6177_v50 }
 0xcbb   : > { %3106 = vrot.lane.b32.xlu0 %v3099_v15, %s4345_s13  ;;  %v2928_v7 = vpop.permute.xlu1 %2927 }
 0xcbc   : > { %v2930_v35 = vpop.permute.xlu0 %2929  ;;  %v2995_v5 = vsel %vm6178_vm11, 0.0, %v2928_v7 }
 0xcbd   : > { %3104 = vrot.lane.b32.xlu1 %v3098_v32, %s4345_s13  ;;  %v3012_v14 = vmul.f32 %v2995_v5, %v6179_v22  ;;  %v2963_v32 = vsel %vm6141_vm2, %v2928_v7, %v2930_v35 }
 0xcbe   : > { %v3013_v62 = vmul.f32 %v2963_v32, %v4721_v37 }
 0xcbf   : > { %3120 = vrot.lane.b32.xlu0 %v2970_v38, %s6170_s25 }
 0xcc1   : > { %3108 = vrot.lane.b32.xlu1 %v3100_v4, %s4345_s13 }
 0xcc3   : > { %3138 = vrot.lane.b32.xlu0 %v3131_v10, %s4350_s19 }
 0xcc5   : > { %3118 = vrot.lane.b32.xlu1 %v3002_v54, %s6170_s25 }
 0xcc7   : > { %3136 = vrot.lane.b32.xlu0 %v3130_v1, %s4350_s19 }
 0xcc9   : > { %3122 = vrot.lane.b32.xlu1 %v3010_v19, %s6170_s25 }
 0xccd   : > { %3140 = vrot.lane.b32.xlu1 %v3132_v63, %s4350_s19  ;;  %v5711_v24 = vpop.permute.xlu0 %3152 }
 0xcd1   : > { %v5713_v23 = vpop.permute.xlu0 %3161 }
 0xd0f   : > { %v3019_v8 = vpop.permute.xlu1 %3018 }
 0xd10   : > { %v3023_v39 = vpop.permute.xlu0 %3022 }
 0xd13   : > { %v3021_v40 = vpop.permute.xlu1 %3020 }
 0xd14   : > { %v3024_v29 = vsel %vm775_vm9, %v3019_v8, %v3021_v40  ;;  %v3025_v38 = vsel %vm775_vm9, %v3021_v40, %v3023_v39  ;;  %vm6181_vm9 = vmmov %vm6180_vm10 }
 0xd15   : > { %v3037_v30 = vpop.permute.xlu0 %3036  ;;  %v3028_v15 = vadd.f32 %v3024_v29, %v3012_v14  ;;  %v3029_v54 = vadd.f32 %v3025_v38, %v3013_v62 }
 0xd17   : > { %v3041_v27 = vpop.permute.xlu1 %3040 }
 0xd19   : > { %v3039_v42 = vpop.permute.xlu0 %3038 }
 0xd1a   : > { %v3042_v53 = vsel %vm1274_vm1, %v3037_v30, %v3039_v42  ;;  %v3043_v10 = vsel %vm1274_vm1, %v3039_v42, %v3041_v27 }
 0xd1b   : > { %v3055_v49 = vpop.permute.xlu1 %3054  ;;  %v3046_v16 = vadd.f32 %v3042_v53, %v3028_v15  ;;  %v3047_v50 = vadd.f32 %v3043_v10, %v3029_v54  ;;  %v4152_v54 = vld [vmem:[%s6028_s4 + $0x130] sm:$0xff] }
 0xd1d   : > { %v3059_v52 = vpop.permute.xlu0 %3058 }
 0xd1f   : > { %v3057_v17 = vpop.permute.xlu1 %3056 }
 0xd20   : > { %v3060_v3 = vsel %vm873_vm13, %v3055_v49, %v3057_v17  ;;  %v3061_v44 = vsel %vm873_vm13, %v3057_v17, %v3059_v52  ;;  %vm6183_vm13 = vmmov %vm6182_vm3 }
 0xd21   : > { %v3069_v18 = vpop.permute.xlu0 %3068  ;;  %v3064_v4 = vadd.f32 %v3060_v3, %v3046_v16  ;;  %v3065_v8 = vadd.f32 %v3061_v44, %v3047_v50  ;;  %v4156_v44 = vld [vmem:[%s6028_s4 + $0x150] sm:$0xff]  ;;  %v4158_v50 = vld [vmem:[%s6028_s4 + $0x160] sm:$0xff] }
 0xd23   : > { %v3073_v28 = vpop.permute.xlu1 %3072 }
 0xd25   : > { %v3071_v31 = vpop.permute.xlu0 %3070 }
 0xd26   : > { %v3074_v33 = vsel %vm916_vm15, %v3069_v18, %v3071_v31  ;;  %v3075_v7 = vsel %vm916_vm15, %v3071_v31, %v3073_v28 }
 0xd27   : > { %v3087_v34 = vpop.permute.xlu1 %3086  ;;  %v3078_v41 = vadd.f32 %v3074_v33, %v3064_v4  ;;  %v3079_v27 = vadd.f32 %v3075_v7, %v3065_v8 }
 0xd29   : > { %v3091_v45 = vpop.permute.xlu0 %3090 }
 0xd2b   : > { %v3089_v21 = vpop.permute.xlu1 %3088 }
 0xd2c   : > { %v3092_v20 = vsel %vm6180_vm10, %v3087_v34, %v3089_v21  ;;  %v3093_v40 = vsel %vm6181_vm9, %v3089_v21, %v3091_v45 }
 0xd2d   : > { %v3107_v58 = vpop.permute.xlu0 %3106  ;;  %v3096_v63 = vadd.f32 %v3092_v20, %v3078_v41  ;;  %v3097_v17 = vadd.f32 %v3093_v40, %v3079_v27  ;;  %v4154_v41 = vld [vmem:[%s6028_s4 + $0x140] sm:$0xff] }
 0xd2f   : > { %v3105_v26 = vpop.permute.xlu1 %3104 }
 0xd30   : > { %v3110_v19 = vsel %vm1353_vm4, %v3105_v26, %v3107_v58 }
 0xd31   : > { %v3121_v0 = vpop.permute.xlu0 %3120  ;;  %v3114_v37 = vadd.f32 %v3110_v19, %v3096_v63  ;;  %v4157_v19 = vld [vmem:[%s6028_s4 + $0x158] sm:$0xff] }
 0xd33   : > { %v3109_v1 = vpop.permute.xlu1 %3108 }
 0xd34   : > { %v3111_v18 = vsel %vm1353_vm4, %v3107_v58, %v3109_v1  ;;  %v4155_v1 = vld [vmem:[%s6028_s4 + $0x148] sm:$0xff] }
 0xd35   : > { %v3139_v35 = vpop.permute.xlu0 %3138  ;;  %v3115_v28 = vadd.f32 %v3111_v18, %v3097_v17 }
 0xd37   : > { %v3119_v39 = vpop.permute.xlu1 %3118 }
 0xd38   : > { %v3124_v30 = vsel %vm6182_vm3, %v3119_v39, %v3121_v0 }
 0xd39   : > { %v3128_v42 = vadd.f32 %v3124_v30, %v3114_v37  ;;  %v3137_v49 = vpop.permute.xlu0 %3136 }
 0xd3a   : > { %v3142_v52 = vsel %vm1412_vm12, %v3137_v49, %v3139_v35 }
 0xd3b   : > { %v3146_v34 = vadd.f32 %v3142_v52, %v3128_v42  ;;  %v3123_v5 = vpop.permute.xlu1 %3122 }
 0xd3c   : > { %v3125_v29 = vsel %vm6183_vm13, %v3121_v0, %v3123_v5 }
 0xd3d   : > { %v3155_v31 = vmul.f32 %v5711_v24, %v3146_v34  ;;  %v3129_v45 = vadd.f32 %v3125_v29, %v3115_v28 }
 0xd3f   : > { %v3164_v22 = vadd.f32 %v5713_v23, %v3155_v31  ;;  %v3141_v14 = vpop.permute.xlu1 %3140  ;;  %v4168_v31 = vld [vmem:[%s6029_s5 + $0x30] sm:$0xff] }
 0xd40   : > { %v3143_v21 = vsel %vm1412_vm12, %v3139_v35, %v3141_v14 }
 0xd41   : > { %v4148_v53 = vmul.f32 -1.442695, %v3164_v22  ;;  %v3147_v15 = vadd.f32 %v3143_v21, %v3129_v45 }
 0xd43   : > { %4295 = vpow2.f32 %v4148_v53  ;;  %v3156_v58 = vmul.f32 %v5711_v24, %v3147_v15  ;;  %v4150_v24 = vld [vmem:[%s6028_s4 + $0x120] sm:$0xff] }
 0xd45   : > { %v3165_v32 = vadd.f32 %v5713_v23, %v3156_v58 }
 0xd47   : > { %v4149_v3 = vmul.f32 -1.442695, %v3165_v32 }
 0xd49   : > { %4297 = vpow2.f32 %v4149_v3 }
 0xd4d   : > { %v4296_v16 = vpop.eup %4295 }
 0xd4e   : > { %v3172_v26 = vadd.f32 1.0, %v4296_v16 }
 0xd50   : > { %4299 = vrcp.f32 %v3172_v26 }
 0xd53   : > { %v4298_v38 = vpop.eup %4297 }
 0xd54   : > { %v3173_v33 = vadd.f32 1.0, %v4298_v38 }
 0xd56   : > { %4301 = vrcp.f32 %v3173_v33 }
 0xd5a   : > { %v4300_v62 = vpop.eup %4299 }
 0xd5b   : > { %v3178_v4 = vmul.f32 %v4300_v62, %v3164_v22 }
 0xd5d   : > { %v3947_v0 = vadd.f32 %v3178_v4, %v5004_v48  ;;  %v4151_v48 = vld [vmem:[%s6028_s4 + $0x128] sm:$0xff] }
 0xd5f   : > { %3955 = vst [vmem:[%s5573_s26 + $0x10] sm:$0xff] %v3947_v0 }
 0xd60   : > { %v4302_v10 = vpop.eup %4301 }
 0xd61   : > { %v3179_v20 = vmul.f32 %v4302_v10, %v3165_v32 }
 0xd63   : > { %3217 = vmatprep.subr.mxu1 %v3179_v20  ;;  %v3948_v23 = vadd.f32 %v3179_v20, %v5013_v2  ;;  %v4153_v2 = vld [vmem:[%s6028_s4 + $0x138] sm:$0xff] }
 0xd64   : > { %3218 = vmatpush1.msra.mxu1 %v3178_v4  ;;  %v6185_v20 = vld [vmem:[#allocation21_spill] sm:$0xff] }
 0xd65   : > { %3956 = vst [vmem:[%s5573_s26 + $0x18] sm:$0xff] %v3948_v23  ;;  %4159 = vmatmul.mubr.msk.f32.vlgmr.msra.gmra.mrb[58].mxu1 %vm962_vm0, %v4150_v24 }
 0xd66   : > { %3287 = vmatprep.mubr.f32.mxu1 %v6116_v36 }
 0xd69   : > { %4160 = vmatmul.mubr.msk.f32.gmra.mrb[60].mxu1 %vm962_vm0, %v4151_v48 }
 0xd6a   : > { %3293 = vmatprep.mubr.f32.mxu1 %v6116_v36 }
 0xd6d   : > { %4161 = vmatmul.mubr.msk.f32.gmra.mrb[62].mxu1 %vm962_vm0, %v4152_v54 }
 0xd6e   : > { %3299 = vmatprep.mubr.f32.mxu1 %v6116_v36 }
 0xd71   : > { %4162 = vmatmul.mubr.msk.f32.gmra.mrb[64].mxu1 %vm962_vm0, %v4153_v2 }
 0xd72   : > { %3305 = vmatprep.mubr.f32.mxu1 %v6116_v36 }
 0xd75   : > { %4163 = vmatmul.mubr.msk.f32.gmra.mrb[66].mxu1 %vm962_vm0, %v4154_v41  ;;  %v6187_v41 = vld [vmem:[#allocation25_spill] sm:$0xff] }
 0xd76   : > { %3311 = vmatprep.mubr.f32.mxu1 %v6116_v36 }
 0xd79   : > { %4164 = vmatmul.mubr.msk.f32.gmra.mrb[68].mxu1 %vm962_vm0, %v4155_v1 }
 0xd7a   : > { %3317 = vmatprep.mubr.f32.mxu1 %v6116_v36 }
 0xd7d   : > { %4165 = vmatmul.mubr.msk.f32.gmra.mrb[70].mxu1 %vm962_vm0, %v4156_v44 }
 0xd7e   : > { %3323 = vmatprep.mubr.f32.mxu1 %v6116_v36 }
 0xd81   : > { %4166 = vmatmul.mubr.msk.f32.gmra.mrb[72].mxu1 %vm962_vm0, %v4157_v19 }
 0xd82   : > { %3329 = vmatprep.mubr.f32.mxu1 %v6116_v36 }
 0xd85   : > { %4167 = vmatmul.mubr.msk.f32.gmra.mrb[74].mxu1 %vm962_vm0, %v4158_v50 }
 0xe38   : > { %v3283_v63 = vpop.f32.mrb[58].mxu1 }
 0xe39   : > { %v3285_v35 = vpop.f32.mrb[59].mxu1 }
 0xe3c   : > { %v3289_v7 = vpop.f32.mrb[60].mxu1 }
 0xe3d   : > { %3358 = vrot.lane.b32.xlu1 %v3289_v7, %s6184_s29  ;;  %v3291_v8 = vpop.f32.mrb[61].mxu1 }
 0xe3e   : > { %3360 = vrot.lane.b32.xlu0 %v3291_v8, %s6184_s29 }
 0xe40   : > { %v3295_v37 = vpop.f32.mrb[62].mxu1 }
 0xe41   : > { %3362 = vrot.lane.b32.xlu1 %v3295_v37, %s6184_s29  ;;  %v3297_v39 = vpop.f32.mrb[63].mxu1  ;;  %v6188_v37 = vld [vmem:[#allocation23_spill] sm:$0xff] }
 0xe42   : > { %3364 = vrot.lane.b32.xlu0 %v3297_v39, %s6184_s29 }
 0xe44   : > { %v3301_v40 = vpop.f32.mrb[64].mxu1 }
 0xe45   : > { %3366 = vrot.lane.b32.xlu1 %v3301_v40, %s6184_s29  ;;  %v3303_v30 = vpop.f32.mrb[65].mxu1 }
 0xe46   : > { %3368 = vrot.lane.b32.xlu0 %v3303_v30, %s6184_s29  ;;  %v6189_v30 = vld [vmem:[#allocation26_spill] sm:$0xff] }
 0xe48   : > { %v3307_v27 = vpop.f32.mrb[66].mxu1 }
 0xe49   : > { %3370 = vrot.lane.b32.xlu1 %v3307_v27, %s6184_s29  ;;  %v3309_v42 = vpop.f32.mrb[67].mxu1 }
 0xe4a   : > { %3372 = vrot.lane.b32.xlu0 %v3309_v42, %s6184_s29  ;;  %v6191_v42 = vld [vmem:[#allocation24_spill] sm:$0xff] }
 0xe4c   : > { %v3313_v49 = vpop.f32.mrb[68].mxu1 }
 0xe4d   : > { %3374 = vrot.lane.b32.xlu1 %v3313_v49, %s6184_s29  ;;  %v3315_v18 = vpop.f32.mrb[69].mxu1 }
 0xe4e   : > { %3376 = vrot.lane.b32.xlu0 %v3315_v18, %s6184_s29 }
 0xe50   : > { %v3319_v52 = vpop.f32.mrb[70].mxu1 }
 0xe51   : > { %v3321_v17 = vpop.f32.mrb[71].mxu1 }
 0xe54   : > { %v3325_v34 = vpop.f32.mrb[72].mxu1 }
 0xe55   : > { %v3327_v5 = vpop.f32.mrb[73].mxu1 }
 0xe56   : > { %3384 = vrot.lane.b32.xlu1 %v3327_v5, %s6184_s29 }
 0xe58   : > { %v3331_v29 = vpop.f32.mrb[74].mxu1 }
 0xe59   : > { %v3333_v28 = vpop.f32.mrb[75].mxu1 }
 0xe5a   : > { %3382 = vrot.lane.b32.xlu1 %v3325_v34, %s6184_s29  ;;  %3388 = vrot.lane.b32.xlu0 %v3333_v28, %s6184_s29 }
 0xe5e   : > { %3354 = vrot.lane.b32.xlu1 %v3283_v63, %s6184_s29  ;;  %3386 = vrot.lane.b32.xlu0 %v3331_v29, %s6184_s29 }
 0xe62   : > { %3380 = vrot.lane.b32.xlu1 %v3321_v17, %s6184_s29  ;;  %3356 = vrot.lane.b32.xlu0 %v3285_v35, %s6184_s29  ;;  %v4169_v17 = vld [vmem:[%s6030_s6 + $0x30] sm:$0xff] }
 0xe66   : > { %3378 = vrot.lane.b32.xlu0 %v3319_v52, %s6184_s29 }
 0xe6a   : > { %3552 = vperm.xlu0 %4252, %v4168_v31  }
 0xeaf   : > { %v3359_v22 = vpop.permute.xlu1 %3358 }
 0xeb0   : > { %v3420_v45 = vsel %vm1395_vm6, 0.0, %v3359_v22  ;;  %v3361_v14 = vpop.permute.xlu0 %3360 }
 0xeb1   : > { %v3425_v21 = vsel %vm1395_vm6, %v3361_v14, 0.0  ;;  %3439 = vrot.lane.b32.xlu1 %v3420_v45, %s4347_s11  ;;  %v3391_v15 = vsel %vm1395_vm6, %v3359_v22, %v3361_v14 }
 0xeb2   : > { %3443 = vrot.lane.b32.xlu0 %v3425_v21, %s4347_s11 }
 0xeb3   : > { %v3363_v53 = vpop.permute.xlu1 %3362 }
 0xeb4   : > { %v3421_v58 = vsel %vm1395_vm6, 0.0, %v3363_v53  ;;  %v3365_v32 = vpop.permute.xlu0 %3364 }
 0xeb5   : > { %v3451_v3 = vmul.f32 %v3421_v58, %v5094_v60  ;;  %v3426_v16 = vsel %vm1395_vm6, %v3365_v32, 0.0  ;;  %3441 = vrot.lane.b32.xlu1 %v3391_v15, %s4347_s11  ;;  %v3392_v26 = vsel %vm1395_vm6, %v3363_v53, %v3365_v32 }
 0xeb6   : > { %v3453_v38 = vmul.f32 %v3426_v16, %v5096_v9  ;;  %v3452_v0 = vmul.f32 %v3392_v26, %v5121_v57  ;;  %v6186_v9 = vld [vmem:[#allocation22_spill] sm:$0xff] }
 0xeb7   : > { %v3367_v33 = vpop.permute.xlu1 %3366  ;;  %3457 = vrot.lane.b32.xlu0 %v3451_v3, %s4353_s30 }
 0xeb8   : > { %v3422_v62 = vsel %vm1395_vm6, 0.0, %v3367_v33  ;;  %v3369_v4 = vpop.permute.xlu0 %3368 }
 0xeb9   : > { %3461 = vrot.lane.b32.xlu1 %v3453_v38, %s4353_s30  ;;  %v3427_v10 = vsel %vm1395_vm6, %v3369_v4, 0.0  ;;  %v3469_v24 = vmul.f32 %v3422_v62, %v6185_v20  ;;  %v3393_v48 = vsel %vm1395_vm6, %v3367_v33, %v3369_v4 }
 0xeba   : > { %v3471_v54 = vmul.f32 %v3427_v10, %v6186_v9  ;;  %v3470_v1 = vmul.f32 %v3393_v48, %v6187_v41 }
 0xebb   : > { %v3371_v23 = vpop.permute.xlu1 %3370  ;;  %3459 = vrot.lane.b32.xlu0 %v3452_v0, %s4353_s30 }
 0xebc   : > { %v3373_v2 = vpop.permute.xlu0 %3372  ;;  %v3423_v44 = vsel %vm1395_vm6, 0.0, %v3371_v23 }
 0xebd   : > { %3475 = vrot.lane.b32.xlu1 %v3469_v24, %s4345_s13  ;;  %v3428_v63 = vsel %vm1395_vm6, %v3373_v2, 0.0  ;;  %v3394_v7 = vsel %vm1395_vm6, %v3371_v23, %v3373_v2 }
 0xebf   : > { %3479 = vrot.lane.b32.xlu0 %v3471_v54, %s4345_s13  ;;  %v3375_v19 = vpop.permute.xlu1 %3374 }
 0xec0   : > { %v3377_v50 = vpop.permute.xlu0 %3376  ;;  %v3424_v35 = vsel %vm1395_vm6, 0.0, %v3375_v19 }
 0xec1   : > { %3477 = vrot.lane.b32.xlu1 %v3470_v1, %s4345_s13  ;;  %v3395_v8 = vsel %vm1395_vm6, %v3375_v19, %v3377_v50  ;;  %v3501_v39 = vmul.f32 %v3424_v35, %v6188_v37  ;;  %v3429_v40 = vsel %vm1395_vm6, %v3377_v50, 0.0  ;;  %s6190_s13 = smov 56  }
 0xec2   : > { %v3502_v27 = vmul.f32 %v3395_v8, %v6189_v30  ;;  %v3503_v49 = vmul.f32 %v3429_v40, %v6191_v42 }
 0xec3   : > { %3489 = vrot.lane.b32.xlu0 %v3423_v44, %s4350_s19 }
 0xec5   : > { %3493 = vrot.lane.b32.xlu1 %v3428_v63, %s4350_s19 }
 0xec7   : > { %3491 = vrot.lane.b32.xlu0 %v3394_v7, %s4350_s19 }
 0xec8   : > { %v3385_v18 = vpop.permute.xlu1 %3384 }
 0xec9   : > { %3507 = vrot.lane.b32.xlu1 %v3501_v39, %s6190_s13  ;;  %v3431_v34 = vsel %vm1395_vm6, %v3385_v18, 0.0 }
 0xecb   : > { %3509 = vrot.lane.b32.xlu0 %v3502_v27, %s6190_s13 }
 0xecc   : > { %v3389_v52 = vpop.permute.xlu0 %3388  ;;  %v3383_v29 = vpop.permute.xlu1 %3382 }
 0xecd   : > { %3511 = vrot.lane.b32.xlu1 %v3503_v49, %s6190_s13  ;;  %v3432_v5 = vsel %vm1395_vm6, %v3389_v52, 0.0  ;;  %v3397_v22 = vsel %vm1395_vm6, %v3383_v29, %v3385_v18 }
 0xece   : > { %v3535_v28 = vmul.f32 %v3432_v5, %v5121_v57 }
 0xecf   : > { %3561 = vperm.xlu0 %4252, %v4169_v17  }
 0xed0   : > { %v3387_v31 = vpop.permute.xlu0 %3386  ;;  %v3355_v53 = vpop.permute.xlu1 %3354 }
 0xed1   : > { %3526 = vrot.lane.b32.xlu1 %v3431_v34, %s4347_s11  ;;  %v3398_v45 = vsel %vm1395_vm6, %v3387_v31, %v3389_v52  ;;  %v3419_v23 = vsel %vm1395_vm6, 0.0, %v3355_v53 }
 0xed2   : > { %v3534_v14 = vmul.f32 %v3398_v45, %v5094_v60  ;;  %v3433_v44 = vmul.f32 %v3419_v23, %v4964_v61 }
 0xed3   : > { %3540 = vrot.lane.b32.xlu0 %v3535_v28, %s4353_s30 }
 0xed4   : > { %v3357_v21 = vpop.permute.xlu0 %3356  ;;  %v3381_v58 = vpop.permute.xlu1 %3380 }
 0xed5   : > { %3524 = vrot.lane.b32.xlu1 %v3397_v22, %s4347_s11  ;;  %v3390_v60 = vsel %vm1395_vm6, %v3355_v53, %v3357_v21  ;;  %v3430_v17 = vsel %vm1395_vm6, %v3381_v58, 0.0 }
 0xed6   : > { %v3434_v9 = vmul.f32 %v3390_v60, %v4967_v47  ;;  %v3520_v31 = vmul.f32 %v3430_v17, %v4967_v47 }
 0xed8   : > { %v3379_v15 = vpop.permute.xlu0 %3378 }
 0xed9   : > { %3538 = vrot.lane.b32.xlu1 %v3534_v14, %s4353_s30  ;;  %v3396_v28 = vsel %vm1395_vm6, %v3379_v15, %v3381_v58 }
 0xeda   : > { %v3519_v14 = vmul.f32 %v3396_v28, %v4964_v61 }
 0xee9   : > { %v3553_v57 = vpop.permute.xlu0 %3552 }
 0xf23   : > { %v3440_v32 = vpop.permute.xlu1 %3439 }
 0xf24   : > { %v3444_v3 = vpop.permute.xlu0 %3443 }
 0xf27   : > { %v3442_v16 = vpop.permute.xlu1 %3441 }
 0xf28   : > { %v3446_v48 = vsel %vm1274_vm1, %v3442_v16, %v3444_v3  ;;  %v3445_v41 = vsel %vm1274_vm1, %v3440_v32, %v3442_v16 }
 0xf29   : > { %v3458_v26 = vpop.permute.xlu0 %3457  ;;  %v3450_v19 = vadd.f32 %v3446_v48, %v3434_v9  ;;  %v3449_v35 = vadd.f32 %v3445_v41, %v3433_v44 }
 0xf2b   : > { %v3462_v38 = vpop.permute.xlu1 %3461 }
 0xf2d   : > { %v3460_v33 = vpop.permute.xlu0 %3459 }
 0xf2e   : > { %v3464_v1 = vsel %vm1766_vm7, %v3460_v33, %v3462_v38  ;;  %v3463_v50 = vsel %vm1766_vm7, %v3458_v26, %v3460_v33 }
 0xf2f   : > { %v3476_v62 = vpop.permute.xlu1 %3475  ;;  %v3468_v7 = vadd.f32 %v3464_v1, %v3450_v19  ;;  %v3467_v39 = vadd.f32 %v3463_v50, %v3449_v35  ;;  %v4172_v1 = vld [vmem:[%s6028_s4 + $0x168] sm:$0xff]  ;;  %v4173_v19 = vld [vmem:[%s6028_s4 + $0x170] sm:$0xff]  ;;  %v4178_v35 = vld [vmem:[%s6028_s4 + $0x198] sm:$0xff] }
 0xf30   : > { %v4176_v50 = vld [vmem:[%s6028_s4 + $0x188] sm:$0xff] }
 0xf31   : > { %v3480_v0 = vpop.permute.xlu0 %3479 }
 0xf33   : > { %v3478_v4 = vpop.permute.xlu1 %3477 }
 0xf34   : > { %v3482_v63 = vsel %vm1353_vm4, %v3478_v4, %v3480_v0  ;;  %v3481_v8 = vsel %vm1353_vm4, %v3476_v62, %v3478_v4 }
 0xf35   : > { %v3490_v20 = vpop.permute.xlu0 %3489  ;;  %v3486_v40 = vadd.f32 %v3482_v63, %v3468_v7  ;;  %v3485_v18 = vadd.f32 %v3481_v8, %v3467_v39  ;;  %v4177_v63 = vld [vmem:[%s6028_s4 + $0x190] sm:$0xff]  ;;  %v4179_v7 = vld [vmem:[%s6028_s4 + $0x1a0] sm:$0xff]  ;;  %v4180_v8 = vld [vmem:[%s6028_s4 + $0x1a8] sm:$0xff] }
 0xf37   : > { %v3494_v10 = vpop.permute.xlu1 %3493 }
 0xf39   : > { %v3492_v54 = vpop.permute.xlu0 %3491 }
 0xf3a   : > { %v3496_v37 = vsel %vm1412_vm12, %v3492_v54, %v3494_v10  ;;  %v3495_v42 = vsel %vm1412_vm12, %v3490_v20, %v3492_v54  ;;  %vm6195_vm12 = vcmask 916480  }
 0xf3b   : > { %v3508_v24 = vpop.permute.xlu1 %3507  ;;  %v3500_v52 = vadd.f32 %v3496_v37, %v3486_v40  ;;  %v3499_v5 = vadd.f32 %v3495_v42, %v3485_v18  ;;  %vm6198_vm15 = vmmov %vm6195_vm12 }
 0xf3c   : > { %vm6199_vm4 = vmmov %vm6195_vm12 }
 0xf3d   : > { %v3510_v30 = vpop.permute.xlu0 %3509 }
 0xf3e   : > { %v3513_v34 = vsel %vm1834_vm14, %v3508_v24, %v3510_v30 }
 0xf3f   : > { %v3512_v2 = vpop.permute.xlu1 %3511  ;;  %v3517_v22 = vadd.f32 %v3513_v34, %v3499_v5 }
 0xf40   : > { %v3514_v49 = vsel %vm1834_vm14, %v3510_v30, %v3512_v2  ;;  %vm6196_vm14 = vmmov %vm6195_vm12 }
 0xf41   : > { %v3518_v29 = vadd.f32 %v3514_v49, %v3500_v52  ;;  %v3521_v16 = vadd.f32 %v3519_v14, %v3517_v22  ;;  %v4190_v14 = vld [vmem:[%s6029_s5 + $0x38] sm:$0xff] }
 0xf43   : > { %v3527_v27 = vpop.permute.xlu1 %3526  ;;  %v3522_v21 = vadd.f32 %v3520_v31, %v3518_v29 }
 0xf44   : > { %v3529_v32 = vsel %vm1274_vm1, %v3527_v27, %v5181_v13 }
 0xf45   : > { %v3533_v26 = vadd.f32 %v3529_v32, %v3522_v21  ;;  %v4191_v21 = vld [vmem:[%s6030_s6 + $0x38] sm:$0xff] }
 0xf47   : > { %v3525_v45 = vpop.permute.xlu1 %3524 }
 0xf48   : > { %v3528_v3 = vsel %vm1274_vm1, %v3525_v45, %v3527_v27 }
 0xf49   : > { %v3532_v38 = vadd.f32 %v3528_v3, %v3521_v16 }
 0xf4b   : > { %v3539_v33 = vpop.permute.xlu1 %3538 }
 0xf4e   : > { %v3562_v53 = vpop.permute.xlu0 %3561 }
 0xf52   : > { %v3541_v62 = vpop.permute.xlu0 %3540 }
 0xf53   : > { %v3542_v15 = vsel %vm1766_vm7, %v3539_v33, %v3541_v62  ;;  %v3543_v47 = vsel %vm1766_vm7, %v3541_v62, %v5205_v12  ;;  %v6192_v62 = vld [vmem:[#allocation29_spill] sm:$0xff] }
 0xf54   : > { %v3546_v58 = vadd.f32 %v3542_v15, %v3532_v38  ;;  %v3547_v4 = vadd.f32 %v3543_v47, %v3533_v26 }
 0xf56   : > { %v3555_v61 = vmul.f32 %v3553_v57, %v3546_v58  ;;  %v3556_v0 = vmul.f32 %v3553_v57, %v3547_v4  ;;  %v6193_v58 = vld [vmem:[#allocation28_spill] sm:$0xff] }
 0xf58   : > { %v3564_v10 = vadd.f32 %v3562_v53, %v3555_v61  ;;  %v3565_v20 = vadd.f32 %v3562_v53, %v3556_v0 }
 0xf5a   : > { %v4170_v24 = vmul.f32 -1.442695, %v3564_v10  ;;  %v4171_v13 = vmul.f32 -1.442695, %v3565_v20 }
 0xf5c   : > { %4303 = vpow2.f32 %v4170_v24 }
 0xf5d   : > { %4305 = vpow2.f32 %v4171_v13 }
 0xf66   : > { %v4304_v60 = vpop.eup %4303 }
 0xf67   : > { %v4306_v23 = vpop.eup %4305  ;;  %v3572_v48 = vadd.f32 1.0, %v4304_v60 }
 0xf68   : > { %v3573_v9 = vadd.f32 1.0, %v4306_v23 }
 0xf69   : > { %4307 = vrcp.f32 %v3572_v48  ;;  %v6194_v48 = vld [vmem:[#allocation27_spill] sm:$0xff] }
 0xf6a   : > { %4309 = vrcp.f32 %v3573_v9 }
 0xf73   : > { %v4308_v54 = vpop.eup %4307 }
 0xf74   : > { %v4310_v12 = vpop.eup %4309  ;;  %v3578_v2 = vmul.f32 %v4308_v54, %v3564_v10 }
 0xf75   : > { %v3579_v41 = vmul.f32 %v4310_v12, %v3565_v20 }
 0xf76   : > { %v3949_v57 = vadd.f32 %v3578_v2, %v5399_v51  ;;  %v4174_v51 = vld [vmem:[%s6028_s4 + $0x178] sm:$0xff] }
 0xf77   : > { %3617 = vmatprep.subr.mxu0 %v3579_v41  ;;  %v3950_v44 = vadd.f32 %v3579_v41, %v5390_v25  ;;  %v4175_v25 = vld [vmem:[%s6028_s4 + $0x180] sm:$0xff] }
 0xf78   : > { %3618 = vmatpush1.msra.mxu0 %v3578_v2  ;;  %3957 = vst [vmem:[%s5573_s26 + $0x20] sm:$0xff] %v3949_v57 }
 0xf79   : > { %3958 = vst [vmem:[%s5573_s26 + $0x28] sm:$0xff] %v3950_v44  ;;  %4181 = vmatmul.mubr.msk.f32.vlgmr.msra.gmra.mrb[58].mxu0 %vm962_vm0, %v4172_v1 }
 0xf7a   : > { %3686 = vmatprep.mubr.f32.mxu0 %v6116_v36 }
 0xf7d   : > { %4182 = vmatmul.mubr.msk.f32.gmra.mrb[60].mxu0 %vm962_vm0, %v4173_v19 }
 0xf7e   : > { %3692 = vmatprep.mubr.f32.mxu0 %v6116_v36 }
 0xf81   : > { %4183 = vmatmul.mubr.msk.f32.gmra.mrb[62].mxu0 %vm962_vm0, %v4174_v51 }
 0xf82   : > { %3698 = vmatprep.mubr.f32.mxu0 %v6116_v36 }
 0xf85   : > { %4184 = vmatmul.mubr.msk.f32.gmra.mrb[64].mxu0 %vm962_vm0, %v4175_v25 }
 0xf86   : > { %3704 = vmatprep.mubr.f32.mxu0 %v6116_v36 }
 0xf89   : > { %4185 = vmatmul.mubr.msk.f32.gmra.mrb[66].mxu0 %vm962_vm0, %v4176_v50 }
 0xf8a   : > { %3710 = vmatprep.mubr.f32.mxu0 %v6116_v36 }
 0xf8d   : > { %4186 = vmatmul.mubr.msk.f32.gmra.mrb[68].mxu0 %vm962_vm0, %v4177_v63 }
 0xf8e   : > { %3716 = vmatprep.mubr.f32.mxu0 %v6116_v36 }
 0xf91   : > { %4187 = vmatmul.mubr.msk.f32.gmra.mrb[70].mxu0 %vm962_vm0, %v4178_v35 }
 0xf92   : > { %3722 = vmatprep.mubr.f32.mxu0 %v6116_v36 }
 0xf95   : > { %4188 = vmatmul.mubr.msk.f32.gmra.mrb[72].mxu0 %vm962_vm0, %v4179_v7 }
 0xf96   : > { %3728 = vmatprep.mubr.f32.mxu0 %v6116_v36 }
 0xf99   : > { %4189 = vmatmul.mubr.msk.f32.gmra.mrb[74].mxu0 %vm962_vm0, %v4180_v8 }
0x104c   : > { %v3683_v37 = vpop.f32.mrb[58].mxu0 }
0x104d   : > { %v3685_v39 = vpop.f32.mrb[59].mxu0 }
0x1050   : > { %v3688_v40 = vpop.f32.mrb[60].mxu0 }
0x1051   : > { %3754 = vrot.lane.b32.xlu0 %v3688_v40, %s4351_s17  ;;  %v3690_v30 = vpop.f32.mrb[61].mxu0 }
0x1052   : > { %3756 = vrot.lane.b32.xlu1 %v3690_v30, %s4351_s17 }
0x1054   : > { %v3694_v27 = vpop.f32.mrb[62].mxu0 }
0x1055   : > { %3758 = vrot.lane.b32.xlu0 %v3694_v27, %s4351_s17  ;;  %v3696_v42 = vpop.f32.mrb[63].mxu0 }
0x1056   : > { %3760 = vrot.lane.b32.xlu1 %v3696_v42, %s4351_s17 }
0x1058   : > { %v3700_v36 = vpop.f32.mrb[64].mxu0 }
0x1059   : > { %v3702_v49 = vpop.f32.mrb[65].mxu0 }
0x105c   : > { %v3706_v18 = vpop.f32.mrb[66].mxu0 }
0x105d   : > { %3766 = vrot.lane.b32.xlu0 %v3706_v18, %s4351_s17  ;;  %v3708_v52 = vpop.f32.mrb[67].mxu0 }
0x105e   : > { %3768 = vrot.lane.b32.xlu1 %v3708_v52, %s4351_s17 }
0x1060   : > { %v3712_v17 = vpop.f32.mrb[68].mxu0 }
0x1061   : > { %3770 = vrot.lane.b32.xlu0 %v3712_v17, %s4351_s17  ;;  %v3714_v34 = vpop.f32.mrb[69].mxu0 }
0x1062   : > { %3772 = vrot.lane.b32.xlu1 %v3714_v34, %s4351_s17 }
0x1064   : > { %v3718_v5 = vpop.f32.mrb[70].mxu0 }
0x1065   : > { %v3720_v29 = vpop.f32.mrb[71].mxu0 }
0x1068   : > { %v3724_v28 = vpop.f32.mrb[72].mxu0 }
0x1069   : > { %3778 = vrot.lane.b32.xlu0 %v3724_v28, %s4351_s17  ;;  %v3726_v31 = vpop.f32.mrb[73].mxu0 }
0x106a   : > { %3780 = vrot.lane.b32.xlu1 %v3726_v31, %s4351_s17 }
0x106c   : > { %v3730_v22 = vpop.f32.mrb[74].mxu0 }
0x106d   : > { %3782 = vrot.lane.b32.xlu0 %v3730_v22, %s4351_s17  ;;  %v3732_v45 = vpop.f32.mrb[75].mxu0 }
0x106e   : > { %3784 = vrot.lane.b32.xlu1 %v3732_v45, %s4351_s17 }
0x1071   : > { %3752 = vrot.lane.b32.xlu0 %v3683_v37, %s4351_s17 }
0x1072   : > { %3762 = vrot.lane.b32.xlu1 %v3700_v36, %s4351_s17 }
0x1075   : > { %3764 = vrot.lane.b32.xlu0 %v3702_v49, %s4351_s17 }
0x1076   : > { %3776 = vrot.lane.b32.xlu1 %v3720_v29, %s4351_s17 }
0x1079   : > { %3774 = vrot.lane.b32.xlu0 %v3718_v5, %s4351_s17 }
0x107a   : > { %3917 = vperm.xlu1 %4253, %v4190_v14  }
0x107d   : > { %3926 = vperm.xlu0 %4252, %v4191_v21  }
0x10c3   : > { %v3755_v53 = vpop.permute.xlu0 %3754 }
0x10c4   : > { %v3811_v32 = vsel %vm962_vm0, 0.0, %v3755_v53  ;;  %v3757_v3 = vpop.permute.xlu1 %3756 }
0x10c5   : > { %v3786_v16 = vsel %vm962_vm0, %v3755_v53, %v3757_v3  ;;  %3824 = vrot.lane.b32.xlu1 %v3811_v32, %s4353_s30  ;;  %v6197_v53 = vld [vmem:[#allocation30_spill] sm:$0xff] }
0x10c6   : > { %3826 = vrot.lane.b32.xlu0 %v3786_v16, %s4353_s30 }
0x10c7   : > { %v3759_v26 = vpop.permute.xlu0 %3758 }
0x10c8   : > { %v3812_v38 = vsel %vm962_vm0, 0.0, %v3759_v26  ;;  %v3761_v33 = vpop.permute.xlu1 %3760 }
0x10c9   : > { %v3834_v15 = vmul.f32 %v3812_v38, %v6192_v62  ;;  %v3787_v47 = vsel %vm962_vm0, %v3759_v26, %v3761_v33 }
0x10ca   : > { %v3835_v4 = vmul.f32 %v3787_v47, %v6193_v58 }
0x10cb   : > { %3838 = vrot.lane.b32.xlu1 %v3834_v15, %s4337_s22 }
0x10cc   : > { %3840 = vrot.lane.b32.xlu0 %v3835_v4, %s4337_s22 }
0x10cf   : > { %v3767_v61 = vpop.permute.xlu0 %3766 }
0x10d0   : > { %v3814_v0 = vsel %vm962_vm0, 0.0, %v3767_v61  ;;  %v3769_v10 = vpop.permute.xlu1 %3768 }
0x10d1   : > { %v3789_v20 = vsel %vm962_vm0, %v3767_v61, %v3769_v10  ;;  %3854 = vrot.lane.b32.xlu1 %v3814_v0, %s4353_s30  ;;  %v3816_v13 = vsel %vm962_vm0, %v3769_v10, 0.0 }
0x10d2   : > { %3856 = vrot.lane.b32.xlu0 %v3789_v20, %s4353_s30 }
0x10d3   : > { %v3771_v24 = vpop.permute.xlu0 %3770 }
0x10d4   : > { %v3815_v60 = vsel %vm962_vm0, 0.0, %v3771_v24  ;;  %v3773_v23 = vpop.permute.xlu1 %3772 }
0x10d5   : > { %v3866_v9 = vmul.f32 %v3815_v60, %v6194_v48  ;;  %v3790_v54 = vsel %vm962_vm0, %v3771_v24, %v3773_v23  ;;  %3858 = vrot.lane.b32.xlu1 %v3816_v13, %s4353_s30  ;;  %v3817_v12 = vsel %vm962_vm0, %v3773_v23, 0.0 }
0x10d6   : > { %v3867_v2 = vmul.f32 %v3790_v54, %v6192_v62  ;;  %v3868_v41 = vmul.f32 %v3817_v12, %v6193_v58 }
0x10d7   : > { %3872 = vrot.lane.b32.xlu0 %v3866_v9, %s4337_s22 }
0x10d9   : > { %3874 = vrot.lane.b32.xlu1 %v3867_v2, %s4337_s22 }
0x10db   : > { %v3779_v57 = vpop.permute.xlu0 %3778  ;;  %3876 = vrot.lane.b32.xlu0 %v3868_v41, %s4337_s22 }
0x10dc   : > { %v3781_v1 = vpop.permute.xlu1 %3780 }
0x10dd   : > { %v3792_v44 = vsel %vm962_vm0, %v3779_v57, %v3781_v1  ;;  %v3819_v19 = vsel %vm962_vm0, %v3781_v1, 0.0 }
0x10de   : > { %3891 = vrot.lane.b32.xlu1 %v3819_v19, %s4353_s30 }
0x10df   : > { %3889 = vrot.lane.b32.xlu0 %v3792_v44, %s4353_s30  ;;  %v3783_v51 = vpop.permute.xlu0 %3782 }
0x10e0   : > { %v3785_v25 = vpop.permute.xlu1 %3784 }
0x10e1   : > { %v3793_v50 = vsel %vm962_vm0, %v3783_v51, %v3785_v25  ;;  %v3820_v63 = vsel %vm962_vm0, %v3785_v25, 0.0 }
0x10e2   : > { %v3899_v35 = vmul.f32 %v3793_v50, %v6194_v48  ;;  %v3900_v7 = vmul.f32 %v3820_v63, %v6192_v62 }
0x10e3   : > { %v3753_v8 = vpop.permute.xlu0 %3752 }
0x10e4   : > { %3905 = vrot.lane.b32.xlu0 %v3900_v7, %s4337_s22  ;;  %3903 = vrot.lane.b32.xlu1 %v3899_v35, %s4337_s22  ;;  %v3763_v37 = vpop.permute.xlu1 %3762  ;;  %v3810_v52 = vsel %vm962_vm0, 0.0, %v3753_v8 }
0x10e5   : > { %v3821_v5 = vmul.f32 %v3810_v52, %v5350_v6  ;;  %v3813_v3 = vsel %vm962_vm0, 0.0, %v3763_v37 }
0x10e6   : > { %v3848_v15 = vmul.f32 %v3813_v3, %v5354_v46 }
0x10e7   : > { %v3765_v39 = vpop.permute.xlu0 %3764 }
0x10e8   : > { %v3777_v40 = vpop.permute.xlu1 %3776  ;;  %v3788_v21 = vsel %vm962_vm0, %v3763_v37, %v3765_v39 }
0x10e9   : > { %v3849_v33 = vmul.f32 %v3788_v21, %v5350_v6  ;;  %v3818_v0 = vsel %vm962_vm0, %v3777_v40, 0.0 }
0x10ea   : > { %v3885_v9 = vmul.f32 %v3818_v0, %v5350_v6 }
0x10eb   : > { %v3775_v30 = vpop.permute.xlu0 %3774 }
0x10ec   : > { %v3791_v23 = vsel %vm962_vm0, %v3775_v30, %v3777_v40  ;;  %vm6200_vm0 = vmmov %vm6199_vm4 }
0x10ed   : > { %v3884_v41 = vmul.f32 %v3791_v23, %v5354_v46  ;;  %vm6201_vm6 = vmmov %vm6200_vm0 }
0x10f9   : > { %v3918_v27 = vpop.permute.xlu1 %3917 }
0x10fc   : > { %v3927_v42 = vpop.permute.xlu0 %3926 }
0x1137   : > { %v3825_v36 = vpop.permute.xlu1 %3824 }
0x1138   : > { %v3827_v49 = vpop.permute.xlu0 %3826  ;;  %v3828_v29 = vsel %vm1766_vm7, %v5342_v43, %v3825_v36 }
0x1139   : > { %v3829_v34 = vsel %vm1766_vm7, %v3825_v36, %v3827_v49  ;;  %v3832_v32 = vadd.f32 %v3828_v29, %v6197_v53 }
0x113a   : > { %v3833_v45 = vadd.f32 %v3829_v34, %v3821_v5 }
0x113d   : > { %v3839_v18 = vpop.permute.xlu1 %3838 }
0x113e   : > { %v3841_v17 = vpop.permute.xlu0 %3840  ;;  %v3842_v14 = vsel %vm6196_vm14, %v5344_v11, %v3839_v18 }
0x113f   : > { %v3843_v31 = vsel %vm6195_vm12, %v3839_v18, %v3841_v17  ;;  %v3846_v38 = vadd.f32 %v3842_v14, %v3832_v32 }
0x1140   : > { %v3847_v16 = vadd.f32 %v3843_v31, %v3833_v45 }
0x1141   : > { %v3850_v61 = vadd.f32 %v3848_v15, %v3846_v38 }
0x1142   : > { %v3851_v4 = vadd.f32 %v3849_v33, %v3847_v16 }
0x1143   : > { %v3855_v28 = vpop.permute.xlu1 %3854 }
0x1144   : > { %v3857_v22 = vpop.permute.xlu0 %3856 }
0x1145   : > { %v3860_v58 = vsel %vm1766_vm7, %v3855_v28, %v3857_v22 }
0x1146   : > { %v3864_v13 = vadd.f32 %v3860_v58, %v3850_v61 }
0x1147   : > { %v3859_v26 = vpop.permute.xlu1 %3858 }
0x1148   : > { %v3861_v47 = vsel %vm1766_vm7, %v3857_v22, %v3859_v26 }
0x1149   : > { %v3873_v62 = vpop.permute.xlu0 %3872  ;;  %v3865_v10 = vadd.f32 %v3861_v47, %v3851_v4 }
0x114b   : > { %v3875_v11 = vpop.permute.xlu1 %3874 }
0x114c   : > { %v3878_v20 = vsel %vm6198_vm15, %v3873_v62, %v3875_v11 }
0x114d   : > { %v3877_v24 = vpop.permute.xlu0 %3876  ;;  %v3882_v54 = vadd.f32 %v3878_v20, %v3864_v13 }
0x114e   : > { %v3879_v60 = vsel %vm6199_vm4, %v3875_v11, %v3877_v24 }
0x114f   : > { %v3883_v48 = vadd.f32 %v3879_v60, %v3865_v10  ;;  %v3886_v19 = vadd.f32 %v3884_v41, %v3882_v54 }
0x1150   : > { %v3892_v12 = vpop.permute.xlu1 %3891 }
0x1151   : > { %v3890_v2 = vpop.permute.xlu0 %3889  ;;  %v3887_v57 = vadd.f32 %v3885_v9, %v3883_v48  ;;  %v3894_v1 = vsel %vm1766_vm7, %v3892_v12, %v5342_v43 }
0x1152   : > { %v3893_v44 = vsel %vm1766_vm7, %v3890_v2, %v3892_v12 }
0x1153   : > { %v3898_v51 = vadd.f32 %v3894_v1, %v3887_v57  ;;  %v3897_v25 = vadd.f32 %v3893_v44, %v3886_v19 }
0x1156   : > { %v3906_v50 = vpop.permute.xlu0 %3905  ;;  %v3904_v63 = vpop.permute.xlu1 %3903 }
0x1157   : > { %v3908_v35 = vsel %vm6200_vm0, %v3906_v50, %v5382_v55  ;;  %v3907_v6 = vsel %vm6201_vm6, %v3904_v63, %v3906_v50 }
0x1158   : > { %v3912_v7 = vadd.f32 %v3908_v35, %v3898_v51  ;;  %v3911_v8 = vadd.f32 %v3907_v6, %v3897_v25 }
0x115a   : > { %v3921_v37 = vmul.f32 %v3918_v27, %v3912_v7  ;;  %v3920_v46 = vmul.f32 %v3918_v27, %v3911_v8 }
0x115c   : > { %v3930_v39 = vadd.f32 %v3927_v42, %v3921_v37  ;;  %v3929_v40 = vadd.f32 %v3927_v42, %v3920_v46 }
0x115e   : > { %v4193_v30 = vmul.f32 -1.442695, %v3930_v39  ;;  %v4192_v43 = vmul.f32 -1.442695, %v3929_v40 }
0x1160   : > { %4311 = vpow2.f32 %v4193_v30 }
0x1161   : > { %4313 = vpow2.f32 %v4192_v43 }
0x116a   : > { %v4312_v36 = vpop.eup %4311 }
0x116b   : > { %v4314_v49 = vpop.eup %4313  ;;  %v3938_v18 = vadd.f32 1.0, %v4312_v36 }
0x116c   : > { %v3937_v52 = vadd.f32 1.0, %v4314_v49 }
0x116d   : > { %4315 = vrcp.f32 %v3938_v18 }
0x116e   : > { %4317 = vrcp.f32 %v3937_v52 }
0x1177   : > { %v4316_v55 = vpop.eup %4315 }
0x1178   : > { %v4318_v17 = vpop.eup %4317  ;;  %v3944_v34 = vmul.f32 %v4316_v55, %v3930_v39 }
0x1179   : > { %v3943_v5 = vmul.f32 %v4318_v17, %v3929_v40 }
0x117a   : > { %v3952_v27 = vadd.f32 %v3944_v34, %v5394_v56 }
0x117b   : > { %v3951_v42 = vadd.f32 %v3943_v5, %v5403_v59 }
0x117c   : > { %3960 = vst [vmem:[%s5573_s26 + $0x38] sm:$0xff] %v3952_v27 }
0x117d   : > { %3959 = vst [vmem:[%s5573_s26 + $0x30] sm:$0xff] %v3951_v42 }
0x117e PF: > { %s18_s27 = sadd.s32 1, %s4325_s27  }
0x117f   : > { %p15_p4 = scmp.ge.s32.totalorder %s18_s27, 4  }
0x1181   :  { %17 = sbr.rel (!%p15_p4) target bundleno = 1 (0x1), region = 109 }

</bundles_post_ra>
